<compile_context>
chip_gen: v7x
topology: tpu7x:2x2x1
jax: 0.10.0
libtpu: 0.0.40
codegen_flags: <defaults>
</compile_context>

<pallas_src>
import jax
import jax.numpy as jnp
from jax import lax
from jax.experimental import pallas as pl
from jax.experimental.pallas import tpu as pltpu

_LANE = 128


def _round_up(x, m):
    return (x + m - 1) // m * m


def _ac_block_kernel(x_ref, wc_ref, b_ref, o_ref):
    # x_ref  : (1, H+2, W+2, Cin)   bf16 padded activation, one batch element
    # wc_ref : (9, Cin, 3*Cout_p)   bf16 combined folded weights, tap-major
    # b_ref  : (3, Cout_p)          f32 folded per-branch biases
    # o_ref  : (1, H*W, Cout_p)     f32 lane-dense output block
    _, hp, wp, cin = x_ref.shape
    h, w = hp - 2, wp - 2
    hw = h * w
    coutp = b_ref.shape[1]

    def tap(ky, kx):
        # Shifted (H, W, Cin) window for tap (ky, kx), read straight from the
        # Ref (no full-tile load); (H,W,Cin)->(H*W,Cin) keeps Cin on lanes.
        return x_ref[0, ky:ky + h, kx:kx + w, :].reshape(hw, cin)

    # 9 deduplicated tap matmuls against branch-concatenated weights,
    # accumulated in f32.  Accumulator initialized from tap (0,0).
    acc = jnp.dot(tap(0, 0), wc_ref[0], preferred_element_type=jnp.float32)
    for t in range(1, 9):
        ky, kx = divmod(t, 3)
        acc = acc + jnp.dot(tap(ky, kx), wc_ref[t],
                            preferred_element_type=jnp.float32)

    # Per-branch bias + ReLU (column groups are 128-aligned -> free slices),
    # then sum the three branches.  All elementwise math stays f32.
    y = jnp.maximum(acc[:, 0:coutp] + b_ref[0], 0.0)
    y = y + jnp.maximum(acc[:, coutp:2 * coutp] + b_ref[1], 0.0)
    y = y + jnp.maximum(acc[:, 2 * coutp:3 * coutp] + b_ref[2], 0.0)
    o_ref[0] = y.astype(o_ref.dtype)


def _fold_bn(w_oihw, bias, gamma, beta, mean, var, eps=1e-5):
    """Fold eval-mode BatchNorm2d into conv weight/bias.

    w_oihw: (Cout, Cin, KH, KW) PyTorch layout -> (KH, KW, Cin, Cout) HWIO.
    """
    scale = gamma / jnp.sqrt(var + eps)                      # (Cout,)
    w_hwio = jnp.transpose(w_oihw, (2, 3, 1, 0)) * scale     # (KH,KW,Cin,Cout)
    b_eff = (bias - mean) * scale + beta
    return w_hwio.astype(jnp.float32), b_eff.astype(jnp.float32)


def _build_combined_weights(params):
    """Fold BN and fuse the three branches into one per-tap weight tensor."""
    w1, b1 = _fold_bn(params["w1"], params["b1"], params["g1"], params["be1"],
                      params["m1"], params["v1"])
    w2, b2 = _fold_bn(params["w2"], params["b2"], params["g2"], params["be2"],
                      params["m2"], params["v2"])
    w3, b3 = _fold_bn(params["w3"], params["b3"], params["g3"], params["be3"],
                      params["m3"], params["v3"])
    cin, cout = w1.shape[2], w1.shape[3]
    coutp = _round_up(cout, _LANE)   # lane-dense output padding (no-op if 128|Cout)

    # wc[t = ky*3+kx] columns: [0:Cout)               -> 3x3 branch (all taps)
    #                          [coutp:coutp+Cout)     -> 3x1 branch (kx == 1)
    #                          [2*coutp:2*coutp+Cout) -> 1x3 branch (ky == 1)
    wc = jnp.zeros((9, cin, 3 * coutp), jnp.float32)
    for ky in range(3):
        for kx in range(3):
            t = ky * 3 + kx
            wc = wc.at[t, :, 0:cout].set(w1[ky, kx])
            if kx == 1:
                wc = wc.at[t, :, coutp:coutp + cout].set(w2[ky, 0])
            if ky == 1:
                wc = wc.at[t, :, 2 * coutp:2 * coutp + cout].set(w3[0, kx])
    bc = jnp.zeros((3, coutp), jnp.float32)
    bc = bc.at[0, :cout].set(b1).at[1, :cout].set(b2).at[2, :cout].set(b3)
    return wc.astype(jnp.bfloat16), bc, cout, coutp


@jax.jit
def ac_block_forward(x_nchw, params):
    """x_nchw: (B, Cin, H, W) float32. Returns (B, Cout, H, W) float32."""
    b, cin, h, w = x_nchw.shape
    wc, bc, cout, coutp = _build_combined_weights(params)
    hp, wp = h + 2, w + 2
    hw = h * w

    # Single fused XLA pass: NCHW -> NHWC transpose + 1-px zero halo + bf16 cast.
    x_pad = jnp.pad(jnp.transpose(x_nchw, (0, 2, 3, 1)),
                    ((0, 0), (1, 1), (1, 1), (0, 0))).astype(jnp.bfloat16)

    out = pl.pallas_call(
        _ac_block_kernel,
        out_shape=jax.ShapeDtypeStruct((b, hw, coutp), jnp.float32),
        grid=(b,),
        in_specs=[
            pl.BlockSpec((1, hp, wp, cin), lambda i: (i, 0, 0, 0)),
            pl.BlockSpec((9, cin, 3 * coutp), lambda i: (0, 0, 0)),
            pl.BlockSpec((3, coutp), lambda i: (0, 0)),
        ],
        out_specs=pl.BlockSpec((1, hw, coutp), lambda i: (i, 0, 0)),
        compiler_params=pltpu.CompilerParams(
            dimension_semantics=("parallel",),
            vmem_limit_bytes=32 * 1024 * 1024),
    )(x_pad, wc, bc)

    # Strip the Cout lane padding, un-flatten the spatial dim, return NCHW.
    out = out[:, :, :cout].reshape(b, h, w, cout)
    return jnp.transpose(out, (0, 3, 1, 2))


def _reference_forward(x_nchw, params):
    """Pure-JAX reference (lax.conv) with the same bf16 weight/input rounding."""
    x_nhwc = jnp.transpose(x_nchw, (0, 2, 3, 1))
    x_q = x_nhwc.astype(jnp.bfloat16).astype(jnp.float32)

    def branch(i, wk, bk, pad):
        w_eff, b_eff = _fold_bn(params[wk], params[bk], params[f"g{i}"],
                                params[f"be{i}"], params[f"m{i}"], params[f"v{i}"])
        w_q = w_eff.astype(jnp.bfloat16).astype(jnp.float32)
        y = lax.conv_general_dilated(
            x_q, w_q, window_strides=(1, 1), padding=pad,
            dimension_numbers=("NHWC", "HWIO", "NHWC"))
        return jnp.maximum(y + b_eff, 0.0)

    y = (branch(1, "w1", "b1", ((1, 1), (1, 1)))
         + branch(2, "w2", "b2", ((1, 1), (0, 0)))
         + branch(3, "w3", "b3", ((0, 0), (1, 1))))
    return jnp.transpose(y, (0, 3, 1, 2))


def _init_params(key, cin, cout):
    ks = jax.random.split(key, 12)
    p = {
        # conv weights in PyTorch OIHW layout, biases (Cout,)
        "w1": 0.1 * jax.random.normal(ks[0], (cout, cin, 3, 3), jnp.float32),
        "b1": 0.1 * jax.random.normal(ks[1], (cout,), jnp.float32),
        "w2": 0.1 * jax.random.normal(ks[2], (cout, cin, 3, 1), jnp.float32),
        "b2": 0.1 * jax.random.normal(ks[3], (cout,), jnp.float32),
        "w3": 0.1 * jax.random.normal(ks[4], (cout, cin, 1, 3), jnp.float32),
        "b3": 0.1 * jax.random.normal(ks[5], (cout,), jnp.float32),
    }
    # BatchNorm parameters (eval semantics: running stats + affine).
    for i, (kg, kb, km, kv) in enumerate(
            [(ks[6], ks[7], ks[8], ks[9]),
             (ks[10], ks[11], ks[6], ks[7]),
             (ks[8], ks[9], ks[10], ks[11])], start=1):
        p[f"g{i}"] = 1.0 + 0.05 * jax.random.normal(kg, (cout,), jnp.float32)
        p[f"be{i}"] = 0.05 * jax.random.normal(kb, (cout,), jnp.float32)
        p[f"m{i}"] = 0.05 * jax.random.normal(km, (cout,), jnp.float32)
        p[f"v{i}"] = 1.0 + 0.1 * jax.nn.softplus(
            jax.random.normal(kv, (cout,), jnp.float32))
    return p


if __name__ == "__main__":
    key = jax.random.PRNGKey(0)
    kx, kp = jax.random.split(key)

    B, CIN, COUT, H, W = 2, 4, 4, 16, 16
    x = jax.random.normal(kx, (B, CIN, H, W), jnp.float32)
    params = _init_params(kp, CIN, COUT)

    out = jax.block_until_ready(ac_block_forward(x, params))

    ref = _reference_forward(x, params)
    assert out.shape == (B, COUT, H, W)
    assert jnp.allclose(out, ref, rtol=5e-3, atol=5e-3), "mismatch vs reference"

    print("KERNEL_OK")
</pallas_src>

<mosaic_0001>
module attributes {stable_mosaic.version = 11 : i64} {
  func.func @_ac_block_kernel(%arg0: i32, %arg1: memref<1x18x18x4xbf16, #tpu.memory_space<vmem>>, %arg2: memref<9x4x384xbf16, #tpu.memory_space<vmem>>, %arg3: memref<3x128xf32, #tpu.memory_space<vmem>>, %arg4: memref<1x256x128xf32, #tpu.memory_space<vmem>>) attributes {dimension_semantics = [#tpu.dimension_semantics<parallel>], iteration_bounds = array<i64: 2>, scalar_prefetch = 0 : i64, scratch_operands = 0 : i64, tpu.core_type = #tpu.core_type<tc>, window_params = [{transform_indices = @transform_0, window_bounds = array<i64: 1, 18, 18, 4>}, {pipeline_mode = #tpu.pipeline_mode<synchronous>, transform_indices = @transform_1, window_bounds = array<i64: 9, 4, 384>}, {pipeline_mode = #tpu.pipeline_mode<synchronous>, transform_indices = @transform_2, window_bounds = array<i64: 3, 128>}, {transform_indices = @transform_3, window_bounds = array<i64: 1, 256, 128>}]} {
    %c0 = arith.constant 0 : index
    %c0_0 = arith.constant 0 : index
    %c0_1 = arith.constant 0 : index
    %c0_2 = arith.constant 0 : index
    %0 = vector.load %arg1[%c0, %c0_0, %c0_1, %c0_2] : memref<1x18x18x4xbf16, #tpu.memory_space<vmem>>, vector<1x16x16x4xbf16>
    %1 = vector.shape_cast %0 : vector<1x16x16x4xbf16> to vector<16x16x4xbf16>
    %2 = vector.shape_cast %1 : vector<16x16x4xbf16> to vector<256x4xbf16>
    %c0_3 = arith.constant 0 : index
    %c0_4 = arith.constant 0 : index
    %c0_5 = arith.constant 0 : index
    %3 = vector.load %arg2[%c0_3, %c0_4, %c0_5] : memref<9x4x384xbf16, #tpu.memory_space<vmem>>, vector<1x4x384xbf16>
    %4 = vector.shape_cast %3 : vector<1x4x384xbf16> to vector<4x384xbf16>
    %cst = arith.constant dense<0.000000e+00> : vector<256x384xf32>
    %5 = tpu.matmul %2, %4, %cst {dimension_numbers = #tpu.dot_dimension_numbers<[1], [0], [0], [1], [0, 0, 1, 1], [], []>} : vector<256x4xbf16>, vector<4x384xbf16>, vector<256x384xf32> -> vector<256x384xf32>
    %c0_6 = arith.constant 0 : index
    %c0_7 = arith.constant 0 : index
    %c1 = arith.constant 1 : index
    %c0_8 = arith.constant 0 : index
    %6 = vector.load %arg1[%c0_6, %c0_7, %c1, %c0_8] : memref<1x18x18x4xbf16, #tpu.memory_space<vmem>>, vector<1x16x16x4xbf16>
    %7 = vector.shape_cast %6 : vector<1x16x16x4xbf16> to vector<16x16x4xbf16>
    %8 = vector.shape_cast %7 : vector<16x16x4xbf16> to vector<256x4xbf16>
    %c1_9 = arith.constant 1 : index
    %c0_10 = arith.constant 0 : index
    %c0_11 = arith.constant 0 : index
    %9 = vector.load %arg2[%c1_9, %c0_10, %c0_11] : memref<9x4x384xbf16, #tpu.memory_space<vmem>>, vector<1x4x384xbf16>
    %10 = vector.shape_cast %9 : vector<1x4x384xbf16> to vector<4x384xbf16>
    %cst_12 = arith.constant dense<0.000000e+00> : vector<256x384xf32>
    %11 = tpu.matmul %8, %10, %cst_12 {dimension_numbers = #tpu.dot_dimension_numbers<[1], [0], [0], [1], [0, 0, 1, 1], [], []>} : vector<256x4xbf16>, vector<4x384xbf16>, vector<256x384xf32> -> vector<256x384xf32>
    %12 = arith.addf %5, %11 : vector<256x384xf32>
    %c0_13 = arith.constant 0 : index
    %c0_14 = arith.constant 0 : index
    %c2 = arith.constant 2 : index
    %c0_15 = arith.constant 0 : index
    %13 = vector.load %arg1[%c0_13, %c0_14, %c2, %c0_15] : memref<1x18x18x4xbf16, #tpu.memory_space<vmem>>, vector<1x16x16x4xbf16>
    %14 = vector.shape_cast %13 : vector<1x16x16x4xbf16> to vector<16x16x4xbf16>
    %15 = vector.shape_cast %14 : vector<16x16x4xbf16> to vector<256x4xbf16>
    %c2_16 = arith.constant 2 : index
    %c0_17 = arith.constant 0 : index
    %c0_18 = arith.constant 0 : index
    %16 = vector.load %arg2[%c2_16, %c0_17, %c0_18] : memref<9x4x384xbf16, #tpu.memory_space<vmem>>, vector<1x4x384xbf16>
    %17 = vector.shape_cast %16 : vector<1x4x384xbf16> to vector<4x384xbf16>
    %cst_19 = arith.constant dense<0.000000e+00> : vector<256x384xf32>
    %18 = tpu.matmul %15, %17, %cst_19 {dimension_numbers = #tpu.dot_dimension_numbers<[1], [0], [0], [1], [0, 0, 1, 1], [], []>} : vector<256x4xbf16>, vector<4x384xbf16>, vector<256x384xf32> -> vector<256x384xf32>
    %19 = arith.addf %12, %18 : vector<256x384xf32>
    %c0_20 = arith.constant 0 : index
    %c1_21 = arith.constant 1 : index
    %c0_22 = arith.constant 0 : index
    %c0_23 = arith.constant 0 : index
    %20 = vector.load %arg1[%c0_20, %c1_21, %c0_22, %c0_23] : memref<1x18x18x4xbf16, #tpu.memory_space<vmem>>, vector<1x16x16x4xbf16>
    %21 = vector.shape_cast %20 : vector<1x16x16x4xbf16> to vector<16x16x4xbf16>
    %22 = vector.shape_cast %21 : vector<16x16x4xbf16> to vector<256x4xbf16>
    %c3 = arith.constant 3 : index
    %c0_24 = arith.constant 0 : index
    %c0_25 = arith.constant 0 : index
    %23 = vector.load %arg2[%c3, %c0_24, %c0_25] : memref<9x4x384xbf16, #tpu.memory_space<vmem>>, vector<1x4x384xbf16>
    %24 = vector.shape_cast %23 : vector<1x4x384xbf16> to vector<4x384xbf16>
    %cst_26 = arith.constant dense<0.000000e+00> : vector<256x384xf32>
    %25 = tpu.matmul %22, %24, %cst_26 {dimension_numbers = #tpu.dot_dimension_numbers<[1], [0], [0], [1], [0, 0, 1, 1], [], []>} : vector<256x4xbf16>, vector<4x384xbf16>, vector<256x384xf32> -> vector<256x384xf32>
    %26 = arith.addf %19, %25 : vector<256x384xf32>
    %c0_27 = arith.constant 0 : index
    %c1_28 = arith.constant 1 : index
    %c1_29 = arith.constant 1 : index
    %c0_30 = arith.constant 0 : index
    %27 = vector.load %arg1[%c0_27, %c1_28, %c1_29, %c0_30] : memref<1x18x18x4xbf16, #tpu.memory_space<vmem>>, vector<1x16x16x4xbf16>
    %28 = vector.shape_cast %27 : vector<1x16x16x4xbf16> to vector<16x16x4xbf16>
    %29 = vector.shape_cast %28 : vector<16x16x4xbf16> to vector<256x4xbf16>
    %c4 = arith.constant 4 : index
    %c0_31 = arith.constant 0 : index
    %c0_32 = arith.constant 0 : index
    %30 = vector.load %arg2[%c4, %c0_31, %c0_32] : memref<9x4x384xbf16, #tpu.memory_space<vmem>>, vector<1x4x384xbf16>
    %31 = vector.shape_cast %30 : vector<1x4x384xbf16> to vector<4x384xbf16>
    %cst_33 = arith.constant dense<0.000000e+00> : vector<256x384xf32>
    %32 = tpu.matmul %29, %31, %cst_33 {dimension_numbers = #tpu.dot_dimension_numbers<[1], [0], [0], [1], [0, 0, 1, 1], [], []>} : vector<256x4xbf16>, vector<4x384xbf16>, vector<256x384xf32> -> vector<256x384xf32>
    %33 = arith.addf %26, %32 : vector<256x384xf32>
    %c0_34 = arith.constant 0 : index
    %c1_35 = arith.constant 1 : index
    %c2_36 = arith.constant 2 : index
    %c0_37 = arith.constant 0 : index
    %34 = vector.load %arg1[%c0_34, %c1_35, %c2_36, %c0_37] : memref<1x18x18x4xbf16, #tpu.memory_space<vmem>>, vector<1x16x16x4xbf16>
    %35 = vector.shape_cast %34 : vector<1x16x16x4xbf16> to vector<16x16x4xbf16>
    %36 = vector.shape_cast %35 : vector<16x16x4xbf16> to vector<256x4xbf16>
    %c5 = arith.constant 5 : index
    %c0_38 = arith.constant 0 : index
    %c0_39 = arith.constant 0 : index
    %37 = vector.load %arg2[%c5, %c0_38, %c0_39] : memref<9x4x384xbf16, #tpu.memory_space<vmem>>, vector<1x4x384xbf16>
    %38 = vector.shape_cast %37 : vector<1x4x384xbf16> to vector<4x384xbf16>
    %cst_40 = arith.constant dense<0.000000e+00> : vector<256x384xf32>
    %39 = tpu.matmul %36, %38, %cst_40 {dimension_numbers = #tpu.dot_dimension_numbers<[1], [0], [0], [1], [0, 0, 1, 1], [], []>} : vector<256x4xbf16>, vector<4x384xbf16>, vector<256x384xf32> -> vector<256x384xf32>
    %40 = arith.addf %33, %39 : vector<256x384xf32>
    %c0_41 = arith.constant 0 : index
    %c2_42 = arith.constant 2 : index
    %c0_43 = arith.constant 0 : index
    %c0_44 = arith.constant 0 : index
    %41 = vector.load %arg1[%c0_41, %c2_42, %c0_43, %c0_44] : memref<1x18x18x4xbf16, #tpu.memory_space<vmem>>, vector<1x16x16x4xbf16>
    %42 = vector.shape_cast %41 : vector<1x16x16x4xbf16> to vector<16x16x4xbf16>
    %43 = vector.shape_cast %42 : vector<16x16x4xbf16> to vector<256x4xbf16>
    %c6 = arith.constant 6 : index
    %c0_45 = arith.constant 0 : index
    %c0_46 = arith.constant 0 : index
    %44 = vector.load %arg2[%c6, %c0_45, %c0_46] : memref<9x4x384xbf16, #tpu.memory_space<vmem>>, vector<1x4x384xbf16>
    %45 = vector.shape_cast %44 : vector<1x4x384xbf16> to vector<4x384xbf16>
    %cst_47 = arith.constant dense<0.000000e+00> : vector<256x384xf32>
    %46 = tpu.matmul %43, %45, %cst_47 {dimension_numbers = #tpu.dot_dimension_numbers<[1], [0], [0], [1], [0, 0, 1, 1], [], []>} : vector<256x4xbf16>, vector<4x384xbf16>, vector<256x384xf32> -> vector<256x384xf32>
    %47 = arith.addf %40, %46 : vector<256x384xf32>
    %c0_48 = arith.constant 0 : index
    %c2_49 = arith.constant 2 : index
    %c1_50 = arith.constant 1 : index
    %c0_51 = arith.constant 0 : index
    %48 = vector.load %arg1[%c0_48, %c2_49, %c1_50, %c0_51] : memref<1x18x18x4xbf16, #tpu.memory_space<vmem>>, vector<1x16x16x4xbf16>
    %49 = vector.shape_cast %48 : vector<1x16x16x4xbf16> to vector<16x16x4xbf16>
    %50 = vector.shape_cast %49 : vector<16x16x4xbf16> to vector<256x4xbf16>
    %c7 = arith.constant 7 : index
    %c0_52 = arith.constant 0 : index
    %c0_53 = arith.constant 0 : index
    %51 = vector.load %arg2[%c7, %c0_52, %c0_53] : memref<9x4x384xbf16, #tpu.memory_space<vmem>>, vector<1x4x384xbf16>
    %52 = vector.shape_cast %51 : vector<1x4x384xbf16> to vector<4x384xbf16>
    %cst_54 = arith.constant dense<0.000000e+00> : vector<256x384xf32>
    %53 = tpu.matmul %50, %52, %cst_54 {dimension_numbers = #tpu.dot_dimension_numbers<[1], [0], [0], [1], [0, 0, 1, 1], [], []>} : vector<256x4xbf16>, vector<4x384xbf16>, vector<256x384xf32> -> vector<256x384xf32>
    %54 = arith.addf %47, %53 : vector<256x384xf32>
    %c0_55 = arith.constant 0 : index
    %c2_56 = arith.constant 2 : index
    %c2_57 = arith.constant 2 : index
    %c0_58 = arith.constant 0 : index
    %55 = vector.load %arg1[%c0_55, %c2_56, %c2_57, %c0_58] : memref<1x18x18x4xbf16, #tpu.memory_space<vmem>>, vector<1x16x16x4xbf16>
    %56 = vector.shape_cast %55 : vector<1x16x16x4xbf16> to vector<16x16x4xbf16>
    %57 = vector.shape_cast %56 : vector<16x16x4xbf16> to vector<256x4xbf16>
    %c8 = arith.constant 8 : index
    %c0_59 = arith.constant 0 : index
    %c0_60 = arith.constant 0 : index
    %58 = vector.load %arg2[%c8, %c0_59, %c0_60] : memref<9x4x384xbf16, #tpu.memory_space<vmem>>, vector<1x4x384xbf16>
    %59 = vector.shape_cast %58 : vector<1x4x384xbf16> to vector<4x384xbf16>
    %cst_61 = arith.constant dense<0.000000e+00> : vector<256x384xf32>
    %60 = tpu.matmul %57, %59, %cst_61 {dimension_numbers = #tpu.dot_dimension_numbers<[1], [0], [0], [1], [0, 0, 1, 1], [], []>} : vector<256x4xbf16>, vector<4x384xbf16>, vector<256x384xf32> -> vector<256x384xf32>
    %61 = arith.addf %54, %60 : vector<256x384xf32>
    %62 = vector.extract_strided_slice %61 {offsets = [0, 0], sizes = [256, 128], strides = [1, 1]} : vector<256x384xf32> to vector<256x128xf32>
    %c0_62 = arith.constant 0 : index
    %c0_63 = arith.constant 0 : index
    %63 = vector.load %arg3[%c0_62, %c0_63] : memref<3x128xf32, #tpu.memory_space<vmem>>, vector<1x128xf32>
    %64 = vector.shape_cast %63 : vector<1x128xf32> to vector<128xf32>
    %65 = vector.shape_cast %64 : vector<128xf32> to vector<1x128xf32>
    %66 = vector.broadcast %65 : vector<1x128xf32> to vector<256x128xf32>
    %67 = arith.addf %62, %66 : vector<256x128xf32>
    %cst_64 = arith.constant 0.000000e+00 : f32
    %68 = vector.broadcast %cst_64 : f32 to vector<256x128xf32>
    %69 = arith.maximumf %67, %68 : vector<256x128xf32>
    %70 = vector.extract_strided_slice %61 {offsets = [0, 128], sizes = [256, 128], strides = [1, 1]} : vector<256x384xf32> to vector<256x128xf32>
    %c1_65 = arith.constant 1 : index
    %c0_66 = arith.constant 0 : index
    %71 = vector.load %arg3[%c1_65, %c0_66] : memref<3x128xf32, #tpu.memory_space<vmem>>, vector<1x128xf32>
    %72 = vector.shape_cast %71 : vector<1x128xf32> to vector<128xf32>
    %73 = vector.shape_cast %72 : vector<128xf32> to vector<1x128xf32>
    %74 = vector.broadcast %73 : vector<1x128xf32> to vector<256x128xf32>
    %75 = arith.addf %70, %74 : vector<256x128xf32>
    %cst_67 = arith.constant 0.000000e+00 : f32
    %76 = vector.broadcast %cst_67 : f32 to vector<256x128xf32>
    %77 = arith.maximumf %75, %76 : vector<256x128xf32>
    %78 = arith.addf %69, %77 : vector<256x128xf32>
    %79 = vector.extract_strided_slice %61 {offsets = [0, 256], sizes = [256, 128], strides = [1, 1]} : vector<256x384xf32> to vector<256x128xf32>
    %c2_68 = arith.constant 2 : index
    %c0_69 = arith.constant 0 : index
    %80 = vector.load %arg3[%c2_68, %c0_69] : memref<3x128xf32, #tpu.memory_space<vmem>>, vector<1x128xf32>
    %81 = vector.shape_cast %80 : vector<1x128xf32> to vector<128xf32>
    %82 = vector.shape_cast %81 : vector<128xf32> to vector<1x128xf32>
    %83 = vector.broadcast %82 : vector<1x128xf32> to vector<256x128xf32>
    %84 = arith.addf %79, %83 : vector<256x128xf32>
    %cst_70 = arith.constant 0.000000e+00 : f32
    %85 = vector.broadcast %cst_70 : f32 to vector<256x128xf32>
    %86 = arith.maximumf %84, %85 : vector<256x128xf32>
    %87 = arith.addf %78, %86 : vector<256x128xf32>
    %c0_71 = arith.constant 0 : index
    %c0_72 = arith.constant 0 : index
    %c0_73 = arith.constant 0 : index
    %88 = vector.load %arg4[%c0_71, %c0_72, %c0_73] : memref<1x256x128xf32, #tpu.memory_space<vmem>>, vector<1x256x128xf32>
    %89 = vector.shape_cast %88 : vector<1x256x128xf32> to vector<256x128xf32>
    %90 = vector.shape_cast %87 : vector<256x128xf32> to vector<1x256x128xf32>
    tpu.vector_store %arg4[%c0_71, %c0_72, %c0_73], %90 {strides = array<i32>} : memref<1x256x128xf32, #tpu.memory_space<vmem>>, vector<1x256x128xf32>,
    return
  }
  func.func @transform_0(%arg0: i32) -> (i32, i32, i32, i32) {
    %c0_i32 = arith.constant 0 : i32
    %c0_i32_0 = arith.constant 0 : i32
    %c0_i32_1 = arith.constant 0 : i32
    %c0_i32_2 = arith.constant 0 : i32
    return %arg0, %c0_i32, %c0_i32_0, %c0_i32_1 : i32, i32, i32, i32
  }
  func.func @transform_1(%arg0: i32) -> (i32, i32, i32) {
    %c0_i32 = arith.constant 0 : i32
    %c0_i32_0 = arith.constant 0 : i32
    %c0_i32_1 = arith.constant 0 : i32
    %c0_i32_2 = arith.constant 0 : i32
    return %c0_i32, %c0_i32_0, %c0_i32_1 : i32, i32, i32
  }
  func.func @transform_2(%arg0: i32) -> (i32, i32) {
    %c0_i32 = arith.constant 0 : i32
    %c0_i32_0 = arith.constant 0 : i32
    %c0_i32_1 = arith.constant 0 : i32
    return %c0_i32, %c0_i32_0 : i32, i32
  }
  func.func @transform_3(%arg0: i32) -> (i32, i32, i32) {
    %c0_i32 = arith.constant 0 : i32
    %c0_i32_0 = arith.constant 0 : i32
    %c0_i32_1 = arith.constant 0 : i32
    return %arg0, %c0_i32, %c0_i32_0 : i32, i32, i32
  }
}

</mosaic_0001>

<bundles_post_ra>
// kernel: ac_block_forward.1
= control target key start
LH: loop header
LB: loop body
LE: loop exit
PB: predicated region body
PF: predicated region fallthrough
CT: control target
= control target key end

     0   :  { %s9747_s12 = smov 0   ;;  %s12078_s0 = inlined_call_operand.vmem [shape: bf16[2,18,18,4], index: 0, kind: input, shape index: {}]   ;;  %s12079_s1 = inlined_call_operand.vmem [shape: bf16[9,4,384], index: 1, kind: input, shape index: {}]   ;;  %s12080_s2 = inlined_call_operand.vmem [shape: f32[3,128], index: 2, kind: input, shape index: {}]   ;;  %s12081_s3 = inlined_call_operand.vmem [shape: f32[2,256,128], index: 3, kind: output, shape index: {}]  }
   0x1 LB: > { %s7593_s13 = sadd.s32 4294967295, %s9723_s12   ;;  %p7597_p0 = scmp.ge.s32.totalorder %s9723_s12, 1  ;;  %s9723_s12 = sphi %s9747_s12, %s13_s12  }
   0x2   : > { %p137_p1 = scmp.lt.s32.totalorder %s9723_s12, 3 }
   0x4   : > { %p138_p2 = pnand %p7597_p0, %p137_p1 }
   0x6   : > { %141 = sbr.rel (%p138_p2) target bundleno = 1112 (0x458), region = 32 }
   0xd   : > { %v663_v0 = vlaneseq  ;;  %v9725_v1 = vmov 1983009808   ;;  %v12086_v3 = vmov 0   ;;  %p161_p3 = scmp.lt.s32.totalorder %s7593_s13, 1  ;;  %v7601_v6 = vld [vmem:[%s12079_s1 + $0x6] sm:$0x3f] }
   0xe   : > { %v661_v2 = vunpack.c.l.s4 %v9725_v1  ;;  %1963 = vmatprep.mubr.bf16.mxu0 %v12086_v3  ;;  %766 = vmatprep.mubr.bf16.mxu1 %v12086_v3  ;;  %v9712_v7 = vld.sshfl [vmem:[%s12079_s1 + $0xc] sm:$0x3f pattern:$0x76325410]  ;;  %v659_v8 = vcombine.high %v7601_v6, %v7601_v6  ;;  %vm724_vm0 = vcmask 1041408   ;;  %vm675_vm1 = vcmask 31744  }
   0xf   : > { %v664_v4 = vshrl.u32 %v663_v0, 7  ;;  %s12243_s13 = smov (!%p161_p3, %s7593_s13), 1  ;;  %v9713_v9 = vld.sshfl [vmem:[%s12079_s1 + $0x12] sm:$0x3f pattern:$0x76325410]  ;;  %v9781_v16 = vcombine.high %v9712_v7, %v9712_v7 }
  0x10   : > { %v662_v5 = vunpack.c.0.s8 %v661_v2  ;;  %s9598_s20 = smul.u32 216, %s12243_s13  ;;  %vm1692_vm2 = vcmask 1042432   ;;  %vm1693_vm3 = vcmask 1046532   ;;  %vm221_vm4 = vsmask.f32 3328  ;;  %s8359_s27 = sshll.u32 %s12243_s13, 8 }
  0x11   : > { %vm222_vm5 = vsmask.f32 7440  ;;  %v9784_v17 = vsel %vm724_vm0, %v9712_v7, 0  ;;  %vm9786_vm6 = vmor %vm1692_vm2, %vm1693_vm3  ;;  %v2512_v25 = vcombine.high %v9713_v9, %v9713_v9  ;;  %7733 = vmatprep.subr.msk.bf16.mxu0 %vm724_vm0, %v9781_v16  ;;  %v2562_v28 = vsel %vm724_vm0, %v9713_v9, 0  ;;  %v11793_v19 = vld [vmem:[%s12080_s2 + $0x1] ss:$0 sm:$0xff]  ;;  %s11913_s13 = scalar_lea.vmem %s12081_s3, %s8359_s27 }
  0x12   : > { %v9768_v10 = vsub.s32 %v662_v5, %v664_v4  ;;  %s9775_s23 = scalar_lea.vmem %s12078_s0, %s9598_s20  ;;  %1932 = vmatpush1.bf16.msra.mxu0 %v9784_v17  ;;  %vm9815_vm7 = vmor %vm221_vm4, %vm222_vm5 }
  0x13   : > { %v1596_v12 = vld [vmem:[%s9775_s23] sm:$0xe]  ;;  %v1597_v13 = vld [vmem:[%s9775_s23 + $0x4] sm:$0xf]  ;;  %v1598_v14 = vld [vmem:[%s9775_s23 + $0x8] sm:$0x1]  ;;  %7815 = vmatprep.subr.msk.bf16.mxu0 %vm724_vm0, %v2512_v25 }
  0x14   : > { %v666_v11 = vrot.slane %v7601_v6, %v9768_v10  ;;  %v673_v15 = vrot.slane %v659_v8, %v9768_v10  ;;  %v7700_v20 = vrot.slane %v1596_v12, 9  ;;  %v172_v21 = vld [vmem:[%s9775_s23] sm:$0xf]  ;;  %v173_v22 = vld [vmem:[%s9775_s23 + $0x4] sm:$0xf]  ;;  %v1697_v23 = vrot.slane %v1597_v13, 5 }
  0x15   : > { %v1700_v24 = vrot.slane %v1598_v14, 5  ;;  %v205_v27 = vld [vmem:[%s9775_s23 + $0x8] sm:$0x1]  ;;  %v225_v29 = vshrl.u32 %v172_v21, 16  ;;  %v228_v30 = vshll.u32 %v172_v21, 16  ;;  %v234_v31 = vshll.u32 %v173_v22, 16 }
  0x16   : > { %v674_v18 = vcombine.high %v666_v11, %v666_v11  ;;  %v726_v26 = vsel %vm724_vm0, %v666_v11, 0  ;;  %v1599_v32 = vld [vmem:[%s9775_s23 + $0xc] sm:$0xe]  ;;  %v1698_v33 = vsel %vm9786_vm6, %v7700_v20, %v1697_v23  ;;  %v1699_v34 = vrot.slane %v1697_v23, 4  ;;  %v1600_v37 = vld [vmem:[%s9775_s23 + $0x10] sm:$0xf] }
  0x17   : > { %v238_v35 = vshrl.u32 %v173_v22, 16  ;;  %v244_v36 = vshll.u32 %v205_v27, 16  ;;  %v227_v38 = vrot.slane %v225_v29, 4  ;;  %v230_v39 = vrot.slane %v228_v30, 5  ;;  %v1601_v42 = vld [vmem:[%s9775_s23 + $0x14] sm:$0x1] }
  0x18   : > { %7618 = vmatprep.subr.msk.bf16.mxu1 %vm724_vm0, %v674_v18  ;;  %v236_v40 = vrot.slane %v234_v31, 5  ;;  %v732_v41 = vsel %vm724_vm0, %v673_v15, 0  ;;  %v1701_v43 = vsel %vm9786_vm6, %v1699_v34, %v1700_v24  ;;  %v7701_v46 = vrot.slane %v1599_v32, 9  ;;  %v174_v47 = vld [vmem:[%s9775_s23 + $0xc] sm:$0xf] }
  0x19   : > { %735 = vmatpush1.bf16.msra.mxu1 %v726_v26  ;;  %v240_v44 = vrot.slane %v238_v35, 4  ;;  %v246_v45 = vrot.slane %v244_v36, 5  ;;  %v9810_v48 = vcombine.low %v1698_v33, %v1701_v43  ;;  %v231_v49 = vor.u32 %v230_v39, %v227_v38  ;;  %v175_v52 = vld [vmem:[%s9775_s23 + $0x10] sm:$0xf]  ;;  %v206_v55 = vld [vmem:[%s9775_s23 + $0x14] sm:$0x1] }
  0x1a   : > { %9589 = vmatprep.subr.msk.bf16.mxu1 %vm724_vm0, %v673_v15  ;;  %v1704_v50 = vrot.slane %v1600_v37, 5  ;;  %v1707_v51 = vrot.slane %v1601_v42, 5  ;;  %v249_v56 = vshrl.u32 %v174_v47, 16  ;;  %v252_v57 = vshll.u32 %v174_v47, 16  ;;  %v1602_v63 = vld [vmem:[%s9775_s23 + $0x18] sm:$0xe] }
  0x1b   : > { %v241_v54 = vor.u32 %v240_v44, %v236_v40  ;;  %v258_v58 = vshll.u32 %v175_v52, 16  ;;  %7734 = vmatmul.mubr.msk.bf16.vlgmr.msra.gmra.mrb[0].mxu0 %vm675_vm1, %v9810_v48  ;;  %v232_v59 = vrot.slane %v231_v49, 4  ;;  %v262_v62 = vshrl.u32 %v175_v52, 16  ;;  %v1603_v5 = vld [vmem:[%s9775_s23 + $0x1c] sm:$0xf] }
  0x1c   : > { %v1705_v60 = vsel %vm9786_vm6, %v7701_v46, %v1704_v50  ;;  %v1706_v61 = vrot.slane %v1704_v50, 4  ;;  %2571 = vmatpush1.bf16.msra.mxu0 %v2562_v28  ;;  %1973 = vmatprep.mubr.bf16.mxu0 %v12086_v3  ;;  %v251_v1 = vrot.slane %v249_v56, 4  ;;  %v254_v2 = vrot.slane %v252_v57, 5  ;;  %v1604_v11 = vld [vmem:[%s9775_s23 + $0x20] sm:$0x1] }
  0x1d   : > { %v242_v0 = vrot.slane %v241_v54, 4  ;;  %v260_v4 = vrot.slane %v258_v58, 5  ;;  %v237_v6 = vsel %vm9815_vm7, %v232_v59, %v236_v40  ;;  %v264_v8 = vrot.slane %v262_v62, 4  ;;  %v176_v12 = vld [vmem:[%s9775_s23 + $0x18] sm:$0xf] }
  0x1e   : > { %v1708_v7 = vsel %vm9786_vm6, %v1706_v61, %v1707_v51  ;;  %v268_v9 = vshll.u32 %v206_v55, 16  ;;  %v255_v15 = vor.u32 %v254_v2, %v251_v1  ;;  %v7702_v18 = vrot.slane %v1602_v63, 9  ;;  %v177_v20 = vld [vmem:[%s9775_s23 + $0x1c] sm:$0xf]  ;;  %v207_v27 = vld [vmem:[%s9775_s23 + $0x20] sm:$0x1] }
  0x1f   : > { %v247_v13 = vsel %vm9815_vm7, %v242_v0, %v246_v45  ;;  %v9835_v14 = vcombine.low %v1705_v60, %v1708_v7  ;;  %v265_v22 = vor.u32 %v264_v8, %v260_v4  ;;  %v1711_v24 = vrot.slane %v1603_v5, 5  ;;  %v1605_v34 = vld [vmem:[%s9775_s23 + $0x24] sm:$0xe]  ;;  %v1606_v39 = vld [vmem:[%s9775_s23 + $0x28] sm:$0xf] }
  0x20   : > { %v9838_v21 = vcombine.low %v237_v6, %v247_v13  ;;  %v270_v23 = vrot.slane %v268_v9, 5  ;;  %v256_v25 = vrot.slane %v255_v15, 4  ;;  %v1714_v26 = vrot.slane %v1604_v11, 5  ;;  %v178_v44 = vld [vmem:[%s9775_s23 + $0x24] sm:$0xf] }
  0x21   : > { %v273_v28 = vshrl.u32 %v176_v12, 16  ;;  %v276_v29 = vshll.u32 %v176_v12, 16  ;;  %v266_v30 = vrot.slane %v265_v22, 4  ;;  %v1712_v31 = vsel %vm9786_vm6, %v7702_v18, %v1711_v24  ;;  %v1607_v49 = vld [vmem:[%s9775_s23 + $0x2c] sm:$0x1] }
  0x22   : > { %7619 = vmatmul.mubr.msk.bf16.vlgmr.msra.gmra.mrb[0].mxu1 %vm675_vm1, %v9838_v21  ;;  %v1713_v32 = vrot.slane %v1711_v24, 4  ;;  %v282_v33 = vshll.u32 %v177_v20, 16  ;;  %v261_v35 = vsel %vm9815_vm7, %v256_v25, %v260_v4  ;;  %v286_v38 = vshrl.u32 %v177_v20, 16  ;;  %v179_v50 = vld [vmem:[%s9775_s23 + $0x28] sm:$0xf] }
  0x23   : > { %8514 = vmatpush3.bf16.msra.mxu1 %v732_v41  ;;  %776 = vmatprep.mubr.bf16.mxu1 %v12086_v3  ;;  %v275_v36 = vrot.slane %v273_v28, 4  ;;  %v278_v37 = vrot.slane %v276_v29, 5  ;;  %v271_v40 = vsel %vm9815_vm7, %v266_v30, %v270_v23  ;;  %v292_v43 = vshll.u32 %v207_v27, 16  ;;  %v208_v58 = vld [vmem:[%s9775_s23 + $0x2c] sm:$0x1] }
  0x24   : > { %7735 = vmatmul.mubr.msk.bf16.gmra.mrb[4].mxu0 %vm675_vm1, %v9835_v14  ;;  %v1715_v41 = vsel %vm9786_vm6, %v1713_v32, %v1714_v26  ;;  %v284_v42 = vrot.slane %v282_v33, 5  ;;  %v9857_v45 = vcombine.low %v261_v35, %v271_v40  ;;  %v288_v47 = vrot.slane %v286_v38, 4  ;;  %v1608_v1 = vld [vmem:[%s9775_s23 + $0x30] sm:$0xe]  ;;  %v1609_v6 = vld [vmem:[%s9775_s23 + $0x34] sm:$0xf] }
  0x25   : > { %1983 = vmatprep.mubr.bf16.mxu0 %v12086_v3  ;;  %v279_v46 = vor.u32 %v278_v37, %v275_v36  ;;  %v9862_v51 = vcombine.low %v1712_v31, %v1715_v41  ;;  %v294_v52 = vrot.slane %v292_v43, 5  ;;  %v7703_v54 = vrot.slane %v1605_v34, 9  ;;  %v180_v12 = vld [vmem:[%s9775_s23 + $0x30] sm:$0xf]  ;;  %v1610_v20 = vld [vmem:[%s9775_s23 + $0x38] sm:$0x1] }
  0x26   : > { %v1718_v55 = vrot.slane %v1606_v39, 5  ;;  %v289_v57 = vor.u32 %v288_v47, %v284_v42  ;;  %v297_v59 = vshrl.u32 %v178_v44, 16  ;;  %v300_v60 = vshll.u32 %v178_v44, 16  ;;  %v181_v22 = vld [vmem:[%s9775_s23 + $0x34] sm:$0xf] }
  0x27   : > { %v280_v56 = vrot.slane %v279_v46, 4  ;;  %v1721_v62 = vrot.slane %v1607_v49, 5  ;;  %v306_v63 = vshll.u32 %v179_v50, 16  ;;  %v310_v0 = vshrl.u32 %v179_v50, 16  ;;  %v209_v34 = vld [vmem:[%s9775_s23 + $0x38] sm:$0x1] }
  0x28   : > { %v1720_v61 = vrot.slane %v1718_v55, 4  ;;  %v290_v2 = vrot.slane %v289_v57, 4  ;;  %v299_v4 = vrot.slane %v297_v59, 4  ;;  %v302_v5 = vrot.slane %v300_v60, 5  ;;  %v1612_v47 = vld [vmem:[%s9775_s23 + $0x40] sm:$0xf] }
  0x29   : > { %v285_v7 = vsel %vm9815_vm7, %v280_v56, %v284_v42  ;;  %v308_v8 = vrot.slane %v306_v63, 5  ;;  %v312_v9 = vrot.slane %v310_v0, 4  ;;  %v316_v11 = vshll.u32 %v208_v58, 16  ;;  %v182_v42 = vld [vmem:[%s9775_s23 + $0x3c] sm:$0xf] }
  0x2a   : > { %7620 = vmatmul.mubr.msk.bf16.gmra.mrb[4].mxu1 %vm675_vm1, %v9857_v45  ;;  %v295_v13 = vsel %vm9815_vm7, %v290_v2, %v294_v52  ;;  %v1719_v15 = vsel %vm9786_vm6, %v7703_v54, %v1718_v55  ;;  %v303_v18 = vor.u32 %v302_v5, %v299_v4  ;;  %v1722_v23 = vsel %vm9786_vm6, %v1720_v61, %v1721_v62  ;;  %v183_v49 = vld [vmem:[%s9775_s23 + $0x40] sm:$0xf]  ;;  %v1611_v60 = vld [vmem:[%s9775_s23 + $0x3c] sm:$0xe]  ;;  %v1613_v2 = vld [vmem:[%s9775_s23 + $0x44] sm:$0x1] }
  0x2b   : > { %786 = vmatprep.mubr.bf16.mxu1 %v12086_v3  ;;  %v313_v24 = vor.u32 %v312_v9, %v308_v8  ;;  %v7704_v25 = vrot.slane %v1608_v1, 9  ;;  %v1725_v26 = vrot.slane %v1609_v6, 5  ;;  %v9883_v27 = vcombine.low %v285_v7, %v295_v13  ;;  %v210_v7 = vld [vmem:[%s9775_s23 + $0x44] sm:$0x1]  ;;  %v185_v13 = vld [vmem:[%s9775_s23 + $0x4c] sm:$0xf] }
  0x2c   : > { %7736 = vmatmul.mubr.msk.bf16.gmra.mrb[8].mxu0 %vm675_vm1, %v9862_v51  ;;  %v318_v28 = vrot.slane %v316_v11, 5  ;;  %v321_v29 = vshrl.u32 %v180_v12, 16  ;;  %v324_v30 = vshll.u32 %v180_v12, 16  ;;  %v304_v31 = vrot.slane %v303_v18, 4  ;;  %v184_v12 = vld [vmem:[%s9775_s23 + $0x48] sm:$0xf] }
  0x2d   : > { %1993 = vmatprep.mubr.bf16.mxu0 %v12086_v3  ;;  %v314_v32 = vrot.slane %v313_v24, 4  ;;  %v1728_v33 = vrot.slane %v1610_v20, 5  ;;  %v330_v35 = vshll.u32 %v181_v22, 16  ;;  %v1727_v36 = vrot.slane %v1725_v26, 4 }
  0x2e   : > { %v323_v37 = vrot.slane %v321_v29, 4  ;;  %v326_v38 = vrot.slane %v324_v30, 5  ;;  %v334_v39 = vshrl.u32 %v181_v22, 16  ;;  %v9887_v40 = vcombine.low %v1719_v15, %v1722_v23 }
  0x2f   : > { %v332_v41 = vrot.slane %v330_v35, 5  ;;  %v340_v46 = vshll.u32 %v209_v34, 16  ;;  %v309_v50 = vsel %vm9815_vm7, %v304_v31, %v308_v8  ;;  %v319_v52 = vsel %vm9815_vm7, %v314_v32, %v318_v28  ;;  %v1615_v28 = vld [vmem:[%s9775_s23 + $0x4c] sm:$0xf] }
  0x30   : > { %v327_v43 = vor.u32 %v326_v38, %v323_v37  ;;  %v336_v44 = vrot.slane %v334_v39, 4  ;;  %v1726_v54 = vsel %vm9786_vm6, %v7704_v25, %v1725_v26  ;;  %v1729_v55 = vsel %vm9786_vm6, %v1727_v36, %v1728_v33  ;;  %v1614_v36 = vld [vmem:[%s9775_s23 + $0x48] sm:$0xe] }
  0x31   : > { %v345_v57 = vshrl.u32 %v182_v42, 16  ;;  %v348_v58 = vshll.u32 %v182_v42, 16  ;;  %v1732_v61 = vrot.slane %v1612_v47, 5  ;;  %v354_v62 = vshll.u32 %v183_v49, 16 }
  0x32   : > { %7621 = vmatmul.mubr.msk.bf16.gmra.mrb[8].mxu1 %vm675_vm1, %v9883_v27  ;;  %v337_v56 = vor.u32 %v336_v44, %v332_v41  ;;  %v328_v59 = vrot.slane %v327_v43, 4  ;;  %v358_v63 = vshrl.u32 %v183_v49, 16  ;;  %v342_v1 = vrot.slane %v340_v46, 5  ;;  %v211_v43 = vld [vmem:[%s9775_s23 + $0x50] sm:$0x1] }
  0x33   : > { %796 = vmatprep.mubr.bf16.mxu1 %v12086_v3  ;;  %v347_v4 = vrot.slane %v345_v57, 4  ;;  %v350_v5 = vrot.slane %v348_v58, 5  ;;  %v9908_v6 = vcombine.low %v309_v50, %v319_v52  ;;  %v356_v8 = vrot.slane %v354_v62, 5  ;;  %v186_v50 = vld [vmem:[%s9775_s23 + $0x54] sm:$0xf] }
  0x34   : > { %7737 = vmatmul.mubr.msk.bf16.gmra.mrb[12].mxu0 %vm675_vm1, %v9887_v40  ;;  %v338_v0 = vrot.slane %v337_v56, 4  ;;  %v360_v9 = vrot.slane %v358_v63, 4  ;;  %v9911_v11 = vcombine.low %v1726_v54, %v1729_v55  ;;  %v333_v15 = vsel %vm9815_vm7, %v328_v59, %v332_v41  ;;  %v1616_v41 = vld [vmem:[%s9775_s23 + $0x50] sm:$0x1]  ;;  %v187_v56 = vld [vmem:[%s9775_s23 + $0x58] sm:$0xf] }
  0x35   : > { %2003 = vmatprep.mubr.bf16.mxu0 %v12086_v3  ;;  %v7705_v18 = vrot.slane %v1611_v60, 9  ;;  %v1734_v20 = vrot.slane %v1732_v61, 4  ;;  %v1735_v22 = vrot.slane %v1613_v2, 5  ;;  %v351_v24 = vor.u32 %v350_v5, %v347_v4  ;;  %v1618_v63 = vld [vmem:[%s9775_s23 + $0x58] sm:$0xf] }
  0x36   : > { %v343_v23 = vsel %vm9815_vm7, %v338_v0, %v342_v1  ;;  %v361_v25 = vor.u32 %v360_v9, %v356_v8  ;;  %v364_v26 = vshll.u32 %v210_v7, 16  ;;  %v369_v29 = vshrl.u32 %v184_v12, 16  ;;  %v1617_v7 = vld [vmem:[%s9775_s23 + $0x54] sm:$0xe] }
  0x37   : > { %v372_v30 = vshll.u32 %v184_v12, 16  ;;  %v378_v31 = vshll.u32 %v185_v13, 16  ;;  %v382_v32 = vshrl.u32 %v185_v13, 16  ;;  %v9925_v33 = vcombine.low %v333_v15, %v343_v23  ;;  %v1619_v15 = vld [vmem:[%s9775_s23 + $0x5c] sm:$0x1] }
  0x38   : > { %v1733_v34 = vsel %vm9786_vm6, %v7705_v18, %v1732_v61  ;;  %v1736_v35 = vsel %vm9786_vm6, %v1734_v20, %v1735_v22  ;;  %v352_v37 = vrot.slane %v351_v24, 4  ;;  %v362_v38 = vrot.slane %v361_v25, 4  ;;  %v189_v20 = vld [vmem:[%s9775_s23 + $0x64] sm:$0xf]  ;;  %v212_v24 = vld [vmem:[%s9775_s23 + $0x5c] sm:$0x1] }
  0x39   : > { %v366_v39 = vrot.slane %v364_v26, 5  ;;  %v1739_v42 = vrot.slane %v1615_v28, 5  ;;  %v371_v44 = vrot.slane %v369_v29, 4  ;;  %v374_v46 = vrot.slane %v372_v30, 5  ;;  %v1621_v30 = vld [vmem:[%s9775_s23 + $0x64] sm:$0xf] }
  0x3a   : > { %7622 = vmatmul.mubr.msk.bf16.gmra.mrb[12].mxu1 %vm675_vm1, %v9908_v6  ;;  %v9935_v47 = vrot.slane %v378_v31, 5  ;;  %v384_v49 = vrot.slane %v382_v32, 4  ;;  %v9938_v52 = vcombine.low %v1733_v34, %v1736_v35  ;;  %v7706_v54 = vrot.slane %v1614_v36, 9 }
  0x3b   : > { %806 = vmatprep.mubr.bf16.mxu1 %v12086_v3  ;;  %v1742_v55 = vrot.slane %v1616_v41, 5  ;;  %v357_v57 = vsel %vm9815_vm7, %v352_v37, %v356_v8  ;;  %v367_v58 = vsel %vm9815_vm7, %v362_v38, %v366_v39  ;;  %v1741_v59 = vrot.slane %v1739_v42, 4  ;;  %v188_v8 = vld [vmem:[%s9775_s23 + $0x60] sm:$0xf] }
  0x3c   : > { %7738 = vmatmul.mubr.msk.bf16.gmra.mrb[16].mxu0 %vm675_vm1, %v9911_v11  ;;  %v388_v60 = vshll.u32 %v211_v43, 16  ;;  %v375_v61 = vor.u32 %v374_v46, %v371_v44  ;;  %v385_v62 = vor.u32 %v384_v49, %v9935_v47  ;;  %v393_v0 = vshrl.u32 %v186_v50, 16  ;;  %v1620_v43 = vld [vmem:[%s9775_s23 + $0x60] sm:$0xe]  ;;  %v1622_v44 = vld [vmem:[%s9775_s23 + $0x68] sm:$0x1] }
  0x3d   : > { %2013 = vmatprep.mubr.bf16.mxu0 %v12086_v3  ;;  %v396_v1 = vshll.u32 %v186_v50, 16  ;;  %v402_v2 = vshll.u32 %v187_v56, 16  ;;  %v406_v4 = vshrl.u32 %v187_v56, 16  ;;  %v1740_v5 = vsel %vm9786_vm6, %v7706_v54, %v1739_v42 }
  0x3e   : > { %v9956_v9 = vcombine.low %v357_v57, %v367_v58  ;;  %v1743_v12 = vsel %vm9786_vm6, %v1741_v59, %v1742_v55  ;;  %v390_v13 = vrot.slane %v388_v60, 5  ;;  %v1746_v18 = vrot.slane %v1618_v63, 5  ;;  %v213_v55 = vld [vmem:[%s9775_s23 + $0x68] sm:$0x1] }
  0x3f   : > { %v376_v22 = vrot.slane %v375_v61, 4  ;;  %v386_v23 = vrot.slane %v385_v62, 4  ;;  %v395_v25 = vrot.slane %v393_v0, 4  ;;  %v398_v26 = vrot.slane %v396_v1, 5  ;;  %v1624_v61 = vld [vmem:[%s9775_s23 + $0x70] sm:$0xf] }
  0x40   : > { %v9964_v28 = vrot.slane %v402_v2, 5  ;;  %v408_v29 = vrot.slane %v406_v4, 4  ;;  %v417_v31 = vshrl.u32 %v188_v8, 16  ;;  %v420_v32 = vshll.u32 %v188_v8, 16  ;;  %v190_v62 = vld [vmem:[%s9775_s23 + $0x6c] sm:$0xf] }
  0x41   : > { %v9967_v34 = vcombine.low %v1740_v5, %v1743_v12  ;;  %v426_v35 = vshll.u32 %v189_v20, 16  ;;  %v430_v36 = vshrl.u32 %v189_v20, 16  ;;  %v7707_v37 = vrot.slane %v1617_v7, 9  ;;  %v191_v4 = vld [vmem:[%s9775_s23 + $0x70] sm:$0xf] }
  0x42   : > { %7623 = vmatmul.mubr.msk.bf16.gmra.mrb[16].mxu1 %vm675_vm1, %v9925_v33  ;;  %v1748_v38 = vrot.slane %v1746_v18, 4  ;;  %v1749_v39 = vrot.slane %v1619_v15, 5  ;;  %v399_v41 = vor.u32 %v398_v26, %v395_v25  ;;  %v412_v42 = vshll.u32 %v212_v24, 16  ;;  %v1623_v20 = vld [vmem:[%s9775_s23 + $0x6c] sm:$0xe] }
  0x43   : > { %816 = vmatprep.mubr.bf16.mxu1 %v12086_v3  ;;  %v381_v46 = vsel %vm9815_vm7, %v376_v22, %v9935_v47  ;;  %v391_v49 = vsel %vm9815_vm7, %v386_v23, %v390_v13  ;;  %v409_v50 = vor.u32 %v408_v29, %v9964_v28  ;;  %v1753_v54 = vrot.slane %v1621_v30, 5  ;;  %v1625_v23 = vld [vmem:[%s9775_s23 + $0x74] sm:$0x1] }
  0x44   : > { %7739 = vmatmul.mubr.msk.bf16.gmra.mrb[20].mxu0 %vm675_vm1, %v9938_v52  ;;  %v419_v56 = vrot.slane %v417_v31, 4  ;;  %v422_v57 = vrot.slane %v420_v32, 5  ;;  %v9983_v58 = vrot.slane %v426_v35, 5  ;;  %v432_v59 = vrot.slane %v430_v36, 4 }
  0x45   : > { %2023 = vmatprep.mubr.bf16.mxu0 %v12086_v3  ;;  %v1747_v47 = vsel %vm9786_vm6, %v7707_v37, %v1746_v18  ;;  %v1750_v60 = vsel %vm9786_vm6, %v1748_v38, %v1749_v39  ;;  %v9992_v63 = vcombine.low %v381_v46, %v391_v49  ;;  %v400_v0 = vrot.slane %v399_v41, 4  ;;  %v10015_v38 = vld.sshfl [vmem:[%s12079_s1 + $0x18] sm:$0x3f pattern:$0x76325410] }
  0x46   : > { %v414_v1 = vrot.slane %v412_v42, 5  ;;  %v7708_v2 = vrot.slane %v1620_v43, 9  ;;  %v410_v5 = vrot.slane %v409_v50, 4  ;;  %v1755_v7 = vrot.slane %v1753_v54, 4  ;;  %v214_v43 = vld [vmem:[%s9775_s23 + $0x74] sm:$0x1] }
  0x47   : > { %v1756_v8 = vrot.slane %v1622_v44, 5  ;;  %v436_v12 = vshll.u32 %v213_v55, 16  ;;  %v9995_v13 = vcombine.low %v1747_v47, %v1750_v60  ;;  %v423_v15 = vor.u32 %v422_v57, %v419_v56  ;;  %v1627_v55 = vld [vmem:[%s9775_s23 + $0x7c] sm:$0xf]  ;;  %v192_v57 = vld [vmem:[%s9775_s23 + $0x78] sm:$0xf] }
  0x48   : > { %v433_v18 = vor.u32 %v432_v59, %v9983_v58  ;;  %v1760_v22 = vrot.slane %v1624_v61, 5  ;;  %v441_v24 = vshrl.u32 %v190_v62, 16  ;;  %v444_v25 = vshll.u32 %v190_v62, 16  ;;  %v193_v59 = vld [vmem:[%s9775_s23 + $0x7c] sm:$0xf] }
  0x49   : > { %v450_v26 = vshll.u32 %v191_v4, 16  ;;  %v454_v29 = vshrl.u32 %v191_v4, 16  ;;  %v405_v30 = vsel %vm9815_vm7, %v400_v0, %v9964_v28  ;;  %v1754_v31 = vsel %vm9786_vm6, %v7708_v2, %v1753_v54  ;;  %v1626_v0 = vld [vmem:[%s9775_s23 + $0x78] sm:$0xe] }
  0x4a   : > { %7624 = vmatmul.mubr.msk.bf16.gmra.mrb[20].mxu1 %vm675_vm1, %v9956_v9  ;;  %v415_v32 = vsel %vm9815_vm7, %v410_v5, %v414_v1  ;;  %v1757_v35 = vsel %vm9786_vm6, %v1755_v7, %v1756_v8  ;;  %v438_v36 = vrot.slane %v436_v12, 5  ;;  %v7709_v37 = vrot.slane %v1623_v20, 9  ;;  %v1628_v5 = vld [vmem:[%s9775_s23 + $0x80] sm:$0x1]  ;;  %v194_v20 = vld [vmem:[%s9775_s23 + $0x84] sm:$0xf] }
  0x4b   : > { %826 = vmatprep.mubr.bf16.mxu1 %v12086_v3  ;;  %v424_v28 = vrot.slane %v423_v15, 4  ;;  %v434_v39 = vrot.slane %v433_v18, 4  ;;  %v1762_v41 = vrot.slane %v1760_v22, 4  ;;  %v1763_v42 = vrot.slane %v1625_v23, 5 }
  0x4c   : > { %7740 = vmatmul.mubr.msk.bf16.gmra.mrb[24].mxu0 %vm675_vm1, %v9967_v34  ;;  %v443_v44 = vrot.slane %v441_v24, 4  ;;  %v446_v46 = vrot.slane %v444_v25, 5  ;;  %v10021_v49 = vrot.slane %v450_v26, 5  ;;  %v456_v50 = vrot.slane %v454_v29, 4  ;;  %v215_v26 = vld [vmem:[%s9775_s23 + $0x80] sm:$0x1] }
  0x4d   : > { %2033 = vmatprep.mubr.bf16.mxu0 %v12086_v3  ;;  %v10023_v54 = vcombine.low %v405_v30, %v415_v32  ;;  %v10026_v56 = vcombine.low %v1754_v31, %v1757_v35  ;;  %v429_v47 = vsel %vm9815_vm7, %v424_v28, %v9983_v58  ;;  %v1761_v60 = vsel %vm9786_vm6, %v7709_v37, %v1760_v22  ;;  %v195_v29 = vld [vmem:[%s9775_s23 + $0x88] sm:$0xf] }
  0x4e   : > { %v1764_v61 = vsel %vm9786_vm6, %v1762_v41, %v1763_v42  ;;  %v460_v62 = vshll.u32 %v214_v43, 16  ;;  %v439_v1 = vsel %vm9815_vm7, %v434_v39, %v438_v36  ;;  %v447_v2 = vor.u32 %v446_v46, %v443_v44 }
  0x4f   : > { %v457_v4 = vor.u32 %v456_v50, %v10021_v49  ;;  %v1767_v7 = vrot.slane %v1627_v55, 5  ;;  %v465_v58 = vshrl.u32 %v192_v57, 16  ;;  %v468_v8 = vshll.u32 %v192_v57, 16  ;;  %v1630_v57 = vld [vmem:[%s9775_s23 + $0x88] sm:$0xf] }
  0x50   : > { %v474_v12 = vshll.u32 %v193_v59, 16  ;;  %v478_v15 = vshrl.u32 %v193_v59, 16  ;;  %v3518_v18 = vcombine.high %v10015_v38, %v10015_v38  ;;  %v10050_v22 = vcombine.low %v429_v47, %v439_v1 }
  0x51   : > { %v10053_v23 = vcombine.low %v1761_v60, %v1764_v61  ;;  %v462_v24 = vrot.slane %v460_v62, 5  ;;  %v7710_v25 = vrot.slane %v1626_v0, 9  ;;  %v448_v30 = vrot.slane %v447_v2, 4  ;;  %v1629_v62 = vld [vmem:[%s9775_s23 + $0x84] sm:$0xe] }
  0x52   : > { %7625 = vmatmul.mubr.msk.bf16.gmra.mrb[24].mxu1 %vm675_vm1, %v9992_v63  ;;  %7913 = vmatprep.subr.msk.bf16.mxu0 %vm724_vm0, %v3518_v18  ;;  %v458_v31 = vrot.slane %v457_v4, 4  ;;  %v1769_v32 = vrot.slane %v1767_v7, 4  ;;  %v1770_v35 = vrot.slane %v1628_v5, 5  ;;  %v467_v36 = vrot.slane %v465_v58, 4  ;;  %v216_v0 = vld [vmem:[%s9775_s23 + $0x8c] sm:$0x1] }
  0x53   : > { %836 = vmatprep.mubr.bf16.mxu1 %v12086_v3  ;;  %v470_v37 = vrot.slane %v468_v8, 5  ;;  %v476_v28 = vrot.slane %v474_v12, 5  ;;  %v480_v39 = vrot.slane %v478_v15, 4  ;;  %v489_v41 = vshrl.u32 %v194_v20, 16  ;;  %v196_v12 = vld [vmem:[%s9775_s23 + $0x90] sm:$0xf] }
  0x54   : > { %7741 = vmatmul.mubr.msk.bf16.gmra.mrb[28].mxu0 %vm675_vm1, %v9995_v13  ;;  %v492_v42 = vshll.u32 %v194_v20, 16  ;;  %v498_v43 = vshll.u32 %v195_v29, 16  ;;  %v502_v44 = vshrl.u32 %v195_v29, 16  ;;  %v453_v46 = vsel %vm9815_vm7, %v448_v30, %v10021_v49  ;;  %v1631_v49 = vld [vmem:[%s9775_s23 + $0x8c] sm:$0x1] }
  0x55   : > { %2043 = vmatprep.mubr.bf16.mxu0 %v12086_v3  ;;  %v1768_v50 = vsel %vm9786_vm6, %v7710_v25, %v1767_v7  ;;  %v484_v55 = vshll.u32 %v215_v26, 16  ;;  %v463_v59 = vsel %vm9815_vm7, %v458_v31, %v462_v24  ;;  %v1771_v47 = vsel %vm9786_vm6, %v1769_v32, %v1770_v35  ;;  %v10086_v30 = vld [vmem:[%s9775_s23 + $0x94] sm:$0xf]  ;;  %v10091_v35 = vld [vmem:[%s12079_s1] sm:$0x3f] }
  0x56   : > { %v471_v60 = vor.u32 %v470_v37, %v467_v36  ;;  %v481_v61 = vor.u32 %v480_v39, %v476_v28  ;;  %v491_v1 = vrot.slane %v489_v41, 4  ;;  %v494_v2 = vrot.slane %v492_v42, 5 }
  0x57   : > { %v10076_v4 = vrot.slane %v498_v43, 5  ;;  %v504_v5 = vrot.slane %v502_v44, 4  ;;  %v1774_v7 = vrot.slane %v1630_v57, 5  ;;  %v10079_v58 = vcombine.low %v453_v46, %v463_v59  ;;  %v10106_v57 = vld [vmem:[%s9775_s23 + $0x9c] sm:$0xf] }
  0x58   : > { %v486_v8 = vrot.slane %v484_v55, 5  ;;  %v10082_v15 = vcombine.low %v1768_v50, %v1771_v47  ;;  %v472_v18 = vrot.slane %v471_v60, 4  ;;  %v482_v20 = vrot.slane %v481_v61, 4  ;;  %v217_v55 = vld [vmem:[%s9775_s23 + $0x98] sm:$0x1] }
  0x59   : > { %v7711_v24 = vrot.slane %v1629_v62, 9  ;;  %v495_v25 = vor.u32 %v494_v2, %v491_v1  ;;  %v505_v26 = vor.u32 %v504_v5, %v10076_v4  ;;  %v508_v29 = vshll.u32 %v216_v0, 16  ;;  %v10118_v60 = vld [vmem:[%s9775_s23 + $0xa0] sm:$0xf] }
  0x5a   : > { %7626 = vmatmul.mubr.msk.bf16.gmra.mrb[28].mxu1 %vm675_vm1, %v10023_v54  ;;  %v1776_v31 = vrot.slane %v1774_v7, 4  ;;  %v1777_v32 = vrot.slane %v1631_v49, 5  ;;  %v513_v36 = vshrl.u32 %v196_v12, 16  ;;  %v516_v37 = vshll.u32 %v196_v12, 16 }
  0x5b   : > { %846 = vmatprep.mubr.bf16.mxu1 %v12086_v3  ;;  %v477_v39 = vsel %vm9815_vm7, %v472_v18, %v476_v28  ;;  %v487_v41 = vsel %vm9815_vm7, %v482_v20, %v486_v8  ;;  %v522_v42 = vshll.u32 %v10086_v30, 16  ;;  %v526_v43 = vshrl.u32 %v10086_v30, 16 }
  0x5c   : > { %7742 = vmatmul.mubr.msk.bf16.gmra.mrb[32].mxu0 %vm675_vm1, %v10026_v56  ;;  %v496_v44 = vrot.slane %v495_v25, 4  ;;  %v506_v46 = vrot.slane %v505_v26, 4  ;;  %v510_v50 = vrot.slane %v508_v29, 5  ;;  %v10110_v59 = vrot.slane %v10091_v35, %v9768_v10 }
  0x5d   : > { %2053 = vmatprep.mubr.bf16.mxu0 %v12086_v3  ;;  %v1775_v28 = vsel %vm9786_vm6, %v7711_v24, %v1774_v7  ;;  %v1778_v47 = vsel %vm9786_vm6, %v1776_v31, %v1777_v32  ;;  %v10120_v61 = vcombine.low %v477_v39, %v487_v41  ;;  %v515_v62 = vrot.slane %v513_v36, 4  ;;  %v218_v31 = vld [vmem:[%s9775_s23 + $0xa4] sm:$0x1]  ;;  %v9611_v41 = vld [vmem:[%s9775_s23 + $0xc] sm:$0xff]  }
  0x5e   : > { %v518_v0 = vrot.slane %v516_v37, 5  ;;  %v1184_v49 = vcombine.high %v10110_v59, %v10110_v59  ;;  %v524_v1 = vrot.slane %v522_v42, 5  ;;  %v528_v2 = vrot.slane %v526_v43, 4  ;;  %v10144_v37 = vld [vmem:[%s9775_s23 + $0xa8] sm:$0xf] }
  0x5f   : > { %v10124_v5 = vcombine.low %v1775_v28, %v1778_v47  ;;  %v532_v7 = vshll.u32 %v217_v55, 16  ;;  %v537_v8 = vshrl.u32 %v10106_v57, 16  ;;  %v540_v18 = vshll.u32 %v10106_v57, 16 }
  0x60   : > { %7667 = vmatprep.subr.msk.bf16.mxu1 %vm724_vm0, %v1184_v49  ;;  %v519_v12 = vor.u32 %v518_v0, %v515_v62  ;;  %v546_v20 = vshll.u32 %v10118_v60, 16  ;;  %v501_v24 = vsel %vm9815_vm7, %v496_v44, %v10076_v4  ;;  %v511_v25 = vsel %vm9815_vm7, %v506_v46, %v510_v50  ;;  %v10150_v44 = vld [vmem:[%s9775_s23 + $0xac] sm:$0xf] }
  0x61   : > { %v529_v26 = vor.u32 %v528_v2, %v524_v1  ;;  %v550_v29 = vshrl.u32 %v10118_v60, 16  ;;  %v534_v32 = vrot.slane %v532_v7, 5  ;;  %v539_v36 = vrot.slane %v537_v8, 4 }
  0x62   : > { %7627 = vmatmul.mubr.msk.bf16.gmra.mrb[32].mxu1 %vm675_vm1, %v10050_v22  ;;  %v10146_v39 = vcombine.low %v501_v24, %v511_v25  ;;  %v520_v4 = vrot.slane %v519_v12, 4  ;;  %v542_v42 = vrot.slane %v540_v18, 5  ;;  %v548_v43 = vrot.slane %v546_v20, 5  ;;  %v219_v24 = vld [vmem:[%s9775_s23 + $0xb0] sm:$0x1] }
  0x63   : > { %856 = vmatprep.mubr.bf16.mxu1 %v12086_v3  ;;  %v530_v46 = vrot.slane %v529_v26, 4  ;;  %v552_v50 = vrot.slane %v550_v29, 4  ;;  %v3568_v55 = vsel %vm724_vm0, %v10015_v38, 0  ;;  %v556_v28 = vshll.u32 %v218_v31, 16 }
  0x64   : > { %7743 = vmatmul.mubr.msk.bf16.gmra.mrb[36].mxu0 %vm675_vm1, %v10053_v23  ;;  %v525_v47 = vsel %vm9815_vm7, %v520_v4, %v524_v1  ;;  %v543_v62 = vor.u32 %v542_v42, %v539_v36  ;;  %v561_v0 = vshrl.u32 %v10144_v37, 16  ;;  %v564_v49 = vshll.u32 %v10144_v37, 16  ;;  %v10169_v1 = vld.sshfl [vmem:[%s12079_s1 + $0x1e] sm:$0x3f pattern:$0x76325410] }
  0x65   : > { %2063 = vmatprep.mubr.bf16.mxu0 %v12086_v3  ;;  %v535_v2 = vsel %vm9815_vm7, %v530_v46, %v534_v32  ;;  %v553_v7 = vor.u32 %v552_v50, %v548_v43  ;;  %v570_v38 = vshll.u32 %v10150_v44, 16  ;;  %v574_v8 = vshrl.u32 %v10150_v44, 16  ;;  %v10176_v36 = vld [vmem:[%s9775_s23 + $0xb4] sm:$0xf]  ;;  %v9612_v4 = vld [vmem:[%s9775_s23 + $0x18] sm:$0xff]  }
  0x66   : > { %v558_v12 = vrot.slane %v556_v28, 5  ;;  %v10172_v18 = vcombine.low %v525_v47, %v535_v2  ;;  %v544_v20 = vrot.slane %v543_v62, 4  ;;  %v563_v25 = vrot.slane %v561_v0, 4  ;;  %v10182_v42 = vld [vmem:[%s9775_s23 + $0xb8] sm:$0xf] }
  0x67   : > { %v566_v26 = vrot.slane %v564_v49, 5  ;;  %v554_v29 = vrot.slane %v553_v7, 4  ;;  %v572_v31 = vrot.slane %v570_v38, 5  ;;  %v576_v32 = vrot.slane %v574_v8, 4 }
  0x68   : > { %v580_v46 = vshll.u32 %v219_v24, 16  ;;  %v549_v50 = vsel %vm9815_vm7, %v544_v20, %v548_v43  ;;  %v585_v28 = vshrl.u32 %v10176_v36, 16  ;;  %v588_v47 = vshll.u32 %v10176_v36, 16 }
  0x69   : > { %v559_v62 = vsel %vm9815_vm7, %v554_v29, %v558_v12  ;;  %v577_v0 = vor.u32 %v576_v32, %v572_v31  ;;  %v594_v49 = vshll.u32 %v10182_v42, 16  ;;  %v598_v2 = vshrl.u32 %v10182_v42, 16  ;;  %v9613_v12 = vld [vmem:[%s9775_s23 + $0x24] sm:$0xff]   ;;  %v220_v29 = vld [vmem:[%s9775_s23 + $0xbc] sm:$0x1] }
  0x6a   : > { %7628 = vmatmul.mubr.msk.bf16.gmra.mrb[36].mxu1 %vm675_vm1, %v10079_v58  ;;  %v10198_v43 = vcombine.low %v549_v50, %v559_v62  ;;  %v582_v38 = vrot.slane %v580_v46, 5  ;;  %v587_v8 = vrot.slane %v585_v28, 4  ;;  %v590_v24 = vrot.slane %v588_v47, 5 }
  0x6b   : > { %866 = vmatprep.mubr.bf16.mxu1 %v12086_v3  ;;  %v578_v20 = vrot.slane %v577_v0, 4  ;;  %v604_v50 = vshll.u32 %v220_v29, 16  ;;  %v9614_v0 = vld [vmem:[%s9775_s23 + $0x30] sm:$0xff]  }
  0x6c   : > { %7744 = vmatmul.mubr.msk.bf16.gmra.mrb[40].mxu0 %vm675_vm1, %v10082_v15  ;;  %v9669_v29 = vld [vmem:[%s9775_s23 + $0x10] sm:$0xf] }
  0x6d   : > { %2073 = vmatprep.mubr.bf16.mxu0 %v12086_v3  ;;  %v606_v62 = vrot.slane %v604_v50, 5 }
  0x72   : > { %7629 = vmatmul.mubr.msk.bf16.gmra.mrb[40].mxu1 %vm675_vm1, %v10120_v61 }
  0x73   : > { %876 = vmatprep.mubr.bf16.mxu1 %v12086_v3 }
  0x74   : > { %7745 = vmatmul.mubr.msk.bf16.gmra.mrb[44].mxu0 %vm675_vm1, %v10124_v5 }
  0x75   : > { %2602 = vmatprep.mubr.bf16.mxu0 %v12086_v3 }
  0x7a   : > { %7630 = vmatmul.mubr.msk.bf16.gmra.mrb[44].mxu1 %vm675_vm1, %v10146_v39 }
  0x7b   : > { %886 = vmatprep.mubr.bf16.mxu1 %v12086_v3 }
  0x7c   : > { %7816 = vmatmul.mubr.msk.bf16.vlgmr.msra.gmra.mrb[0].mxu0 %vm675_vm1, %v9611_v41  ;;  %v4300_v41 = vcombine.high %v10169_v1, %v10169_v1 }
  0x7d   : > { %3577 = vmatpush1.bf16.msra.mxu0 %v3568_v55  ;;  %2612 = vmatprep.mubr.bf16.mxu0 %v12086_v3  ;;  %v567_v55 = vor.u32 %v566_v26, %v563_v25  ;;  %v596_v25 = vrot.slane %v594_v49, 5  ;;  %v600_v26 = vrot.slane %v598_v2, 4 }
  0x7e   : > { %8027 = vmatprep.subr.msk.bf16.mxu0 %vm724_vm0, %v4300_v41  ;;  %v583_v41 = vsel %vm9815_vm7, %v578_v20, %v582_v38  ;;  %v1169_v38 = vcombine.high %v10091_v35, %v10091_v35  ;;  %v9616_v20 = vld [vmem:[%s9775_s23 + $0x48] sm:$0xff]  }
  0x7f   : > { %v568_v7 = vrot.slane %v567_v55, 4  ;;  %v601_v46 = vor.u32 %v600_v26, %v596_v25  ;;  %v7848_v35 = vld [vmem:[%s9775_s23 + $0xc] sm:$0xf] }
  0x81   : > { %v573_v32 = vsel %vm9815_vm7, %v568_v7, %v572_v31  ;;  %v602_v47 = vrot.slane %v601_v46, 4  ;;  %v9615_v7 = vld [vmem:[%s9775_s23 + $0x3c] sm:$0xff]  }
  0x82   : > { %7631 = vmatmul.mubr.msk.bf16.gmra.mrb[48].mxu1 %vm675_vm1, %v10172_v18  ;;  %v7616_v55 = vcombine.low %v573_v32, %v583_v41 }
  0x83   : > { %896 = vmatprep.mubr.bf16.mxu1 %v12086_v3  ;;  %v607_v49 = vsel %vm9815_vm7, %v602_v47, %v606_v62  ;;  %v7851_v47 = vld [vmem:[%s9775_s23 + $0x18] sm:$0xf]  ;;  %v7852_v62 = vld [vmem:[%s9775_s23 + $0x1c] sm:$0xf] }
  0x84   : > { %7817 = vmatmul.mubr.msk.bf16.gmra.mrb[4].mxu0 %vm675_vm1, %v9612_v4  ;;  %v591_v4 = vor.u32 %v590_v24, %v587_v8  ;;  %v1234_v8 = vsel %vm724_vm0, %v10110_v59, 0  ;;  %v1183_v24 = vrot.slane %v1169_v38, %v9768_v10  ;;  %v7849_v59 = vld [vmem:[%s9775_s23 + $0x10] sm:$0xf]  ;;  %v3106_v38 = vshrl.u32 %v7852_v62, 16 }
  0x85   : > { %2622 = vmatprep.mubr.bf16.mxu0 %v12086_v3  ;;  %v3082_v26 = vshrl.u32 %v7849_v59, 16 }
  0x86   : > { %v592_v28 = vrot.slane %v591_v4, 4 }
  0x87   : > { %v3084_v50 = vrot.slane %v3082_v26, 4 }
  0x88   : > { %v597_v31 = vsel %vm9815_vm7, %v592_v28, %v596_v25  ;;  %v3078_v25 = vshll.u32 %v7849_v59, 16  ;;  %v9628_v28 = vld [vmem:[%s9775_s23 + $0xb4] sm:$0xff]   ;;  %v7855_v59 = vld [vmem:[%s9775_s23 + $0x28] sm:$0xf] }
  0x89   : > { %v7617_v2 = vcombine.low %v597_v31, %v607_v49  ;;  %v3093_v49 = vshrl.u32 %v7851_v47, 16 }
  0x8a   : > { %7632 = vmatmul.mubr.msk.bf16.gmra.mrb[52].mxu1 %vm675_vm1, %v10198_v43  ;;  %v3080_v46 = vrot.slane %v3078_v25, 5 }
  0x8b   : > { %906 = vmatprep.mubr.bf16.mxu1 %v12086_v3 }
  0x8c   : > { %7818 = vmatmul.mubr.msk.bf16.gmra.mrb[8].mxu0 %vm675_vm1, %v9613_v12  ;;  %v9668_v12 = vld [vmem:[%s9775_s23 + $0xc] sm:$0xf] }
  0x8d   : > { %2632 = vmatprep.mubr.bf16.mxu0 %v12086_v3  ;;  %v10301_v32 = vcombine.low %v9668_v12, %v9669_v29  ;;  %v3126_v29 = vshll.u32 %v7855_v59, 16 }
  0x92   : > { %7633 = vmatmul.mubr.msk.bf16.gmra.mrb[56].mxu1 %vm675_vm1, %v7616_v55 }
  0x93   : > { %916 = vmatprep.mubr.bf16.mxu1 %v12086_v3 }
  0x94   : > { %7819 = vmatmul.mubr.msk.bf16.gmra.mrb[12].mxu0 %vm675_vm1, %v9614_v0  ;;  %v3085_v0 = vor.u32 %v3084_v50, %v3080_v46 }
  0x95   : > { %2642 = vmatprep.mubr.bf16.mxu0 %v12086_v3 }
  0x9a   : > { %7634 = vmatmul.mubr.msk.bf16.gmra.mrb[60].mxu1 %vm675_vm1, %v7617_v2 }
  0x9b   : > { %8515 = vmatprep.mubr.msk.bf16.mxu1 %vm675_vm1, %v9838_v21  ;;  %v9617_v21 = vld [vmem:[%s9775_s23 + $0x54] sm:$0xff]  }
  0x9c   : > { %7820 = vmatmul.mubr.msk.bf16.gmra.mrb[16].mxu0 %vm675_vm1, %v9615_v7  ;;  %v3102_v7 = vshll.u32 %v7852_v62, 16 }
  0x9d   : > { %2652 = vmatprep.mubr.bf16.mxu0 %v12086_v3 }
  0xa2   : > { %8516 = vmatmul.mubr.msk.bf16.vlgmr.msra.gmra.mrb[64].mxu1 %vm675_vm1, %v9857_v45  ;;  %v9618_v45 = vld [vmem:[%s9775_s23 + $0x60] sm:$0xff]  }
  0xa3   : > { %1243 = vmatpush1.bf16.msra.mxu1 %v1234_v8  ;;  %8519 = vmatprep.mubr.msk.bf16.mxu1 %vm675_vm1, %v9883_v27  ;;  %v9619_v27 = vld [vmem:[%s9775_s23 + $0x6c] sm:$0xff]   ;;  %v9670_v8 = vld [vmem:[%s9775_s23 + $0x18] sm:$0xf] }
  0xa4   : > { %7821 = vmatmul.mubr.msk.bf16.gmra.mrb[20].mxu0 %vm675_vm1, %v9616_v20  ;;  %9590 = vmatprep.subr.msk.bf16.mxu1 %vm724_vm0, %v1183_v24  ;;  %v9671_v20 = vld [vmem:[%s9775_s23 + $0x1c] sm:$0xf] }
  0xa5   : > { %2662 = vmatprep.mubr.bf16.mxu0 %v12086_v3 }
  0xaa   : > { %8520 = vmatmul.mubr.msk.bf16.gmra.mrb[68].mxu1 %vm675_vm1, %v9908_v6  ;;  %v9620_v6 = vld [vmem:[%s9775_s23 + $0x78] sm:$0xff]  }
  0xab   : > { %8523 = vmatprep.mubr.msk.bf16.mxu1 %vm675_vm1, %v9925_v33  ;;  %v9621_v33 = vld [vmem:[%s9775_s23 + $0x84] sm:$0xff]  }
  0xac   : > { %7822 = vmatmul.mubr.msk.bf16.gmra.mrb[24].mxu0 %vm675_vm1, %v9617_v21 }
  0xad   : > { %2672 = vmatprep.mubr.bf16.mxu0 %v12086_v3 }
  0xb2   : > { %8524 = vmatmul.mubr.msk.bf16.gmra.mrb[72].mxu1 %vm675_vm1, %v9956_v9  ;;  %v9622_v9 = vld [vmem:[%s9775_s23 + $0x90] sm:$0xff]  }
  0xb3   : > { %8527 = vmatprep.mubr.msk.bf16.mxu1 %vm675_vm1, %v9992_v63  ;;  %v9623_v63 = vld [vmem:[%s9775_s23 + $0x9c] sm:$0xff]  }
  0xb4   : > { %7823 = vmatmul.mubr.msk.bf16.gmra.mrb[28].mxu0 %vm675_vm1, %v9618_v45  ;;  %v3086_v45 = vrot.slane %v3085_v0, 4 }
  0xb5   : > { %2682 = vmatprep.mubr.bf16.mxu0 %v12086_v3 }
  0xba   : > { %8528 = vmatmul.mubr.msk.bf16.gmra.mrb[76].mxu1 %vm675_vm1, %v10023_v54  ;;  %v9666_v54 = vld [vmem:[%s9775_s23] sm:$0xf] }
  0xbb   : > { %8531 = vmatprep.mubr.msk.bf16.mxu1 %vm675_vm1, %v10050_v22  ;;  %v9667_v22 = vld [vmem:[%s9775_s23 + $0x4] sm:$0xf] }
  0xbc   : > { %7824 = vmatmul.mubr.msk.bf16.gmra.mrb[32].mxu0 %vm675_vm1, %v9619_v27 }
  0xbd   : > { %2692 = vmatprep.mubr.bf16.mxu0 %v12086_v3 }
  0xc2   : > { %8532 = vmatmul.mubr.msk.bf16.gmra.mrb[80].mxu1 %vm675_vm1, %v10079_v58  ;;  %v10287_v58 = vcombine.low %v9666_v54, %v9667_v22  ;;  %v9630_v54 = vld [vmem:[%s9775_s23 + $0xc0] sm:$0xff]  }
  0xc3   : > { %8535 = vmatprep.mubr.msk.bf16.mxu1 %vm675_vm1, %v10120_v61  ;;  %v1240_v61 = vsel %vm724_vm0, %v1183_v24, 0  ;;  %v10315_v24 = vcombine.low %v9670_v8, %v9671_v20  ;;  %v7853_v22 = vld [vmem:[%s9775_s23 + $0x20] sm:$0x1]  ;;  %v7858_v8 = vld [vmem:[%s9775_s23 + $0x34] sm:$0xf] }
  0xc4   : > { %7825 = vmatmul.mubr.msk.bf16.gmra.mrb[36].mxu0 %vm675_vm1, %v9620_v6  ;;  %v3095_v6 = vrot.slane %v3093_v49, 4  ;;  %v3112_v25 = vshll.u32 %v7853_v22, 16  ;;  %v9674_v22 = vld [vmem:[%s9775_s23 + $0x30] sm:$0xf] }
  0xc5   : > { %2702 = vmatprep.mubr.bf16.mxu0 %v12086_v3 }
  0xc6   : > { %v3114_v62 = vrot.slane %v3112_v25, 5 }
  0xca   : > { %8536 = vmatmul.mubr.msk.bf16.gmra.mrb[84].mxu1 %vm675_vm1, %v10146_v39  ;;  %v9626_v39 = vld [vmem:[%s9775_s23 + $0xa8] sm:$0xff]  }
  0xcb   : > { %8539 = vmatprep.mubr.msk.bf16.mxu1 %vm675_vm1, %v10172_v18  ;;  %v3069_v18 = vshrl.u32 %v7848_v35, 16 }
  0xcc   : > { %7826 = vmatmul.mubr.msk.bf16.gmra.mrb[40].mxu0 %vm675_vm1, %v9621_v33 }
  0xcd   : > { %2712 = vmatprep.mubr.bf16.mxu0 %v12086_v3  ;;  %v3071_v41 = vrot.slane %v3069_v18, 4 }
  0xd2   : > { %8540 = vmatmul.mubr.msk.bf16.gmra.mrb[88].mxu1 %vm675_vm1, %v10198_v43  ;;  %v3072_v43 = vshll.u32 %v7848_v35, 16  ;;  %v7854_v35 = vld [vmem:[%s9775_s23 + $0x24] sm:$0xf] }
  0xd3   : > { %8543 = vmatprep.mubr.msk.bf16.mxu1 %vm675_vm1, %v7616_v55  ;;  %v7850_v55 = vld [vmem:[%s9775_s23 + $0x14] sm:$0x1]  ;;  %v3117_v26 = vshrl.u32 %v7854_v35, 16  ;;  %v3120_v12 = vshll.u32 %v7854_v35, 16 }
  0xd4   : > { %7827 = vmatmul.mubr.msk.bf16.gmra.mrb[44].mxu0 %vm675_vm1, %v9622_v9  ;;  %v3074_v4 = vrot.slane %v3072_v43, 5  ;;  %v3088_v31 = vshll.u32 %v7850_v55, 16  ;;  %v3104_v9 = vrot.slane %v3102_v7, 5  ;;  %v7857_v7 = vld [vmem:[%s9775_s23 + $0x30] sm:$0xf] }
  0xd5   : > { %2722 = vmatprep.mubr.bf16.mxu0 %v12086_v3  ;;  %v3122_v0 = vrot.slane %v3120_v12, 5  ;;  %v9675_v35 = vld [vmem:[%s9775_s23 + $0x34] sm:$0xf] }
  0xd6   : > { %v3090_v27 = vrot.slane %v3088_v31, 5  ;;  %v3128_v31 = vrot.slane %v3126_v29, 5 }
  0xda   : > { %8544 = vmatmul.mubr.msk.bf16.gmra.mrb[92].mxu1 %vm675_vm1, %v7617_v2  ;;  %v3096_v2 = vshll.u32 %v7851_v47, 16 }
  0xdb   : > { %1274 = vmatprep.mubr.bf16.mxu1 %v12086_v3 }
  0xdc   : > { %7828 = vmatmul.mubr.msk.bf16.gmra.mrb[48].mxu0 %vm675_vm1, %v9623_v63  ;;  %v3098_v33 = vrot.slane %v3096_v2, 5  ;;  %v3108_v63 = vrot.slane %v3106_v38, 4  ;;  %v7856_v2 = vld [vmem:[%s9775_s23 + $0x2c] sm:$0x1]  ;;  %v4350_v38 = vsel %vm724_vm0, %v10169_v1, 0  ;;  %v3141_v1 = vshrl.u32 %v7857_v7, 16 }
  0xdd   : > { %2732 = vmatprep.mubr.bf16.mxu0 %v12086_v3 }
  0xde   : > { %v3099_v18 = vor.u32 %v3098_v33, %v3095_v6  ;;  %v3109_v43 = vor.u32 %v3108_v63, %v3104_v9  ;;  %v3136_v6 = vshll.u32 %v7856_v2, 16  ;;  %v10353_v33 = vld.sshfl [vmem:[%s12079_s1 + $0x24] sm:$0x3f pattern:$0x76325410]  ;;  %v3150_v63 = vshll.u32 %v7858_v8, 16 }
  0xdf   : > { %v3143_v29 = vrot.slane %v3141_v1, 4  ;;  %v9677_v2 = vld [vmem:[%s9775_s23 + $0x40] sm:$0xf] }
  0xe0   : > { %v3110_v47 = vrot.slane %v3109_v43, 4  ;;  %v3138_v12 = vrot.slane %v3136_v6, 5 }
  0xe2   : > { %7668 = vmatmul.mubr.msk.bf16.vlgmr.msra.gmra.mrb[0].mxu1 %vm675_vm1, %v10287_v58 }
  0xe3   : > { %8548 = vmatpush3.bf16.msra.mxu1 %v1240_v61  ;;  %1284 = vmatprep.mubr.bf16.mxu1 %v12086_v3 }
  0xe4   : > { %7829 = vmatmul.mubr.msk.bf16.gmra.mrb[52].mxu0 %vm675_vm1, %v9626_v39  ;;  %8819 = vmatprep.subr.msk.bf16.mxu1 %vm724_vm0, %v9781_v16  ;;  %v3075_v16 = vor.u32 %v3074_v4, %v3071_v41  ;;  %v3091_v39 = vsel %vm9815_vm7, %v3086_v45, %v3090_v27  ;;  %v3130_v41 = vshrl.u32 %v7855_v59, 16  ;;  %v9672_v4 = vld [vmem:[%s9775_s23 + $0x24] sm:$0xf]  ;;  %v10358_v59 = vcombine.low %v9674_v22, %v9675_v35  ;;  %v7863_v22 = vld [vmem:[%s9775_s23 + $0x48] sm:$0xf] }
  0xe5   : > { %2742 = vmatprep.mubr.bf16.mxu0 %v12086_v3  ;;  %v7864_v35 = vld [vmem:[%s9775_s23 + $0x4c] sm:$0xf] }
  0xe6   : > { %v3076_v21 = vrot.slane %v3075_v16, 4  ;;  %v3119_v16 = vrot.slane %v3117_v26, 4  ;;  %v3132_v49 = vrot.slane %v3130_v41, 4 }
  0xe8   : > { %v3081_v61 = vsel %vm9815_vm7, %v3076_v21, %v3080_v46  ;;  %v9673_v46 = vld [vmem:[%s9775_s23 + $0x28] sm:$0xf]  ;;  %v3115_v21 = vsel %vm9815_vm7, %v3110_v47, %v3114_v62  ;;  %v3123_v45 = vor.u32 %v3122_v0, %v3119_v16  ;;  %v3133_v27 = vor.u32 %v3132_v49, %v3128_v31  ;;  %v9676_v49 = vld [vmem:[%s9775_s23 + $0x3c] sm:$0xf] }
  0xe9   : > { %v10332_v50 = vcombine.low %v9672_v4, %v9673_v46  ;;  %v10334_v55 = vcombine.low %v3081_v61, %v3091_v39  ;;  %v7860_v61 = vld [vmem:[%s9775_s23 + $0x3c] sm:$0xf]  ;;  %v7861_v39 = vld [vmem:[%s9775_s23 + $0x40] sm:$0xf]  ;;  %v3152_v4 = vrot.slane %v3150_v63, 5 }
  0xea   : > { %7669 = vmatmul.mubr.msk.bf16.gmra.mrb[4].mxu1 %vm675_vm1, %v10301_v32  ;;  %v3124_v25 = vrot.slane %v3123_v45, 4  ;;  %v3134_v26 = vrot.slane %v3133_v27, 4  ;;  %v3165_v47 = vshrl.u32 %v7860_v61, 16  ;;  %v3168_v62 = vshll.u32 %v7860_v61, 16  ;;  %v7862_v63 = vld [vmem:[%s9775_s23 + $0x44] sm:$0x1] }
  0xeb   : > { %1294 = vmatprep.mubr.bf16.mxu1 %v12086_v3  ;;  %12099 = vst [vmem:[#allocation2_spill] sm:$0xff] %v10334_v55  ;;  %v3174_v16 = vshll.u32 %v7861_v39, 16  ;;  %v3178_v0 = vshrl.u32 %v7861_v39, 16 }
  0xec   : > { %7830 = vmatmul.mubr.msk.bf16.gmra.mrb[56].mxu0 %vm675_vm1, %v9628_v28  ;;  %v3100_v28 = vrot.slane %v3099_v18, 4  ;;  %v4939_v18 = vcombine.high %v10353_v33, %v10353_v33  ;;  %v3167_v27 = vrot.slane %v3165_v47, 4  ;;  %v3170_v6 = vrot.slane %v3168_v62, 5  ;;  %v9678_v62 = vld [vmem:[%s9775_s23 + $0x48] sm:$0xf] }
  0xed   : > { %2752 = vmatprep.mubr.bf16.mxu0 %v12086_v3  ;;  %v3176_v1 = vrot.slane %v3174_v16, 5  ;;  %v9679_v16 = vld [vmem:[%s9775_s23 + $0x4c] sm:$0xf] }
  0xee   : > { %v3105_v20 = vsel %vm9815_vm7, %v3100_v28, %v3104_v9  ;;  %v3144_v9 = vshll.u32 %v7857_v7, 16  ;;  %v7859_v28 = vld [vmem:[%s9775_s23 + $0x38] sm:$0x1]  ;;  %v10375_v7 = vcombine.low %v9676_v49, %v9677_v2 }
  0xef   : > { %v10364_v43 = vcombine.low %v3105_v20, %v3115_v21  ;;  %v3160_v45 = vshll.u32 %v7859_v28, 16 }
  0xf0   : > { %v3146_v41 = vrot.slane %v3144_v9, 5  ;;  %v3180_v9 = vrot.slane %v3178_v0, 4  ;;  %v10399_v0 = vcombine.low %v9678_v62, %v9679_v16 }
  0xf1   : > { %12100 = vst [vmem:[#allocation3_spill] sm:$0xff] %v10364_v43  ;;  %v3162_v39 = vrot.slane %v3160_v45, 5 }
  0xf2   : > { %7670 = vmatmul.mubr.msk.bf16.gmra.mrb[8].mxu1 %vm675_vm1, %v10315_v24  ;;  %v3147_v20 = vor.u32 %v3146_v41, %v3143_v29  ;;  %v3192_v29 = vshll.u32 %v7863_v22, 16  ;;  %v3198_v41 = vshll.u32 %v7864_v35, 16 }
  0xf3   : > { %1304 = vmatprep.mubr.bf16.mxu1 %v12086_v3 }
  0xf4   : > { %7831 = vmatmul.mubr.msk.bf16.gmra.mrb[60].mxu0 %vm675_vm1, %v9630_v54  ;;  %v3154_v54 = vshrl.u32 %v7858_v8, 16  ;;  %v3139_v8 = vsel %vm9815_vm7, %v3134_v26, %v3138_v12  ;;  %v3148_v61 = vrot.slane %v3147_v20, 4  ;;  %v3184_v26 = vshll.u32 %v7862_v63, 16 }
  0xf5   : > { %3608 = vmatprep.mubr.bf16.mxu0 %v12086_v3  ;;  %v3189_v12 = vshrl.u32 %v7863_v22, 16  ;;  %v3194_v20 = vrot.slane %v3192_v29, 5 }
  0xf6   : > { %v3156_v46 = vrot.slane %v3154_v54, 4  ;;  %v3153_v28 = vsel %vm9815_vm7, %v3148_v61, %v3152_v4 }
  0xf8   : > { %v3157_v21 = vor.u32 %v3156_v46, %v3152_v4  ;;  %v3202_v46 = vshrl.u32 %v7864_v35, 16  ;;  %v7867_v4 = vld [vmem:[%s9775_s23 + $0x58] sm:$0xf] }
  0xfa   : > { %7671 = vmatmul.mubr.msk.bf16.gmra.mrb[12].mxu1 %vm675_vm1, %v10332_v50  ;;  %v3204_v45 = vrot.slane %v3202_v46, 4 }
  0xfb   : > { %1314 = vmatprep.mubr.bf16.mxu1 %v12086_v3 }
  0xfc   : > { %7914 = vmatmul.mubr.msk.bf16.vlgmr.msra.gmra.mrb[0].mxu0 %vm675_vm1, %v10334_v55 }
  0xfd   : > { %4359 = vmatpush1.bf16.msra.mxu0 %v4350_v38  ;;  %3618 = vmatprep.mubr.bf16.mxu0 %v12086_v3  ;;  %v3129_v38 = vsel %vm9815_vm7, %v3124_v25, %v3128_v31  ;;  %v3158_v31 = vrot.slane %v3157_v21, 4  ;;  %v3181_v25 = vor.u32 %v3180_v9, %v3176_v1  ;;  %v3200_v21 = vrot.slane %v3198_v41, 5  ;;  %v7866_v9 = vld [vmem:[%s9775_s23 + $0x54] sm:$0xf] }
  0xfe   : > { %8109 = vmatprep.subr.msk.bf16.mxu0 %vm724_vm0, %v4939_v18  ;;  %v10383_v54 = vcombine.low %v3129_v38, %v3139_v8  ;;  %v3171_v18 = vor.u32 %v3170_v6, %v3167_v27  ;;  %v3186_v38 = vrot.slane %v3184_v26, 5  ;;  %v3191_v8 = vrot.slane %v3189_v12, 4  ;;  %v7865_v6 = vld [vmem:[%s9775_s23 + $0x50] sm:$0x1]  ;;  %v9681_v12 = vld [vmem:[%s9775_s23 + $0x58] sm:$0xf] }
  0xff   : > { %v3163_v47 = vsel %vm9815_vm7, %v3158_v31, %v3162_v39  ;;  %v3182_v2 = vrot.slane %v3181_v25, 4  ;;  %v3205_v61 = vor.u32 %v3204_v45, %v3200_v21  ;;  %v3208_v31 = vshll.u32 %v7865_v6, 16 }
 0x100   : > { %12101 = vst [vmem:[#allocation4_spill] sm:$0xff] %v10383_v54  ;;  %v3172_v49 = vrot.slane %v3171_v18, 4  ;;  %v10401_v27 = vcombine.low %v3153_v28, %v3163_v47  ;;  %v3195_v35 = vor.u32 %v3194_v20, %v3191_v8  ;;  %v3213_v39 = vshrl.u32 %v7866_v9, 16  ;;  %v7869_v8 = vld [vmem:[%s9775_s23 + $0x60] sm:$0xf] }
 0x101   : > { %v3187_v22 = vsel %vm9815_vm7, %v3182_v2, %v3186_v38  ;;  %v3216_v18 = vshll.u32 %v7866_v9, 16  ;;  %v3222_v25 = vshll.u32 %v7867_v4, 16  ;;  %v3226_v26 = vshrl.u32 %v7867_v4, 16  ;;  %v7868_v38 = vld [vmem:[%s9775_s23 + $0x5c] sm:$0x1] }
 0x102   : > { %7672 = vmatmul.mubr.msk.bf16.gmra.mrb[16].mxu1 %vm675_vm1, %v10358_v59  ;;  %12102 = vst [vmem:[#allocation5_spill] sm:$0xff] %v10401_v27  ;;  %v3177_v63 = vsel %vm9815_vm7, %v3172_v49, %v3176_v1  ;;  %v9680_v1 = vld [vmem:[%s9775_s23 + $0x54] sm:$0xf]  ;;  %v3196_v46 = vrot.slane %v3195_v35, 4  ;;  %v3206_v28 = vrot.slane %v3205_v61, 4  ;;  %v3210_v47 = vrot.slane %v3208_v31, 5 }
 0x103   : > { %1324 = vmatprep.mubr.bf16.mxu1 %v12086_v3  ;;  %v10418_v29 = vcombine.low %v9680_v1, %v9681_v12  ;;  %v10420_v41 = vcombine.low %v3177_v63, %v3187_v22  ;;  %v3215_v62 = vrot.slane %v3213_v39, 4  ;;  %v3218_v16 = vrot.slane %v3216_v18, 5  ;;  %v7870_v20 = vld [vmem:[%s9775_s23 + $0x64] sm:$0xf]  ;;  %v9682_v39 = vld [vmem:[%s9775_s23 + $0x60] sm:$0xf] }
 0x104   : > { %7915 = vmatmul.mubr.msk.bf16.gmra.mrb[4].mxu0 %vm675_vm1, %v10364_v43  ;;  %v3224_v49 = vrot.slane %v3222_v25, 5  ;;  %v3228_v2 = vrot.slane %v3226_v26, 4  ;;  %v3201_v45 = vsel %vm9815_vm7, %v3196_v46, %v3200_v21  ;;  %v3211_v6 = vsel %vm9815_vm7, %v3206_v28, %v3210_v47  ;;  %v9683_v18 = vld [vmem:[%s9775_s23 + $0x64] sm:$0xf]  ;;  %v7872_v21 = vld [vmem:[%s9775_s23 + $0x6c] sm:$0xf] }
 0x105   : > { %3628 = vmatprep.mubr.bf16.mxu0 %v12086_v3  ;;  %12103 = vst [vmem:[#allocation6_spill] sm:$0xff] %v10420_v41  ;;  %v3219_v9 = vor.u32 %v3218_v16, %v3215_v62  ;;  %v3232_v63 = vshll.u32 %v7868_v38, 16  ;;  %v3237_v22 = vshrl.u32 %v7869_v8, 16  ;;  %v3240_v35 = vshll.u32 %v7869_v8, 16  ;;  %v7873_v26 = vld [vmem:[%s9775_s23 + $0x70] sm:$0xf] }
 0x106   : > { %v3229_v4 = vor.u32 %v3228_v2, %v3224_v49  ;;  %v3246_v61 = vshll.u32 %v7870_v20, 16  ;;  %v3250_v31 = vshrl.u32 %v7870_v20, 16  ;;  %v10437_v25 = vcombine.low %v9682_v39, %v9683_v18  ;;  %v7871_v38 = vld [vmem:[%s9775_s23 + $0x68] sm:$0x1] }
 0x107   : > { %v10441_v1 = vcombine.low %v3201_v45, %v3211_v6  ;;  %v3220_v12 = vrot.slane %v3219_v9, 4  ;;  %v3234_v28 = vrot.slane %v3232_v63, 5  ;;  %v3239_v47 = vrot.slane %v3237_v22, 4  ;;  %v9684_v45 = vld [vmem:[%s9775_s23 + $0x6c] sm:$0xf] }
 0x108   : > { %v3230_v46 = vrot.slane %v3229_v4, 4  ;;  %v3242_v62 = vrot.slane %v3240_v35, 5  ;;  %v3248_v16 = vrot.slane %v3246_v61, 5  ;;  %v3252_v2 = vrot.slane %v3250_v31, 4  ;;  %v9685_v6 = vld [vmem:[%s9775_s23 + $0x70] sm:$0xf] }
 0x109   : > { %12104 = vst [vmem:[#allocation7_spill] sm:$0xff] %v10441_v1  ;;  %v3261_v8 = vshrl.u32 %v7872_v21, 16  ;;  %v3264_v20 = vshll.u32 %v7872_v21, 16  ;;  %v3270_v39 = vshll.u32 %v7873_v26, 16  ;;  %v3274_v18 = vshrl.u32 %v7873_v26, 16 }
 0x10a   : > { %7673 = vmatmul.mubr.msk.bf16.gmra.mrb[20].mxu1 %vm675_vm1, %v10375_v7  ;;  %v10451_v9 = vcombine.low %v9684_v45, %v9685_v6  ;;  %v3225_v4 = vsel %vm9815_vm7, %v3220_v12, %v3224_v49  ;;  %v3235_v63 = vsel %vm9815_vm7, %v3230_v46, %v3234_v28  ;;  %v3243_v22 = vor.u32 %v3242_v62, %v3239_v47  ;;  %v7875_v45 = vld [vmem:[%s9775_s23 + $0x78] sm:$0xf]  ;;  %v7876_v6 = vld [vmem:[%s9775_s23 + $0x7c] sm:$0xf] }
 0x10b   : > { %1334 = vmatprep.mubr.bf16.mxu1 %v12086_v3  ;;  %v3253_v35 = vor.u32 %v3252_v2, %v3248_v16  ;;  %v3256_v61 = vshll.u32 %v7871_v38, 16  ;;  %v3263_v31 = vrot.slane %v3261_v8, 4  ;;  %v3266_v21 = vrot.slane %v3264_v20, 5 }
 0x10c   : > { %7916 = vmatmul.mubr.msk.bf16.gmra.mrb[8].mxu0 %vm675_vm1, %v10383_v54  ;;  %v3272_v26 = vrot.slane %v3270_v39, 5  ;;  %v3244_v54 = vrot.slane %v3243_v22, 4  ;;  %v3285_v62 = vshrl.u32 %v7875_v45, 16  ;;  %v3288_v2 = vshll.u32 %v7875_v45, 16  ;;  %v9687_v39 = vld [vmem:[%s9775_s23 + $0x7c] sm:$0xf] }
 0x10d   : > { %3638 = vmatprep.mubr.bf16.mxu0 %v12086_v3  ;;  %v3254_v49 = vrot.slane %v3253_v35, 4  ;;  %v3258_v12 = vrot.slane %v3256_v61, 5  ;;  %v3267_v46 = vor.u32 %v3266_v21, %v3263_v31  ;;  %v3294_v38 = vshll.u32 %v7876_v6, 16 }
 0x10e   : > { %v3298_v8 = vshrl.u32 %v7876_v6, 16  ;;  %v3249_v20 = vsel %vm9815_vm7, %v3244_v54, %v3248_v16  ;;  %v3287_v35 = vrot.slane %v3285_v62, 4  ;;  %v3290_v61 = vrot.slane %v3288_v2, 5  ;;  %v7877_v6 = vld [vmem:[%s9775_s23 + $0x80] sm:$0x1] }
 0x10f   : > { %v3296_v31 = vrot.slane %v3294_v38, 5  ;;  %v7879_v54 = vld [vmem:[%s9775_s23 + $0x88] sm:$0xf] }
 0x110   : > { %v3300_v21 = vrot.slane %v3298_v8, 4  ;;  %v3318_v38 = vshll.u32 %v7879_v54, 16  ;;  %v3322_v8 = vshrl.u32 %v7879_v54, 16  ;;  %v7882_v54 = vld [vmem:[%s9775_s23 + $0x94] sm:$0xf] }
 0x112   : > { %7674 = vmatmul.mubr.msk.bf16.gmra.mrb[24].mxu1 %vm675_vm1, %v10399_v0 }
 0x113   : > { %1344 = vmatprep.mubr.bf16.mxu1 %v12086_v3 }
 0x114   : > { %7917 = vmatmul.mubr.msk.bf16.gmra.mrb[12].mxu0 %vm675_vm1, %v10401_v27  ;;  %v10459_v27 = vcombine.low %v3225_v4, %v3235_v63  ;;  %v3268_v4 = vrot.slane %v3267_v46, 4  ;;  %v3291_v46 = vor.u32 %v3290_v61, %v3287_v35  ;;  %v3320_v61 = vrot.slane %v3318_v38, 5 }
 0x115   : > { %3648 = vmatprep.mubr.bf16.mxu0 %v12086_v3  ;;  %v3342_v38 = vshll.u32 %v7882_v54, 16 }
 0x116   : > { %12105 = vst [vmem:[#allocation8_spill] sm:$0xff] %v10459_v27  ;;  %v3273_v16 = vsel %vm9815_vm7, %v3268_v4, %v3272_v26 }
 0x11a   : > { %7675 = vmatmul.mubr.msk.bf16.gmra.mrb[28].mxu1 %vm675_vm1, %v10418_v29 }
 0x11b   : > { %1354 = vmatprep.mubr.bf16.mxu1 %v12086_v3 }
 0x11c   : > { %7918 = vmatmul.mubr.msk.bf16.gmra.mrb[16].mxu0 %vm675_vm1, %v10420_v41  ;;  %v7874_v41 = vld [vmem:[%s9775_s23 + $0x74] sm:$0x1] }
 0x11d   : > { %3658 = vmatprep.mubr.bf16.mxu0 %v12086_v3  ;;  %v3280_v47 = vshll.u32 %v7874_v41, 16  ;;  %v3259_v41 = vsel %vm9815_vm7, %v3254_v49, %v3258_v12  ;;  %v12107_v49 = vmov 0  }
 0x11e   : > { %v10477_v45 = vcombine.low %v3249_v20, %v3259_v41  ;;  %v9689_v20 = vld [vmem:[%s9775_s23 + $0x88] sm:$0xf] }
 0x11f   : > { %v3282_v22 = vrot.slane %v3280_v47, 5  ;;  %v3304_v47 = vshll.u32 %v7877_v6, 16  ;;  %v7881_v6 = vld [vmem:[%s9775_s23 + $0x90] sm:$0xf] }
 0x120   : > { %12106 = vst [vmem:[#allocation9_spill] sm:$0xff] %v10477_v45 }
 0x122   : > { %7676 = vmatmul.mubr.msk.bf16.gmra.mrb[32].mxu1 %vm675_vm1, %v10437_v25 }
 0x123   : > { %1364 = vmatprep.mubr.bf16.mxu1 %v12086_v3 }
 0x124   : > { %7919 = vmatmul.mubr.msk.bf16.gmra.mrb[20].mxu0 %vm675_vm1, %v10441_v1  ;;  %v3276_v1 = vrot.slane %v3274_v18, 4 }
 0x125   : > { %3668 = vmatprep.mubr.bf16.mxu0 %v12086_v3 }
 0x126   : > { %v3277_v28 = vor.u32 %v3276_v1, %v3272_v26  ;;  %v9686_v1 = vld [vmem:[%s9775_s23 + $0x78] sm:$0xf]  ;;  %v9688_v26 = vld [vmem:[%s9775_s23 + $0x84] sm:$0xf] }
 0x127   : > { %v10475_v18 = vcombine.low %v9686_v1, %v9687_v39  ;;  %v10494_v41 = vcombine.low %v9688_v26, %v9689_v20  ;;  %v3292_v39 = vrot.slane %v3291_v46, 4  ;;  %v9690_v26 = vld [vmem:[%s9775_s23 + $0x90] sm:$0xf] }
 0x128   : > { %v3278_v63 = vrot.slane %v3277_v28, 4  ;;  %v3301_v28 = vor.u32 %v3300_v21, %v3296_v31  ;;  %v3324_v21 = vrot.slane %v3322_v8, 4  ;;  %v3346_v8 = vshrl.u32 %v7882_v54, 16 }
 0x129   : > { %v10513_v20 = vcombine.low %v9690_v26, %v10086_v30 }
 0x12a   : > { %7677 = vmatmul.mubr.msk.bf16.gmra.mrb[36].mxu1 %vm675_vm1, %v10451_v9  ;;  %v3283_v12 = vsel %vm9815_vm7, %v3278_v63, %v3282_v22  ;;  %v3302_v4 = vrot.slane %v3301_v28, 4  ;;  %v3306_v63 = vrot.slane %v3304_v47, 5  ;;  %v3325_v28 = vor.u32 %v3324_v21, %v3320_v61 }
 0x12b   : > { %1374 = vmatprep.mubr.bf16.mxu1 %v12086_v3  ;;  %v10496_v1 = vcombine.low %v3273_v16, %v3283_v12  ;;  %v3297_v16 = vsel %vm9815_vm7, %v3292_v39, %v3296_v31  ;;  %v7884_v31 = vld [vmem:[%s9775_s23 + $0x9c] sm:$0xf]  ;;  %v7885_v39 = vld [vmem:[%s9775_s23 + $0xa0] sm:$0xf]  ;;  %v3344_v21 = vrot.slane %v3342_v38, 5 }
 0x12c   : > { %7920 = vmatmul.mubr.msk.bf16.gmra.mrb[24].mxu0 %vm675_vm1, %v10459_v27  ;;  %v3307_v12 = vsel %vm9815_vm7, %v3302_v4, %v3306_v63  ;;  %v3326_v4 = vrot.slane %v3325_v28, 4  ;;  %v3357_v54 = vshrl.u32 %v7884_v31, 16  ;;  %v3360_v27 = vshll.u32 %v7884_v31, 16 }
 0x12d   : > { %3678 = vmatprep.mubr.bf16.mxu0 %v12086_v3  ;;  %v7878_v3 = vld [vmem:[%s9775_s23 + $0x84] sm:$0xf]  ;;  %12108 = vst [vmem:[#allocation10_spill] sm:$0xff] %v10496_v1  ;;  %v3366_v30 = vshll.u32 %v7885_v39, 16  ;;  %v3370_v26 = vshrl.u32 %v7885_v39, 16 }
 0x12e   : > { %v3309_v62 = vshrl.u32 %v7878_v3, 16  ;;  %v3312_v2 = vshll.u32 %v7878_v3, 16  ;;  %v7880_v3 = vld [vmem:[%s9775_s23 + $0x8c] sm:$0x1]  ;;  %v3362_v38 = vrot.slane %v3360_v27, 5 }
 0x12f   : > { %v3328_v47 = vshll.u32 %v7880_v3, 16  ;;  %v3348_v3 = vrot.slane %v3346_v8, 4  ;;  %v3368_v8 = vrot.slane %v3366_v30, 5  ;;  %v3372_v31 = vrot.slane %v3370_v26, 4  ;;  %v7886_v39 = vld [vmem:[%s9775_s23 + $0xa4] sm:$0x1] }
 0x130   : > { %v3311_v22 = vrot.slane %v3309_v62, 4  ;;  %v3314_v35 = vrot.slane %v3312_v2, 5  ;;  %v3333_v62 = vshrl.u32 %v7881_v6, 16  ;;  %v3336_v2 = vshll.u32 %v7881_v6, 16  ;;  %v7883_v6 = vld [vmem:[%s9775_s23 + $0x98] sm:$0x1] }
 0x131   : > { %v3330_v63 = vrot.slane %v3328_v47, 5  ;;  %v3349_v47 = vor.u32 %v3348_v3, %v3344_v21  ;;  %v10551_v30 = vcombine.low %v10144_v37, %v10150_v44 }
 0x132   : > { %7678 = vmatmul.mubr.msk.bf16.gmra.mrb[40].mxu1 %vm675_vm1, %v10475_v18  ;;  %v3315_v46 = vor.u32 %v3314_v35, %v3311_v22  ;;  %v3335_v22 = vrot.slane %v3333_v62, 4  ;;  %v3338_v35 = vrot.slane %v3336_v2, 5  ;;  %v3352_v62 = vshll.u32 %v7883_v6, 16 }
 0x133   : > { %1384 = vmatprep.mubr.bf16.mxu1 %v12107_v49  ;;  %v3359_v2 = vrot.slane %v3357_v54, 4  ;;  %v3350_v55 = vrot.slane %v3349_v47, 4 }
 0x134   : > { %7921 = vmatmul.mubr.msk.bf16.gmra.mrb[28].mxu0 %vm675_vm1, %v10477_v45  ;;  %v3316_v45 = vrot.slane %v3315_v46, 4  ;;  %v3331_v46 = vsel %vm9815_vm7, %v3326_v4, %v3330_v63  ;;  %v3339_v28 = vor.u32 %v3338_v35, %v3335_v22  ;;  %v3373_v4 = vor.u32 %v3372_v31, %v3368_v8  ;;  %v7889_v31 = vld [vmem:[%s9775_s23 + $0xb0] sm:$0x1] }
 0x135   : > { %3688 = vmatprep.mubr.bf16.mxu0 %v12107_v49  ;;  %v3376_v63 = vshll.u32 %v7886_v39, 16  ;;  %v7890_v39 = vld [vmem:[%s9775_s23 + $0xb4] sm:$0xf] }
 0x136   : > { %v3340_v43 = vrot.slane %v3339_v28, 4 }
 0x138   : > { %v3345_v6 = vsel %vm9815_vm7, %v3340_v43, %v3344_v21  ;;  %v3400_v21 = vshll.u32 %v7889_v31, 16 }
 0x13a   : > { %7679 = vmatmul.mubr.msk.bf16.gmra.mrb[44].mxu1 %vm675_vm1, %v10494_v41 }
 0x13b   : > { %1394 = vmatprep.mubr.bf16.mxu1 %v12107_v49 }
 0x13c   : > { %7922 = vmatmul.mubr.msk.bf16.gmra.mrb[32].mxu0 %vm675_vm1, %v10496_v1  ;;  %v10517_v1 = vcombine.low %v3297_v16, %v3307_v12  ;;  %v10527_v16 = vcombine.low %v10106_v57, %v10118_v60  ;;  %v3321_v12 = vsel %vm9815_vm7, %v3316_v45, %v3320_v61  ;;  %v7887_v57 = vld [vmem:[%s9775_s23 + $0xa8] sm:$0xf]  ;;  %v7888_v60 = vld [vmem:[%s9775_s23 + $0xac] sm:$0xf]  ;;  %v3354_v45 = vrot.slane %v3352_v62, 5 }
 0x13d   : > { %3698 = vmatprep.mubr.bf16.mxu0 %v12107_v49  ;;  %v3363_v61 = vor.u32 %v3362_v38, %v3359_v2  ;;  %v3381_v22 = vshrl.u32 %v7887_v57, 16  ;;  %v3384_v27 = vshll.u32 %v7887_v57, 16  ;;  %v3390_v35 = vshll.u32 %v7888_v60, 16  ;;  %v7891_v57 = vld [vmem:[%s9775_s23 + $0xb8] sm:$0xf] }
 0x13e   : > { %12109 = vst [vmem:[#allocation11_spill] sm:$0xff] %v10517_v1  ;;  %v3394_v3 = vshrl.u32 %v7888_v60, 16  ;;  %v3355_v54 = vsel %vm9815_vm7, %v3350_v55, %v3354_v45  ;;  %v3405_v60 = vshrl.u32 %v7890_v39, 16  ;;  %v3408_v45 = vshll.u32 %v7890_v39, 16 }
 0x13f   : > { %v3364_v26 = vrot.slane %v3363_v61, 4  ;;  %v3383_v28 = vrot.slane %v3381_v22, 4  ;;  %v3386_v47 = vrot.slane %v3384_v27, 5  ;;  %v3392_v62 = vrot.slane %v3390_v35, 5 }
 0x140   : > { %v3396_v2 = vrot.slane %v3394_v3, 4  ;;  %v10553_v38 = vcombine.low %v3345_v6, %v3355_v54  ;;  %v3414_v61 = vshll.u32 %v7891_v57, 16  ;;  %v3402_v35 = vrot.slane %v3400_v21, 5 }
 0x141   : > { %v3369_v55 = vsel %vm9815_vm7, %v3364_v26, %v3368_v8  ;;  %v3387_v44 = vor.u32 %v3386_v47, %v3383_v28  ;;  %v10570_v8 = vcombine.low %v10176_v36, %v10182_v42  ;;  %v3407_v3 = vrot.slane %v3405_v60, 4  ;;  %v7894_v28 = vld [vmem:[%s9775_s23 + $0xc4] sm:$0xf]  ;;  %v9691_v36 = vld [vmem:[%s12079_s1 + $0xc] sm:$0x3f] }
 0x142   : > { %7680 = vmatmul.mubr.msk.bf16.gmra.mrb[48].mxu1 %vm675_vm1, %v10513_v20  ;;  %v3397_v43 = vor.u32 %v3396_v2, %v3392_v62  ;;  %v3410_v6 = vrot.slane %v3408_v45, 5  ;;  %v3416_v54 = vrot.slane %v3414_v61, 5  ;;  %v1858_v42 = vcombine.high %v9691_v36, %v9691_v36 }
 0x143   : > { %1404 = vmatprep.mubr.bf16.mxu1 %v12107_v49  ;;  %v3388_v22 = vrot.slane %v3387_v44, 4  ;;  %v3438_v44 = vshll.u32 %v7894_v28, 16 }
 0x144   : > { %7923 = vmatmul.mubr.msk.bf16.gmra.mrb[36].mxu0 %vm675_vm1, %v10517_v1  ;;  %v10535_v1 = vcombine.low %v3321_v12, %v3331_v46  ;;  %v3374_v12 = vrot.slane %v3373_v4, 4  ;;  %v3378_v46 = vrot.slane %v3376_v63, 5  ;;  %v3418_v4 = vshrl.u32 %v7891_v57, 16 }
 0x145   : > { %3708 = vmatprep.mubr.bf16.mxu0 %v12107_v49  ;;  %v3398_v27 = vrot.slane %v3397_v43, 4  ;;  %v3393_v47 = vsel %vm9815_vm7, %v3388_v22, %v3392_v62  ;;  %v3411_v31 = vor.u32 %v3410_v6, %v3407_v3  ;;  %v3442_v43 = vshrl.u32 %v7894_v28, 16 }
 0x146   : > { %v3379_v37 = vsel %vm9815_vm7, %v3374_v12, %v3378_v46  ;;  %v3420_v26 = vrot.slane %v3418_v4, 4  ;;  %v7892_v12 = vld [vmem:[%s9775_s23 + $0xbc] sm:$0x1]  ;;  %v7893_v46 = vld [vmem:[%s9775_s23 + $0xc0] sm:$0xf]  ;;  %v10594_v45 = vrot.slane %v1858_v42, %v9768_v10  ;;  %v3440_v22 = vrot.slane %v3438_v44, 5 }
 0x147   : > { %v10572_v63 = vcombine.low %v3369_v55, %v3379_v37  ;;  %v3403_v2 = vsel %vm9815_vm7, %v3398_v27, %v3402_v35  ;;  %v3424_v57 = vshll.u32 %v7892_v12, 16  ;;  %v3429_v55 = vshrl.u32 %v7893_v46, 16  ;;  %v7895_v35 = vld [vmem:[%s9775_s23 + $0xc8] sm:$0x1] }
 0x148   : > { %v3421_v39 = vor.u32 %v3420_v26, %v3416_v54  ;;  %v3432_v37 = vshll.u32 %v7893_v46, 16  ;;  %v3412_v21 = vrot.slane %v3411_v31, 4  ;;  %v3444_v27 = vrot.slane %v3442_v43, 4 }
 0x149   : > { %v3426_v60 = vrot.slane %v3424_v57, 5  ;;  %v3431_v61 = vrot.slane %v3429_v55, 4  ;;  %v3448_v26 = vshll.u32 %v7895_v35, 16  ;;  %v7950_v55 = vld [vmem:[%s9775_s23 + $0x1c] sm:$0xf] }
 0x14a   : > { %7681 = vmatmul.mubr.msk.bf16.gmra.mrb[52].mxu1 %vm675_vm1, %v10527_v16  ;;  %v3422_v62 = vrot.slane %v3421_v39, 4  ;;  %v3434_v4 = vrot.slane %v3432_v37, 5  ;;  %v3417_v3 = vsel %vm9815_vm7, %v3412_v21, %v3416_v54  ;;  %v7947_v54 = vld [vmem:[%s9775_s23 + $0x10] sm:$0xf]  ;;  %v4131_v43 = vrot.slane %v7950_v55, 5 }
 0x14b   : > { %1414 = vmatprep.mubr.bf16.mxu1 %v12107_v49  ;;  %v3450_v28 = vrot.slane %v3448_v26, 5  ;;  %v7949_v21 = vld [vmem:[%s9775_s23 + $0x18] sm:$0xe] }
 0x14c   : > { %7924 = vmatmul.mubr.msk.bf16.gmra.mrb[40].mxu0 %vm675_vm1, %v10535_v1  ;;  %v3435_v6 = vor.u32 %v3434_v4, %v3431_v61  ;;  %v4989_v4 = vsel %vm724_vm0, %v10353_v33, 0  ;;  %v7954_v33 = vld [vmem:[%s9775_s23 + $0x2c] sm:$0x1] }
 0x14d   : > { %3718 = vmatprep.mubr.bf16.mxu0 %v12107_v49 }
 0x14e   : > { %v3436_v12 = vrot.slane %v3435_v6, 4 }
 0x150   : > { %v3441_v36 = vsel %vm9815_vm7, %v3436_v12, %v3440_v22  ;;  %v4141_v12 = vrot.slane %v7954_v33, 5 }
 0x152   : > { %7682 = vmatmul.mubr.msk.bf16.gmra.mrb[56].mxu1 %vm675_vm1, %v10551_v30 }
 0x153   : > { %1424 = vmatprep.mubr.bf16.mxu1 %v12107_v49 }
 0x154   : > { %7925 = vmatmul.mubr.msk.bf16.gmra.mrb[44].mxu0 %vm675_vm1, %v10553_v38 }
 0x155   : > { %3728 = vmatprep.mubr.bf16.mxu0 %v12107_v49 }
 0x15a   : > { %7683 = vmatmul.mubr.msk.bf16.gmra.mrb[60].mxu1 %vm675_vm1, %v10570_v8 }
 0x15b   : > { %8549 = vmatprep.mubr.msk.bf16.mxu1 %vm675_vm1, %v10287_v58  ;;  %v10591_v58 = vcombine.low %v3393_v47, %v3403_v2  ;;  %v4124_v47 = vrot.slane %v7947_v54, 5  ;;  %v7946_v2 = vld [vmem:[%s9775_s23 + $0xc] sm:$0xe] }
 0x15c   : > { %7926 = vmatmul.mubr.msk.bf16.gmra.mrb[48].mxu0 %vm675_vm1, %v10572_v63  ;;  %v7994_v39 = vrot.slane %v7946_v2, 9 }
 0x15d   : > { %3738 = vmatprep.mubr.bf16.mxu0 %v12107_v49 }
 0x15e   : > { %v4125_v37 = vsel %vm9786_vm6, %v7994_v39, %v4124_v47 }
 0x162   : > { %8550 = vmatmul.mubr.msk.bf16.vlgmr.msra.gmra.mrb[64].mxu1 %vm675_vm1, %v10301_v32  ;;  %v3427_v32 = vsel %vm9815_vm7, %v3422_v62, %v3426_v60  ;;  %v7995_v60 = vrot.slane %v7949_v21, 9 }
 0x163   : > { %8820 = vmatpush1.bf16.msra.mxu1 %v9784_v17  ;;  %8553 = vmatprep.mubr.msk.bf16.mxu1 %vm675_vm1, %v10315_v24  ;;  %v3445_v17 = vor.u32 %v3444_v27, %v3440_v22  ;;  %v10611_v24 = vcombine.low %v3417_v3, %v3427_v32  ;;  %v7953_v22 = vld [vmem:[%s9775_s23 + $0x28] sm:$0xf]  ;;  %v7952_v3 = vld [vmem:[%s9775_s23 + $0x24] sm:$0xe] }
 0x164   : > { %7927 = vmatmul.mubr.msk.bf16.gmra.mrb[52].mxu0 %vm675_vm1, %v10591_v58  ;;  %9591 = vmatprep.subr.msk.bf16.mxu1 %vm724_vm0, %v10594_v45  ;;  %v4132_v27 = vsel %vm9786_vm6, %v7995_v60, %v4131_v43  ;;  %v4138_v35 = vrot.slane %v7953_v22, 5  ;;  %v1634_v22 = vld [vmem:[%s9775_s23 + $0x98] sm:$0x1] }
 0x165   : > { %3748 = vmatprep.mubr.bf16.mxu0 %v12107_v49  ;;  %v3446_v46 = vrot.slane %v3445_v17, 4  ;;  %v7996_v17 = vrot.slane %v7952_v3, 9  ;;  %v7963_v3 = vld [vmem:[%s9775_s23 + $0x50] sm:$0x1] }
 0x166   : > { %v4140_v26 = vrot.slane %v4138_v35, 4 }
 0x167   : > { %v3451_v42 = vsel %vm9815_vm7, %v3446_v46, %v3450_v28  ;;  %v7956_v28 = vld [vmem:[%s9775_s23 + $0x34] sm:$0xf]  ;;  %v4139_v54 = vsel %vm9786_vm6, %v7996_v17, %v4138_v35  ;;  %v7961_v35 = vld [vmem:[%s9775_s23 + $0x48] sm:$0xe]  ;;  %v1784_v17 = vrot.slane %v1634_v22, 5 }
 0x168   : > { %v10627_v31 = vcombine.low %v3441_v36, %v3451_v42  ;;  %v4142_v36 = vsel %vm9786_vm6, %v4140_v26, %v4141_v12  ;;  %v7955_v42 = vld [vmem:[%s9775_s23 + $0x30] sm:$0xe]  ;;  %v1636_v12 = vld [vmem:[%s9775_s23 + $0xa0] sm:$0xf] }
 0x169   : > { %v7997_v2 = vrot.slane %v7955_v42, 9 }
 0x16a   : > { %8554 = vmatmul.mubr.msk.bf16.gmra.mrb[68].mxu1 %vm675_vm1, %v10332_v50  ;;  %v7948_v50 = vld [vmem:[%s9775_s23 + $0x14] sm:$0x1] }
 0x16b   : > { %8557 = vmatprep.mubr.msk.bf16.mxu1 %vm675_vm1, %v10358_v59  ;;  %v4126_v59 = vrot.slane %v4124_v47, 4  ;;  %v4127_v57 = vrot.slane %v7948_v50, 5  ;;  %v7957_v47 = vld [vmem:[%s9775_s23 + $0x38] sm:$0x1] }
 0x16c   : > { %7928 = vmatmul.mubr.msk.bf16.gmra.mrb[56].mxu0 %vm675_vm1, %v10611_v24  ;;  %v4148_v39 = vrot.slane %v7957_v47, 5  ;;  %v1788_v47 = vrot.slane %v1636_v12, 5 }
 0x16d   : > { %3758 = vmatprep.mubr.bf16.mxu0 %v12107_v49  ;;  %v4128_v44 = vsel %vm9786_vm6, %v4126_v59, %v4127_v57  ;;  %v7959_v59 = vld [vmem:[%s9775_s23 + $0x40] sm:$0xf] }
 0x16e   : > { %v10643_v62 = vcombine.low %v4125_v37, %v4128_v44  ;;  %v4152_v37 = vrot.slane %v7959_v59, 5  ;;  %v7960_v44 = vld [vmem:[%s9775_s23 + $0x44] sm:$0x1] }
 0x16f   : > { %v4155_v60 = vrot.slane %v7960_v44, 5  ;;  %v7966_v44 = vld [vmem:[%s9775_s23 + $0x5c] sm:$0x1] }
 0x172   : > { %8558 = vmatmul.mubr.msk.bf16.gmra.mrb[72].mxu1 %vm675_vm1, %v10375_v7  ;;  %v7951_v7 = vld [vmem:[%s9775_s23 + $0x20] sm:$0x1] }
 0x173   : > { %8561 = vmatprep.mubr.msk.bf16.mxu1 %vm675_vm1, %v10399_v0  ;;  %v4133_v0 = vrot.slane %v4131_v43, 4  ;;  %v4134_v61 = vrot.slane %v7951_v7, 5  ;;  %v4154_v7 = vrot.slane %v4152_v37, 4 }
 0x174   : > { %7929 = vmatmul.mubr.msk.bf16.gmra.mrb[60].mxu0 %vm675_vm1, %v10627_v31 }
 0x175   : > { %4390 = vmatprep.mubr.bf16.mxu0 %v12107_v49 }
 0x17a   : > { %8562 = vmatmul.mubr.msk.bf16.gmra.mrb[76].mxu1 %vm675_vm1, %v10418_v29  ;;  %v4135_v29 = vsel %vm9786_vm6, %v4133_v0, %v4134_v61  ;;  %v7962_v0 = vld [vmem:[%s9775_s23 + $0x4c] sm:$0xf] }
 0x17b   : > { %8565 = vmatprep.mubr.msk.bf16.mxu1 %vm675_vm1, %v10437_v25  ;;  %v10664_v25 = vld [vmem:[%s12079_s1 + $0x2a] sm:$0x3f]  ;;  %v10670_v6 = vcombine.low %v4132_v27, %v4135_v29  ;;  %v4159_v29 = vrot.slane %v7962_v0, 5 }
 0x17c   : > { %8028 = vmatmul.mubr.msk.bf16.vlgmr.msra.gmra.mrb[0].mxu0 %vm675_vm1, %v10643_v62  ;;  %v10668_v32 = vrot.slane %v10664_v25, %v9768_v10 }
 0x17d   : > { %4998 = vmatpush1.bf16.msra.mxu0 %v4989_v4  ;;  %4400 = vmatprep.mubr.bf16.mxu0 %v12107_v49  ;;  %v1632_v4 = vld [vmem:[%s9775_s23 + $0x90] sm:$0xe] }
 0x17e   : > { %v5945_v46 = vcombine.high %v10668_v32, %v10668_v32 }
 0x180   : > { %8207 = vmatprep.subr.msk.bf16.mxu0 %vm724_vm0, %v5945_v46  ;;  %v7999_v46 = vrot.slane %v7961_v35, 9 }
 0x182   : > { %8566 = vmatmul.mubr.msk.bf16.gmra.mrb[80].mxu1 %vm675_vm1, %v10451_v9  ;;  %v4145_v9 = vrot.slane %v7956_v28, 5  ;;  %v4161_v28 = vrot.slane %v4159_v29, 4  ;;  %v4160_v59 = vsel %vm9786_vm6, %v7999_v46, %v4159_v29  ;;  %v7968_v29 = vld [vmem:[%s9775_s23 + $0x64] sm:$0xf] }
 0x183   : > { %8569 = vmatprep.mubr.msk.bf16.mxu1 %vm675_vm1, %v10475_v18  ;;  %v10689_v18 = vcombine.low %v4139_v54, %v4142_v36  ;;  %v4162_v54 = vrot.slane %v7963_v3, 5  ;;  %v7965_v36 = vld [vmem:[%s9775_s23 + $0x58] sm:$0xf]  ;;  %v4173_v46 = vrot.slane %v7968_v29, 5 }
 0x184   : > { %8029 = vmatmul.mubr.msk.bf16.gmra.mrb[4].mxu0 %vm675_vm1, %v10670_v6  ;;  %v4147_v50 = vrot.slane %v4145_v9, 4  ;;  %v4146_v57 = vsel %vm9786_vm6, %v7997_v2, %v4145_v9  ;;  %v1635_v2 = vld [vmem:[%s9775_s23 + $0x9c] sm:$0xe] }
 0x185   : > { %4410 = vmatprep.mubr.bf16.mxu0 %v12107_v49 }
 0x186   : > { %v4149_v55 = vsel %vm9786_vm6, %v4147_v50, %v4148_v39  ;;  %v1637_v50 = vld [vmem:[%s9775_s23 + $0xa4] sm:$0x1] }
 0x187   : > { %v10705_v43 = vcombine.low %v4146_v57, %v4149_v55  ;;  %v4163_v57 = vsel %vm9786_vm6, %v4161_v28, %v4162_v54  ;;  %v4166_v55 = vrot.slane %v7965_v36, 5  ;;  %v7967_v54 = vld [vmem:[%s9775_s23 + $0x60] sm:$0xe]  ;;  %v7969_v36 = vld [vmem:[%s9775_s23 + $0x68] sm:$0x1] }
 0x188   : > { %v10753_v0 = vcombine.low %v4160_v59, %v4163_v57  ;;  %v4176_v59 = vrot.slane %v7969_v36, 5  ;;  %v7971_v57 = vld [vmem:[%s9775_s23 + $0x70] sm:$0xf] }
 0x18a   : > { %8570 = vmatmul.mubr.msk.bf16.gmra.mrb[84].mxu1 %vm675_vm1, %v10494_v41  ;;  %v7958_v41 = vld [vmem:[%s9775_s23 + $0x3c] sm:$0xe] }
 0x18b   : > { %8573 = vmatprep.mubr.msk.bf16.mxu1 %vm675_vm1, %v10513_v20  ;;  %v1633_v20 = vld [vmem:[%s9775_s23 + $0x94] sm:$0xf]  ;;  %v7998_v21 = vrot.slane %v7958_v41, 9 }
 0x18c   : > { %8030 = vmatmul.mubr.msk.bf16.gmra.mrb[8].mxu0 %vm675_vm1, %v10689_v18  ;;  %v1781_v61 = vrot.slane %v1633_v20, 5  ;;  %v7964_v41 = vld [vmem:[%s9775_s23 + $0x54] sm:$0xe]  ;;  %v7713_v20 = vrot.slane %v1635_v2, 9 }
 0x18d   : > { %4420 = vmatprep.mubr.bf16.mxu0 %v12107_v49  ;;  %v4153_v27 = vsel %vm9786_vm6, %v7998_v21, %v4152_v37  ;;  %v1790_v21 = vrot.slane %v1788_v47, 4  ;;  %v8000_v22 = vrot.slane %v7964_v41, 9 }
 0x18e   : > { %v1783_v33 = vrot.slane %v1781_v61, 4 }
 0x190   : > { %v1785_v42 = vsel %vm9786_vm6, %v1783_v33, %v1784_v17  ;;  %v1640_v33 = vld [vmem:[%s9775_s23 + $0xb0] sm:$0x1]  ;;  %v4167_v17 = vsel %vm9786_vm6, %v8000_v22, %v4166_v55 }
 0x192   : > { %8574 = vmatmul.mubr.msk.bf16.gmra.mrb[88].mxu1 %vm675_vm1, %v10527_v16  ;;  %v4156_v16 = vsel %vm9786_vm6, %v4154_v7, %v4155_v60  ;;  %v1791_v7 = vrot.slane %v1637_v50, 5  ;;  %v1929_v60 = vsel %vm724_vm0, %v10594_v45, 0  ;;  %v1789_v45 = vsel %vm9786_vm6, %v7713_v20, %v1788_v47  ;;  %v1642_v50 = vld [vmem:[%s9775_s23 + $0xb8] sm:$0xf]  ;;  %v1641_v20 = vld [vmem:[%s9775_s23 + $0xb4] sm:$0xe] }
 0x193   : > { %8577 = vmatprep.mubr.msk.bf16.mxu1 %vm675_vm1, %v10551_v30  ;;  %v7712_v30 = vrot.slane %v1632_v4, 9  ;;  %v10724_v26 = vcombine.low %v4153_v27, %v4156_v16  ;;  %v4168_v27 = vrot.slane %v4166_v55, 4  ;;  %v4169_v16 = vrot.slane %v7966_v44, 5 }
 0x194   : > { %8031 = vmatmul.mubr.msk.bf16.gmra.mrb[12].mxu0 %vm675_vm1, %v10705_v43  ;;  %v1792_v35 = vsel %vm9786_vm6, %v1790_v21, %v1791_v7  ;;  %v1798_v47 = vrot.slane %v1640_v33, 5  ;;  %v1802_v44 = vrot.slane %v1642_v50, 5  ;;  %v1643_v21 = vld [vmem:[%s9775_s23 + $0xbc] sm:$0x1]  ;;  %v7715_v29 = vrot.slane %v1641_v20, 9 }
 0x195   : > { %4430 = vmatprep.mubr.bf16.mxu0 %v12107_v49  ;;  %v1782_v9 = vsel %vm9786_vm6, %v7712_v30, %v1781_v61  ;;  %v1639_v61 = vld [vmem:[%s9775_s23 + $0xac] sm:$0xf]  ;;  %v1638_v30 = vld [vmem:[%s9775_s23 + $0xa8] sm:$0xe]  ;;  %v4170_v12 = vsel %vm9786_vm6, %v4168_v27, %v4169_v16  ;;  %v10778_v28 = vcombine.low %v1789_v45, %v1792_v35  ;;  %v7972_v16 = vld [vmem:[%s9775_s23 + $0x74] sm:$0x1] }
 0x196   : > { %v10747_v37 = vcombine.low %v1782_v9, %v1785_v42  ;;  %v1795_v3 = vrot.slane %v1639_v61, 5  ;;  %v7714_v9 = vrot.slane %v1638_v30, 9  ;;  %v10782_v2 = vcombine.low %v4167_v17, %v4170_v12  ;;  %v7970_v27 = vld [vmem:[%s9775_s23 + $0x6c] sm:$0xe]  ;;  %v7974_v12 = vld [vmem:[%s9775_s23 + $0x7c] sm:$0xf] }
 0x197   : > { %v4180_v61 = vrot.slane %v7971_v57, 5  ;;  %v1804_v45 = vrot.slane %v1802_v44, 4  ;;  %v1805_v35 = vrot.slane %v1643_v21, 5  ;;  %v8002_v30 = vrot.slane %v7970_v27, 9 }
 0x198   : > { %v1797_v42 = vrot.slane %v1795_v3, 4  ;;  %v1796_v55 = vsel %vm9786_vm6, %v7714_v9, %v1795_v3  ;;  %v4183_v17 = vrot.slane %v7972_v16, 5 }
 0x199   : > { %v4182_v33 = vrot.slane %v4180_v61, 4  ;;  %v4181_v9 = vsel %vm9786_vm6, %v8002_v30, %v4180_v61  ;;  %v7978_v30 = vld [vmem:[%s9775_s23 + $0x8c] sm:$0x1] }
 0x19a   : > { %8578 = vmatmul.mubr.msk.bf16.gmra.mrb[92].mxu1 %vm675_vm1, %v10570_v8  ;;  %v9692_v8 = vld [vmem:[%s12079_s1 + $0x12] sm:$0x3f]  ;;  %v1799_v41 = vsel %vm9786_vm6, %v1797_v42, %v1798_v47  ;;  %v4187_v47 = vrot.slane %v7974_v12, 5 }
 0x19b   : > { %2083 = vmatprep.mubr.bf16.mxu1 %v12107_v49  ;;  %v2497_v39 = vcombine.high %v9692_v8, %v9692_v8  ;;  %v8001_v8 = vrot.slane %v7967_v54, 9  ;;  %v10802_v22 = vcombine.low %v1796_v55, %v1799_v41  ;;  %v1806_v54 = vsel %vm9786_vm6, %v1804_v45, %v1805_v35  ;;  %v7976_v35 = vld [vmem:[%s9775_s23 + $0x84] sm:$0xe] }
 0x19c   : > { %8032 = vmatmul.mubr.msk.bf16.gmra.mrb[16].mxu0 %vm675_vm1, %v10724_v26  ;;  %v4184_v42 = vsel %vm9786_vm6, %v4182_v33, %v4183_v17  ;;  %v4189_v20 = vrot.slane %v4187_v47, 4 }
 0x19d   : > { %4440 = vmatprep.mubr.bf16.mxu0 %v12107_v49  ;;  %v10757_v4 = vrot.slane %v2497_v39, %v9768_v10  ;;  %v4175_v39 = vrot.slane %v4173_v46, 4  ;;  %v4174_v7 = vsel %vm9786_vm6, %v8001_v8, %v4173_v46  ;;  %v1803_v46 = vsel %vm9786_vm6, %v7715_v29, %v1802_v44 }
 0x19e   : > { %v10827_v8 = vcombine.low %v1803_v46, %v1806_v54  ;;  %v10835_v41 = vcombine.low %v4181_v9, %v4184_v42  ;;  %v8004_v9 = vrot.slane %v7976_v35, 9 }
 0x19f   : > { %v2568_v12 = vsel %vm724_vm0, %v10757_v4, 0 }
 0x1a2   : > { %7746 = vmatmul.mubr.msk.bf16.vlgmr.msra.gmra.mrb[48].mxu1 %vm675_vm1, %v10747_v37 }
 0x1a3   : > { %8582 = vmatpush3.bf16.msra.mxu1 %v1929_v60  ;;  %2093 = vmatprep.mubr.bf16.mxu1 %v12107_v49  ;;  %v4177_v60 = vsel %vm9786_vm6, %v4175_v39, %v4176_v59  ;;  %v7973_v39 = vld [vmem:[%s9775_s23 + $0x78] sm:$0xe]  ;;  %v7975_v59 = vld [vmem:[%s9775_s23 + $0x80] sm:$0x1] }
 0x1a4   : > { %8033 = vmatmul.mubr.msk.bf16.gmra.mrb[20].mxu0 %vm675_vm1, %v10753_v0  ;;  %9592 = vmatprep.subr.msk.bf16.mxu1 %vm724_vm0, %v10757_v4  ;;  %v10806_v3 = vcombine.low %v4174_v7, %v4177_v60  ;;  %v8003_v44 = vrot.slane %v7973_v39, 9  ;;  %v4190_v21 = vrot.slane %v7975_v59, 5  ;;  %v7977_v7 = vld [vmem:[%s9775_s23 + $0x88] sm:$0xf]  ;;  %v9693_v60 = vld [vmem:[%s12079_s1 + $0x18] sm:$0x3f] }
 0x1a5   : > { %4450 = vmatprep.mubr.bf16.mxu0 %v12107_v49  ;;  %v3503_v61 = vcombine.high %v9693_v60, %v9693_v60  ;;  %v7980_v39 = vld [vmem:[%s9775_s23 + $0x94] sm:$0xf] }
 0x1a6   : > { %v4188_v16 = vsel %vm9786_vm6, %v8003_v44, %v4187_v47  ;;  %v4191_v29 = vsel %vm9786_vm6, %v4189_v20, %v4190_v21  ;;  %v4197_v47 = vrot.slane %v7978_v30, 5  ;;  %v4201_v44 = vrot.slane %v7980_v39, 5  ;;  %v7981_v21 = vld [vmem:[%s9775_s23 + $0x98] sm:$0x1]  ;;  %v7984_v39 = vld [vmem:[%s9775_s23 + $0xa4] sm:$0x1] }
 0x1a7   : > { %v10864_v46 = vcombine.low %v4188_v16, %v4191_v29  ;;  %v10867_v54 = vrot.slane %v3503_v61, %v9768_v10  ;;  %v4204_v35 = vrot.slane %v7981_v21, 5 }
 0x1a8   : > { %v4203_v29 = vrot.slane %v4201_v44, 4 }
 0x1aa   : > { %7747 = vmatmul.mubr.msk.bf16.gmra.mrb[52].mxu1 %vm675_vm1, %v10778_v28 }
 0x1ab   : > { %2103 = vmatprep.mubr.bf16.mxu1 %v12107_v49 }
 0x1ac   : > { %8034 = vmatmul.mubr.msk.bf16.gmra.mrb[24].mxu0 %vm675_vm1, %v10782_v2 }
 0x1ad   : > { %4460 = vmatprep.mubr.bf16.mxu0 %v12107_v49 }
 0x1b2   : > { %7748 = vmatmul.mubr.msk.bf16.gmra.mrb[56].mxu1 %vm675_vm1, %v10802_v22 }
 0x1b3   : > { %2113 = vmatprep.mubr.bf16.mxu1 %v12107_v49 }
 0x1b4   : > { %8035 = vmatmul.mubr.msk.bf16.gmra.mrb[28].mxu0 %vm675_vm1, %v10806_v3 }
 0x1b5   : > { %v10818_v36 = vpop.f32.mrb[0].mxu1  ;;  %4470 = vmatprep.mubr.bf16.mxu0 %v12107_v49 }
 0x1b6   : > { %12110 = vst [vmem:[#allocation12_spill] sm:$0xff] %v10818_v36  ;;  %v10825_v50 = vpop.f32.mrb[1].mxu1 }
 0x1b7   : > { %12111 = vst [vmem:[#allocation13_spill] sm:$0xff] %v10825_v50  ;;  %v10831_v57 = vpop.f32.mrb[2].mxu1  ;;  %v8149_v50 = vld [vmem:[%s9775_s23 + $0x34] sm:$0xf] }
 0x1b8   : > { %12112 = vst [vmem:[#allocation14_spill] sm:$0xff] %v10831_v57  ;;  %v10833_v55 = vpop.f32.mrb[3].mxu1  ;;  %v8148_v57 = vld [vmem:[%s9775_s23 + $0x30] sm:$0xf] }
 0x1b9   : > { %12113 = vst [vmem:[#allocation15_spill] sm:$0xff] %v10833_v55  ;;  %v11241_v55 = vld [vmem:[%s9775_s23 + $0xcc] sm:$0xff]  }
 0x1ba   : > { %7749 = vmatmul.mubr.msk.bf16.gmra.mrb[60].mxu1 %vm675_vm1, %v10827_v8 }
 0x1bb   : > { %8583 = vmatprep.mubr.msk.bf16.mxu1 %vm675_vm1, %v9810_v48  ;;  %v4194_v48 = vrot.slane %v7977_v7, 5 }
 0x1bc   : > { %8036 = vmatmul.mubr.msk.bf16.gmra.mrb[32].mxu0 %vm675_vm1, %v10835_v41 }
 0x1bd   : > { %v10847_v27 = vpop.f32.mrb[4].mxu1  ;;  %4480 = vmatprep.mubr.bf16.mxu0 %v12107_v49  ;;  %v4196_v42 = vrot.slane %v4194_v48, 4  ;;  %v4195_v59 = vsel %vm9786_vm6, %v8004_v9, %v4194_v48  ;;  %v7983_v48 = vld [vmem:[%s9775_s23 + $0xa0] sm:$0xf]  ;;  %v4205_v9 = vsel %vm9786_vm6, %v4203_v29, %v4204_v35 }
 0x1be   : > { %12114 = vst [vmem:[#allocation16_spill] sm:$0xff] %v10847_v27  ;;  %v10854_v45 = vpop.f32.mrb[5].mxu1 }
 0x1bf   : > { %12115 = vst [vmem:[#allocation17_spill] sm:$0xff] %v10854_v45  ;;  %v10858_v33 = vpop.f32.mrb[6].mxu1 }
 0x1c0   : > { %12116 = vst [vmem:[#allocation18_spill] sm:$0xff] %v10858_v33  ;;  %v10860_v17 = vpop.f32.mrb[7].mxu1  ;;  %v8146_v33 = vld [vmem:[%s9775_s23 + $0x28] sm:$0xf] }
 0x1c1   : > { %12117 = vst [vmem:[#allocation19_spill] sm:$0xff] %v10860_v17  ;;  %v11229_v17 = vld [vmem:[%s9775_s23 + $0xc0] sm:$0xff]  }
 0x1c2   : > { %8584 = vmatmul.mubr.msk.bf16.vlgmr.msra.gmra.mrb[64].mxu1 %vm675_vm1, %v9835_v14  ;;  %v4198_v14 = vsel %vm9786_vm6, %v4196_v42, %v4197_v47  ;;  %v4208_v42 = vrot.slane %v7983_v48, 5  ;;  %v7982_v47 = vld [vmem:[%s9775_s23 + $0x9c] sm:$0xe] }
 0x1c3   : > { %8616 = vmatpush3.bf16.msra.mxu1 %v2568_v12  ;;  %8587 = vmatprep.mubr.msk.bf16.mxu1 %vm675_vm1, %v9862_v51  ;;  %v7979_v51 = vld [vmem:[%s9775_s23 + $0x90] sm:$0xe]  ;;  %v10893_v61 = vcombine.low %v4195_v59, %v4198_v14 }
 0x1c4   : > { %8037 = vmatmul.mubr.msk.bf16.gmra.mrb[36].mxu0 %vm675_vm1, %v10864_v46  ;;  %9593 = vmatprep.subr.msk.bf16.mxu1 %vm724_vm0, %v10867_v54  ;;  %v8005_v16 = vrot.slane %v7979_v51, 9  ;;  %v8006_v51 = vrot.slane %v7982_v47, 9  ;;  %v4210_v21 = vrot.slane %v4208_v42, 4 }
 0x1c5   : > { %v10878_v4 = vpop.f32.mrb[8].mxu1  ;;  %4490 = vmatprep.mubr.bf16.mxu0 %v12107_v49 }
 0x1c6   : > { %12118 = vst [vmem:[#allocation20_spill] sm:$0xff] %v10878_v4  ;;  %v10885_v20 = vpop.f32.mrb[9].mxu1  ;;  %v4202_v12 = vsel %vm9786_vm6, %v8005_v16, %v4201_v44  ;;  %v7986_v44 = vld [vmem:[%s9775_s23 + $0xac] sm:$0xf]  ;;  %v4209_v29 = vsel %vm9786_vm6, %v8006_v51, %v4208_v42  ;;  %v8144_v4 = vld [vmem:[%s9775_s23 + $0x20] sm:$0x1] }
 0x1c7   : > { %12119 = vst [vmem:[#allocation21_spill] sm:$0xff] %v10885_v20  ;;  %v10889_v7 = vpop.f32.mrb[10].mxu1  ;;  %v10917_v14 = vcombine.low %v4202_v12, %v4205_v9  ;;  %v4215_v48 = vrot.slane %v7986_v44, 5  ;;  %v7985_v12 = vld [vmem:[%s9775_s23 + $0xa8] sm:$0xe] }
 0x1c8   : > { %12120 = vst [vmem:[#allocation22_spill] sm:$0xff] %v10889_v7  ;;  %v10891_v60 = vpop.f32.mrb[11].mxu1  ;;  %v7987_v9 = vld [vmem:[%s9775_s23 + $0xb0] sm:$0x1] }
 0x1c9   : > { %12121 = vst [vmem:[#allocation23_spill] sm:$0xff] %v10891_v60 }
 0x1ca   : > { %8588 = vmatmul.mubr.msk.bf16.gmra.mrb[68].mxu1 %vm675_vm1, %v9887_v40 }
 0x1cb   : > { %8591 = vmatprep.mubr.msk.bf16.mxu1 %vm675_vm1, %v9911_v11 }
 0x1cc   : > { %8038 = vmatmul.mubr.msk.bf16.gmra.mrb[40].mxu0 %vm675_vm1, %v10893_v61 }
 0x1cd   : > { %v10902_v30 = vpop.f32.mrb[12].mxu1  ;;  %4500 = vmatprep.mubr.bf16.mxu0 %v12107_v49 }
 0x1ce   : > { %12122 = vst [vmem:[#allocation24_spill] sm:$0xff] %v10902_v30  ;;  %v10909_v40 = vpop.f32.mrb[13].mxu1  ;;  %v4211_v30 = vrot.slane %v7984_v39, 5 }
 0x1cf   : > { %12123 = vst [vmem:[#allocation25_spill] sm:$0xff] %v10909_v40  ;;  %v10913_v11 = vpop.f32.mrb[14].mxu1 }
 0x1d0   : > { %12124 = vst [vmem:[#allocation26_spill] sm:$0xff] %v10913_v11  ;;  %v10915_v59 = vpop.f32.mrb[15].mxu1  ;;  %v4212_v35 = vsel %vm9786_vm6, %v4210_v21, %v4211_v30  ;;  %v4218_v11 = vrot.slane %v7987_v9, 5  ;;  %v7989_v30 = vld [vmem:[%s9775_s23 + $0xb8] sm:$0xf] }
 0x1d1   : > { %12125 = vst [vmem:[#allocation27_spill] sm:$0xff] %v10915_v59  ;;  %v10941_v39 = vcombine.low %v4209_v29, %v4212_v35  ;;  %v4217_v59 = vrot.slane %v4215_v48, 4  ;;  %v4222_v44 = vrot.slane %v7989_v30, 5  ;;  %v7988_v29 = vld [vmem:[%s9775_s23 + $0xb4] sm:$0xe] }
 0x1d2   : > { %8592 = vmatmul.mubr.msk.bf16.gmra.mrb[72].mxu1 %vm675_vm1, %v9938_v52  ;;  %v7990_v35 = vld [vmem:[%s9775_s23 + $0xbc] sm:$0x1] }
 0x1d3   : > { %8595 = vmatprep.mubr.msk.bf16.mxu1 %vm675_vm1, %v9967_v34  ;;  %v4219_v21 = vsel %vm9786_vm6, %v4217_v59, %v4218_v11  ;;  %v7992_v11 = vld [vmem:[%s9775_s23 + $0xc4] sm:$0xf] }
 0x1d4   : > { %8039 = vmatmul.mubr.msk.bf16.gmra.mrb[44].mxu0 %vm675_vm1, %v10917_v14  ;;  %v4229_v30 = vrot.slane %v7992_v11, 5 }
 0x1d5   : > { %v10926_v16 = vpop.f32.mrb[16].mxu1  ;;  %4510 = vmatprep.mubr.bf16.mxu0 %v12107_v49 }
 0x1d6   : > { %12126 = vst [vmem:[#allocation28_spill] sm:$0xff] %v10926_v16  ;;  %v10933_v52 = vpop.f32.mrb[17].mxu1  ;;  %v8007_v16 = vrot.slane %v7985_v12, 9 }
 0x1d7   : > { %12127 = vst [vmem:[#allocation29_spill] sm:$0xff] %v10933_v52  ;;  %v10937_v34 = vpop.f32.mrb[18].mxu1 }
 0x1d8   : > { %12128 = vst [vmem:[#allocation30_spill] sm:$0xff] %v10937_v34  ;;  %v10939_v47 = vpop.f32.mrb[19].mxu1  ;;  %v4216_v51 = vsel %vm9786_vm6, %v8007_v16, %v4215_v48  ;;  %v4225_v34 = vrot.slane %v7990_v35, 5 }
 0x1d9   : > { %12129 = vst [vmem:[#allocation31_spill] sm:$0xff] %v10939_v47  ;;  %v10965_v9 = vcombine.low %v4216_v51, %v4219_v21  ;;  %v4224_v47 = vrot.slane %v4222_v44, 4  ;;  %v7993_v21 = vld [vmem:[%s9775_s23 + $0xc8] sm:$0x1] }
 0x1da   : > { %8596 = vmatmul.mubr.msk.bf16.gmra.mrb[76].mxu1 %vm675_vm1, %v9995_v13 }
 0x1db   : > { %8599 = vmatprep.mubr.msk.bf16.mxu1 %vm675_vm1, %v10026_v56  ;;  %v4226_v48 = vsel %vm9786_vm6, %v4224_v47, %v4225_v34 }
 0x1dc   : > { %8040 = vmatmul.mubr.msk.bf16.gmra.mrb[48].mxu0 %vm675_vm1, %v10941_v39 }
 0x1dd   : > { %v10950_v42 = vpop.f32.mrb[20].mxu1  ;;  %4520 = vmatprep.mubr.bf16.mxu0 %v12107_v49 }
 0x1de   : > { %12130 = vst [vmem:[#allocation32_spill] sm:$0xff] %v10950_v42  ;;  %v10957_v13 = vpop.f32.mrb[21].mxu1  ;;  %v8008_v42 = vrot.slane %v7988_v29, 9 }
 0x1df   : > { %12131 = vst [vmem:[#allocation33_spill] sm:$0xff] %v10957_v13  ;;  %v10961_v56 = vpop.f32.mrb[22].mxu1 }
 0x1e0   : > { %12132 = vst [vmem:[#allocation34_spill] sm:$0xff] %v10961_v56  ;;  %v10963_v12 = vpop.f32.mrb[23].mxu1  ;;  %v4223_v16 = vsel %vm9786_vm6, %v8008_v42, %v4222_v44  ;;  %v4232_v56 = vrot.slane %v7993_v21, 5 }
 0x1e1   : > { %12133 = vst [vmem:[#allocation35_spill] sm:$0xff] %v10963_v12  ;;  %v10989_v35 = vcombine.low %v4223_v16, %v4226_v48  ;;  %v4231_v12 = vrot.slane %v4229_v30, 4  ;;  %v11028_v48 = vld [vmem:[%s9775_s23 + $0x18] sm:$0xff]  }
 0x1e2   : > { %8600 = vmatmul.mubr.msk.bf16.gmra.mrb[80].mxu1 %vm675_vm1, %v10053_v23  ;;  %v7991_v23 = vld [vmem:[%s9775_s23 + $0xc0] sm:$0xe] }
 0x1e3   : > { %8603 = vmatprep.mubr.msk.bf16.mxu1 %vm675_vm1, %v10082_v15  ;;  %v4233_v42 = vsel %vm9786_vm6, %v4231_v12, %v4232_v56 }
 0x1e4   : > { %8041 = vmatmul.mubr.msk.bf16.gmra.mrb[52].mxu0 %vm675_vm1, %v10965_v9 }
 0x1e5   : > { %v10974_v59 = vpop.f32.mrb[24].mxu1  ;;  %4530 = vmatprep.mubr.bf16.mxu0 %v12107_v49 }
 0x1e6   : > { %12134 = vst [vmem:[#allocation36_spill] sm:$0xff] %v10974_v59  ;;  %v10981_v51 = vpop.f32.mrb[25].mxu1  ;;  %v8009_v59 = vrot.slane %v7991_v23, 9 }
 0x1e7   : > { %12135 = vst [vmem:[#allocation37_spill] sm:$0xff] %v10981_v51  ;;  %v10985_v29 = vpop.f32.mrb[26].mxu1  ;;  %v12167_v51 = vld [vmem:[#allocation11_spill] sm:$0xff] }
 0x1e8   : > { %12136 = vst [vmem:[#allocation38_spill] sm:$0xff] %v10985_v29  ;;  %v10987_v15 = vpop.f32.mrb[27].mxu1  ;;  %v4230_v47 = vsel %vm9786_vm6, %v8009_v59, %v4229_v30  ;;  %v9695_v30 = vld [vmem:[%s12079_s1 + $0x1e] sm:$0x3f]  ;;  %v11218_v29 = vld [vmem:[%s9775_s23 + $0xb4] sm:$0xff]  }
 0x1e9   : > { %12137 = vst [vmem:[#allocation39_spill] sm:$0xff] %v10987_v15  ;;  %v11010_v11 = vcombine.low %v4230_v47, %v4233_v42  ;;  %v4285_v23 = vcombine.high %v9695_v30, %v9695_v30  ;;  %v11062_v30 = vld [vmem:[%s9775_s23 + $0x24] sm:$0xff]  }
 0x1ea   : > { %8604 = vmatmul.mubr.msk.bf16.gmra.mrb[84].mxu1 %vm675_vm1, %v10124_v5  ;;  %v12166_v15 = vld [vmem:[#allocation10_spill] sm:$0xff] }
 0x1eb   : > { %8607 = vmatprep.mubr.msk.bf16.mxu1 %vm675_vm1, %v10747_v37 }
 0x1ec   : > { %8042 = vmatmul.mubr.msk.bf16.gmra.mrb[56].mxu0 %vm675_vm1, %v10989_v35 }
 0x1ed   : > { %v10997_v34 = vpop.f32.mrb[28].mxu1  ;;  %4540 = vmatprep.mubr.bf16.mxu0 %v12107_v49 }
 0x1ee   : > { %12138 = vst [vmem:[#allocation40_spill] sm:$0xff] %v10997_v34  ;;  %v11004_v44 = vpop.f32.mrb[29].mxu1  ;;  %v12160_v34 = vld [vmem:[#allocation4_spill] sm:$0xff] }
 0x1ef   : > { %12139 = vst [vmem:[#allocation41_spill] sm:$0xff] %v11004_v44  ;;  %v11006_v5 = vpop.f32.mrb[30].mxu1  ;;  %v11171_v44 = vld [vmem:[%s9775_s23 + $0x84] sm:$0xff]  }
 0x1f0   : > { %12140 = vst [vmem:[#allocation42_spill] sm:$0xff] %v11006_v5  ;;  %v11008_v37 = vpop.f32.mrb[31].mxu1 }
 0x1f1   : > { %12141 = vst [vmem:[#allocation43_spill] sm:$0xff] %v11008_v37  ;;  %v12158_v37 = vld [vmem:[#allocation2_spill] sm:$0xff] }
 0x1f2   : > { %8608 = vmatmul.mubr.msk.bf16.gmra.mrb[88].mxu1 %vm675_vm1, %v10778_v28  ;;  %v5995_v28 = vsel %vm724_vm0, %v10668_v32, 0  ;;  %v11049_v32 = vld [vmem:[%s12079_s1 + $0x30] sm:$0x3f] }
 0x1f3   : > { %8611 = vmatprep.mubr.msk.bf16.mxu1 %vm675_vm1, %v10802_v22  ;;  %v9694_v22 = vld [vmem:[%s9775_s23 + $0xc] sm:$0xff]   ;;  %v11055_v42 = vrot.slane %v11049_v32, %v9768_v10 }
 0x1f4   : > { %8043 = vmatmul.mubr.msk.bf16.gmra.mrb[60].mxu0 %vm675_vm1, %v11010_v11 }
 0x1f5   : > { %v11018_v59 = vpop.f32.mrb[32].mxu1  ;;  %5029 = vmatprep.mubr.bf16.mxu0 %v12107_v49 }
 0x1f6   : > { %12142 = vst [vmem:[#allocation44_spill] sm:$0xff] %v11018_v59  ;;  %v11021_v56 = vpop.f32.mrb[33].mxu1  ;;  %v9709_v59 = vld [vmem:[%s9775_s23 + $0xb4] sm:$0xff]  }
 0x1f7   : > { %12143 = vst [vmem:[#allocation45_spill] sm:$0xff] %v11021_v56  ;;  %v11023_v12 = vpop.f32.mrb[34].mxu1  ;;  %v9707_v56 = vld [vmem:[%s9775_s23 + $0x9c] sm:$0xff]  }
 0x1f8   : > { %12144 = vst [vmem:[#allocation46_spill] sm:$0xff] %v11023_v12  ;;  %v11025_v16 = vpop.f32.mrb[35].mxu1  ;;  %v9700_v12 = vld [vmem:[%s9775_s23 + $0x48] sm:$0xff]  }
 0x1f9   : > { %12145 = vst [vmem:[#allocation47_spill] sm:$0xff] %v11025_v16  ;;  %v9697_v16 = vld [vmem:[%s9775_s23 + $0x24] sm:$0xff]  }
 0x1fa   : > { %8612 = vmatmul.mubr.msk.bf16.gmra.mrb[92].mxu1 %vm675_vm1, %v10827_v8 }
 0x1fb   : > { %8617 = vmatprep.mubr.msk.bf16.mxu1 %vm675_vm1, %v9694_v22 }
 0x1fc   : > { %8110 = vmatmul.mubr.msk.bf16.vlgmr.msra.gmra.mrb[0].mxu0 %vm675_vm1, %v11028_v48 }
 0x1fd   : > { %v11041_v21 = vpop.f32.mrb[36].mxu1  ;;  %6004 = vmatpush1.bf16.msra.mxu0 %v5995_v28  ;;  %5039 = vmatprep.mubr.bf16.mxu0 %v12107_v49  ;;  %v3574_v28 = vsel %vm724_vm0, %v10867_v54, 0 }
 0x1fe   : > { %12146 = vst [vmem:[#allocation48_spill] sm:$0xff] %v11041_v21  ;;  %v11044_v8 = vpop.f32.mrb[37].mxu1  ;;  %v6727_v21 = vcombine.high %v11055_v42, %v11055_v42 }
 0x1ff   : > { %12147 = vst [vmem:[#allocation49_spill] sm:$0xff] %v11044_v8  ;;  %v11051_v47 = vpop.f32.mrb[38].mxu1  ;;  %v11065_v8 = vrot.slane %v4285_v23, %v9768_v10 }
 0x200   : > { %12148 = vst [vmem:[#allocation50_spill] sm:$0xff] %v11051_v47  ;;  %v11057_v22 = vpop.f32.mrb[39].mxu1  ;;  %v9696_v47 = vld [vmem:[%s9775_s23 + $0x18] sm:$0xff]   ;;  %8321 = vmatprep.subr.msk.bf16.mxu0 %vm724_vm0, %v6727_v21 }
 0x201   : > { %12149 = vst [vmem:[#allocation51_spill] sm:$0xff] %v11057_v22  ;;  %v9698_v22 = vld [vmem:[%s9775_s23 + $0x30] sm:$0xff]   ;;  %v4356_v5 = vsel %vm724_vm0, %v11065_v8, 0 }
 0x202   : > { %8618 = vmatmul.mubr.msk.bf16.vlgmr.msra.gmra.mrb[64].mxu1 %vm675_vm1, %v9696_v47 }
 0x203   : > { %8650 = vmatpush3.bf16.msra.mxu1 %v3574_v28  ;;  %8621 = vmatprep.mubr.msk.bf16.mxu1 %vm675_vm1, %v9697_v16  ;;  %v11088_v28 = vld [vmem:[%s9775_s23 + $0x30] sm:$0xff]  }
 0x204   : > { %8111 = vmatmul.mubr.msk.bf16.gmra.mrb[4].mxu0 %vm675_vm1, %v11062_v30  ;;  %9594 = vmatprep.subr.msk.bf16.mxu1 %vm724_vm0, %v11065_v8  ;;  %v11186_v8 = vld [vmem:[%s9775_s23 + $0x90] sm:$0xff]  }
 0x205   : > { %v11077_v54 = vpop.f32.mrb[40].mxu1  ;;  %5049 = vmatprep.mubr.bf16.mxu0 %v12107_v49 }
 0x206   : > { %12150 = vst [vmem:[#allocation52_spill] sm:$0xff] %v11077_v54  ;;  %v11081_v23 = vpop.f32.mrb[41].mxu1  ;;  %v9699_v54 = vld [vmem:[%s9775_s23 + $0x3c] sm:$0xff]  }
 0x207   : > { %12151 = vst [vmem:[#allocation53_spill] sm:$0xff] %v11081_v23  ;;  %v11083_v47 = vpop.f32.mrb[42].mxu1 }
 0x208   : > { %12152 = vst [vmem:[#allocation54_spill] sm:$0xff] %v11083_v47  ;;  %v11085_v16 = vpop.f32.mrb[43].mxu1 }
 0x209   : > { %12153 = vst [vmem:[#allocation55_spill] sm:$0xff] %v11085_v16 }
 0x20a   : > { %8622 = vmatmul.mubr.msk.bf16.gmra.mrb[68].mxu1 %vm675_vm1, %v9698_v22  ;;  %v11106_v22 = vld [vmem:[%s9775_s23 + $0x3c] sm:$0xff]  }
 0x20b   : > { %8625 = vmatprep.mubr.msk.bf16.mxu1 %vm675_vm1, %v9699_v54  ;;  %v9701_v54 = vld [vmem:[%s9775_s23 + $0x54] sm:$0xff]  }
 0x20c   : > { %8112 = vmatmul.mubr.msk.bf16.gmra.mrb[8].mxu0 %vm675_vm1, %v11088_v28 }
 0x20d   : > { %v11096_v21 = vpop.f32.mrb[44].mxu1  ;;  %5059 = vmatprep.mubr.bf16.mxu0 %v12107_v49 }
 0x20e   : > { %12154 = vst [vmem:[#allocation56_spill] sm:$0xff] %v11096_v21  ;;  %v11099_v47 = vpop.f32.mrb[45].mxu1  ;;  %v9705_v21 = vld [vmem:[%s9775_s23 + $0x84] sm:$0xff]  }
 0x20f   : > { %12155 = vst [vmem:[#allocation57_spill] sm:$0xff] %v11099_v47  ;;  %v11101_v16 = vpop.f32.mrb[46].mxu1  ;;  %v9703_v47 = vld [vmem:[%s9775_s23 + $0x6c] sm:$0xff]  }
 0x210   : > { %12156 = vst [vmem:[#allocation58_spill] sm:$0xff] %v11101_v16  ;;  %v11103_v23 = vpop.f32.mrb[47].mxu1  ;;  %v11116_v16 = vld [vmem:[%s9775_s23 + $0x48] sm:$0xff]  }
 0x211   : > { %12157 = vst [vmem:[#allocation59_spill] sm:$0xff] %v11103_v23  ;;  %v9702_v23 = vld [vmem:[%s9775_s23 + $0x60] sm:$0xff]  }
 0x212   : > { %8626 = vmatmul.mubr.msk.bf16.gmra.mrb[72].mxu1 %vm675_vm1, %v9700_v12  ;;  %v11126_v12 = vld [vmem:[%s9775_s23 + $0x54] sm:$0xff]  }
 0x213   : > { %8629 = vmatprep.mubr.msk.bf16.mxu1 %vm675_vm1, %v9701_v54  ;;  %v9704_v54 = vld [vmem:[%s9775_s23 + $0x78] sm:$0xff]  }
 0x214   : > { %8113 = vmatmul.mubr.msk.bf16.gmra.mrb[12].mxu0 %vm675_vm1, %v11106_v22 }
 0x215   : > { %5069 = vmatprep.mubr.bf16.mxu0 %v12107_v49 }
 0x21a   : > { %8630 = vmatmul.mubr.msk.bf16.gmra.mrb[76].mxu1 %vm675_vm1, %v9702_v23  ;;  %v11136_v23 = vld [vmem:[%s9775_s23 + $0x60] sm:$0xff]  }
 0x21b   : > { %8633 = vmatprep.mubr.msk.bf16.mxu1 %vm675_vm1, %v9703_v47  ;;  %v9706_v47 = vld [vmem:[%s9775_s23 + $0x90] sm:$0xff]  }
 0x21c   : > { %8114 = vmatmul.mubr.msk.bf16.gmra.mrb[16].mxu0 %vm675_vm1, %v11116_v16 }
 0x21d   : > { %5079 = vmatprep.mubr.bf16.mxu0 %v12107_v49 }
 0x222   : > { %8634 = vmatmul.mubr.msk.bf16.gmra.mrb[80].mxu1 %vm675_vm1, %v9704_v54  ;;  %v9708_v54 = vld [vmem:[%s9775_s23 + $0xa8] sm:$0xff]  }
 0x223   : > { %8637 = vmatprep.mubr.msk.bf16.mxu1 %vm675_vm1, %v9705_v21  ;;  %v11146_v21 = vld [vmem:[%s9775_s23 + $0x6c] sm:$0xff]  }
 0x224   : > { %8115 = vmatmul.mubr.msk.bf16.gmra.mrb[20].mxu0 %vm675_vm1, %v11126_v12 }
 0x225   : > { %5089 = vmatprep.mubr.bf16.mxu0 %v12107_v49 }
 0x22a   : > { %8638 = vmatmul.mubr.msk.bf16.gmra.mrb[84].mxu1 %vm675_vm1, %v9706_v47  ;;  %v9710_v47 = vld [vmem:[%s9775_s23 + $0xc0] sm:$0xff]  }
 0x22b   : > { %8641 = vmatprep.mubr.msk.bf16.mxu1 %vm675_vm1, %v9707_v56  ;;  %v11156_v56 = vld [vmem:[%s9775_s23 + $0x78] sm:$0xff]  }
 0x22c   : > { %8116 = vmatmul.mubr.msk.bf16.gmra.mrb[24].mxu0 %vm675_vm1, %v11136_v23 }
 0x22d   : > { %5099 = vmatprep.mubr.bf16.mxu0 %v12107_v49 }
 0x232   : > { %8642 = vmatmul.mubr.msk.bf16.gmra.mrb[88].mxu1 %vm675_vm1, %v9708_v54 }
 0x233   : > { %8645 = vmatprep.mubr.msk.bf16.mxu1 %vm675_vm1, %v9709_v59  ;;  %v9711_v59 = vld [vmem:[%s12079_s1 + $0x24] sm:$0x3f] }
 0x234   : > { %8117 = vmatmul.mubr.msk.bf16.gmra.mrb[28].mxu0 %vm675_vm1, %v11146_v21  ;;  %v4924_v54 = vcombine.high %v9711_v59, %v9711_v59  ;;  %v12161_v59 = vld [vmem:[#allocation5_spill] sm:$0xff] }
 0x235   : > { %5109 = vmatprep.mubr.bf16.mxu0 %v12107_v49 }
 0x23a   : > { %8646 = vmatmul.mubr.msk.bf16.gmra.mrb[92].mxu1 %vm675_vm1, %v9710_v47  ;;  %v11174_v47 = vrot.slane %v4924_v54, %v9768_v10  ;;  %v12162_v54 = vld [vmem:[#allocation6_spill] sm:$0xff] }
 0x23b   : > { %8651 = vmatprep.mubr.msk.bf16.mxu1 %vm675_vm1, %v12158_v37  ;;  %v12159_v37 = vld [vmem:[#allocation3_spill] sm:$0xff] }
 0x23c   : > { %8118 = vmatmul.mubr.msk.bf16.gmra.mrb[32].mxu0 %vm675_vm1, %v11156_v56 }
 0x23d   : > { %5119 = vmatprep.mubr.bf16.mxu0 %v12107_v49 }
 0x242   : > { %8652 = vmatmul.mubr.msk.bf16.vlgmr.msra.gmra.mrb[64].mxu1 %vm675_vm1, %v12159_v37  ;;  %v12164_v37 = vld [vmem:[#allocation8_spill] sm:$0xff] }
 0x243   : > { %8684 = vmatpush3.bf16.msra.mxu1 %v4356_v5  ;;  %8655 = vmatprep.mubr.msk.bf16.mxu1 %vm675_vm1, %v12160_v34  ;;  %v11196_v34 = vld [vmem:[%s9775_s23 + $0x9c] sm:$0xff]   ;;  %v12163_v5 = vld [vmem:[#allocation7_spill] sm:$0xff] }
 0x244   : > { %8119 = vmatmul.mubr.msk.bf16.gmra.mrb[36].mxu0 %vm675_vm1, %v11171_v44  ;;  %9595 = vmatprep.subr.msk.bf16.mxu1 %vm724_vm0, %v11174_v47 }
 0x245   : > { %5129 = vmatprep.mubr.bf16.mxu0 %v12107_v49 }
 0x24a   : > { %8656 = vmatmul.mubr.msk.bf16.gmra.mrb[68].mxu1 %vm675_vm1, %v12161_v59  ;;  %v11206_v59 = vld [vmem:[%s9775_s23 + $0xa8] sm:$0xff]  }
 0x24b   : > { %8659 = vmatprep.mubr.msk.bf16.mxu1 %vm675_vm1, %v12162_v54  ;;  %v12165_v54 = vld [vmem:[#allocation9_spill] sm:$0xff] }
 0x24c   : > { %8120 = vmatmul.mubr.msk.bf16.gmra.mrb[40].mxu0 %vm675_vm1, %v11186_v8 }
 0x24d   : > { %5139 = vmatprep.mubr.bf16.mxu0 %v12107_v49 }
 0x252   : > { %8660 = vmatmul.mubr.msk.bf16.gmra.mrb[72].mxu1 %vm675_vm1, %v12163_v5  ;;  %v8142_v5 = vld [vmem:[%s9775_s23 + $0x18] sm:$0xf] }
 0x253   : > { %8663 = vmatprep.mubr.msk.bf16.mxu1 %vm675_vm1, %v12164_v37  ;;  %v8143_v37 = vld [vmem:[%s9775_s23 + $0x1c] sm:$0xf]  ;;  %v5499_v13 = vshll.u32 %v8142_v5, 16 }
 0x254   : > { %8121 = vmatmul.mubr.msk.bf16.gmra.mrb[44].mxu0 %vm675_vm1, %v11196_v34  ;;  %v5505_v52 = vshll.u32 %v8143_v37, 16 }
 0x255   : > { %5149 = vmatprep.mubr.bf16.mxu0 %v12107_v49  ;;  %v5501_v60 = vrot.slane %v5499_v13, 5 }
 0x256   : > { %v5507_v7 = vrot.slane %v5505_v52, 5 }
 0x25a   : > { %8664 = vmatmul.mubr.msk.bf16.gmra.mrb[76].mxu1 %vm675_vm1, %v12165_v54  ;;  %v5496_v54 = vshrl.u32 %v8142_v5, 16 }
 0x25b   : > { %8667 = vmatprep.mubr.msk.bf16.mxu1 %vm675_vm1, %v12166_v15  ;;  %v5509_v15 = vshrl.u32 %v8143_v37, 16 }
 0x25c   : > { %8122 = vmatmul.mubr.msk.bf16.gmra.mrb[48].mxu0 %vm675_vm1, %v11206_v59  ;;  %v5498_v40 = vrot.slane %v5496_v54, 4  ;;  %v5529_v54 = vshll.u32 %v8146_v33, 16 }
 0x25d   : > { %5159 = vmatprep.mubr.bf16.mxu0 %v12107_v49  ;;  %v5511_v20 = vrot.slane %v5509_v15, 4  ;;  %v5533_v15 = vshrl.u32 %v8146_v33, 16 }
 0x25e   : > { %v5502_v5 = vor.u32 %v5501_v60, %v5498_v40  ;;  %v5531_v45 = vrot.slane %v5529_v54, 5  ;;  %v5553_v54 = vshll.u32 %v8149_v50, 16 }
 0x25f   : > { %v5512_v37 = vor.u32 %v5511_v20, %v5507_v7  ;;  %v5535_v27 = vrot.slane %v5533_v15, 4 }
 0x261   : > { %v5513_v60 = vrot.slane %v5512_v37, 4  ;;  %v5536_v37 = vor.u32 %v5535_v27, %v5531_v45 }
 0x262   : > { %8668 = vmatmul.mubr.msk.bf16.gmra.mrb[80].mxu1 %vm675_vm1, %v12167_v51  ;;  %v8145_v51 = vld [vmem:[%s9775_s23 + $0x24] sm:$0xf] }
 0x263   : > { %8671 = vmatprep.mubr.msk.bf16.mxu1 %vm675_vm1, %v10535_v1  ;;  %v5515_v1 = vshll.u32 %v8144_v4, 16  ;;  %v5520_v13 = vshrl.u32 %v8145_v51, 16  ;;  %v5523_v52 = vshll.u32 %v8145_v51, 16 }
 0x264   : > { %8123 = vmatmul.mubr.msk.bf16.gmra.mrb[52].mxu0 %vm675_vm1, %v11218_v29 }
 0x265   : > { %5169 = vmatprep.mubr.bf16.mxu0 %v12107_v49  ;;  %v5517_v20 = vrot.slane %v5515_v1, 5  ;;  %v5522_v40 = vrot.slane %v5520_v13, 4  ;;  %v5525_v4 = vrot.slane %v5523_v52, 5  ;;  %v5544_v13 = vshrl.u32 %v8148_v57, 16 }
 0x266   : > { %v5547_v52 = vshll.u32 %v8148_v57, 16 }
 0x267   : > { %v5518_v51 = vsel %vm9815_vm7, %v5513_v60, %v5517_v20  ;;  %v5537_v60 = vrot.slane %v5536_v37, 4  ;;  %v5546_v57 = vrot.slane %v5544_v13, 4 }
 0x26a   : > { %8672 = vmatmul.mubr.msk.bf16.gmra.mrb[84].mxu1 %vm675_vm1, %v10553_v38  ;;  %v5503_v38 = vrot.slane %v5502_v5, 4  ;;  %v5526_v5 = vor.u32 %v5525_v4, %v5522_v40  ;;  %v5549_v4 = vrot.slane %v5547_v52, 5 }
 0x26b   : > { %8675 = vmatprep.mubr.msk.bf16.mxu1 %vm675_vm1, %v10572_v63  ;;  %v8147_v63 = vld [vmem:[%s9775_s23 + $0x2c] sm:$0x1] }
 0x26c   : > { %8124 = vmatmul.mubr.msk.bf16.gmra.mrb[56].mxu0 %vm675_vm1, %v11229_v17  ;;  %v5508_v33 = vsel %vm9815_vm7, %v5503_v38, %v5507_v7  ;;  %v5539_v1 = vshll.u32 %v8147_v63, 16  ;;  %v5527_v38 = vrot.slane %v5526_v5, 4  ;;  %v5550_v37 = vor.u32 %v5549_v4, %v5546_v57 }
 0x26d   : > { %5179 = vmatprep.mubr.bf16.mxu0 %v12107_v49  ;;  %v11263_v27 = vcombine.low %v5508_v33, %v5518_v51  ;;  %v8152_v33 = vld [vmem:[%s9775_s23 + $0x40] sm:$0xf] }
 0x26e   : > { %v5541_v20 = vrot.slane %v5539_v1, 5  ;;  %v5532_v51 = vsel %vm9815_vm7, %v5527_v38, %v5531_v45  ;;  %v5930_v1 = vcombine.high %v10664_v25, %v10664_v25  ;;  %v5577_v52 = vshll.u32 %v8152_v33, 16  ;;  %v8154_v25 = vld [vmem:[%s9775_s23 + $0x48] sm:$0xf] }
 0x270   : > { %v5542_v5 = vsel %vm9815_vm7, %v5537_v60, %v5541_v20  ;;  %v8155_v20 = vld [vmem:[%s9775_s23 + $0x4c] sm:$0xf] }
 0x271   : > { %v11296_v60 = vcombine.low %v5532_v51, %v5542_v5  ;;  %v5592_v51 = vshrl.u32 %v8154_v25, 16  ;;  %v5595_v5 = vshll.u32 %v8154_v25, 16  ;;  %v5605_v36 = vshrl.u32 %v8155_v20, 16  ;;  %v8156_v25 = vld [vmem:[%s9775_s23 + $0x50] sm:$0x1] }
 0x272   : > { %8676 = vmatmul.mubr.msk.bf16.gmra.mrb[88].mxu1 %vm675_vm1, %v10591_v58  ;;  %v5557_v58 = vshrl.u32 %v8149_v50, 16  ;;  %v11267_v50 = vrot.slane %v5553_v54, 5  ;;  %v5581_v54 = vshrl.u32 %v8152_v33, 16 }
 0x273   : > { %8679 = vmatprep.mubr.msk.bf16.mxu1 %vm675_vm1, %v10611_v24  ;;  %12175 = vst [vmem:[#allocation9_spill] sm:$0xff] %v11296_v60 }
 0x274   : > { %8125 = vmatmul.mubr.msk.bf16.gmra.mrb[60].mxu0 %vm675_vm1, %v11241_v55  ;;  %v5559_v63 = vrot.slane %v5557_v58, 4 }
 0x275   : > { %v11256_v15 = vpop.f32.mrb[48].mxu1  ;;  %6035 = vmatprep.mubr.bf16.mxu0 %v12107_v49 }
 0x276   : > { %12168 = vst [vmem:[#allocation2_spill] sm:$0xff] %v11256_v15  ;;  %v11259_v24 = vpop.f32.mrb[49].mxu1  ;;  %v8150_v15 = vld [vmem:[%s9775_s23 + $0x38] sm:$0x1] }
 0x277   : > { %12169 = vst [vmem:[#allocation3_spill] sm:$0xff] %v11259_v24  ;;  %v11261_v7 = vpop.f32.mrb[50].mxu1  ;;  %v6777_v24 = vsel %vm724_vm0, %v11055_v42, 0  ;;  %v5563_v42 = vshll.u32 %v8150_v15, 16  ;;  %v4995_v15 = vsel %vm724_vm0, %v11174_v47, 0 }
 0x278   : > { %12170 = vst [vmem:[#allocation4_spill] sm:$0xff] %v11261_v7  ;;  %v11265_v40 = vpop.f32.mrb[51].mxu1  ;;  %v8151_v7 = vld [vmem:[%s9775_s23 + $0x3c] sm:$0xf]  ;;  %v8153_v47 = vld [vmem:[%s9775_s23 + $0x44] sm:$0x1] }
 0x279   : > { %12171 = vst [vmem:[#allocation5_spill] sm:$0xff] %v11265_v40  ;;  %v5571_v45 = vshll.u32 %v8151_v7, 16  ;;  %v5583_v40 = vrot.slane %v5581_v54, 4  ;;  %v5607_v54 = vrot.slane %v5605_v36, 4 }
 0x27a   : > { %8680 = vmatmul.mubr.msk.bf16.gmra.mrb[92].mxu1 %vm675_vm1, %v10627_v31  ;;  %v5560_v31 = vor.u32 %v5559_v63, %v11267_v50  ;;  %v5565_v63 = vrot.slane %v5563_v42, 5 }
 0x27b   : > { %8685 = vmatprep.mubr.msk.bf16.mxu1 %vm675_vm1, %v10643_v62  ;;  %v5568_v62 = vshrl.u32 %v8151_v7, 16  ;;  %v11303_v7 = vrot.slane %v5930_v1, %v9768_v10  ;;  %v5587_v1 = vshll.u32 %v8153_v47, 16 }
 0x27c   : > { %8208 = vmatmul.mubr.msk.bf16.vlgmr.msra.gmra.mrb[0].mxu0 %vm675_vm1, %v11263_v27  ;;  %v5561_v4 = vrot.slane %v5560_v31, 4 }
 0x27d   : > { %v11287_v13 = vpop.f32.mrb[52].mxu1  ;;  %6786 = vmatpush1.bf16.msra.mxu0 %v6777_v24  ;;  %6045 = vmatprep.mubr.bf16.mxu0 %v12107_v49  ;;  %v5551_v24 = vrot.slane %v5550_v37, 4  ;;  %v5570_v33 = vrot.slane %v5568_v62, 4 }
 0x27e   : > { %12172 = vst [vmem:[#allocation6_spill] sm:$0xff] %v11287_v13  ;;  %v11290_v58 = vpop.f32.mrb[53].mxu1  ;;  %v5579_v13 = vrot.slane %v5577_v52, 5  ;;  %v5597_v52 = vrot.slane %v5595_v5, 5 }
 0x27f   : > { %12173 = vst [vmem:[#allocation7_spill] sm:$0xff] %v11290_v58  ;;  %v11292_v38 = vpop.f32.mrb[54].mxu1  ;;  %v5573_v58 = vrot.slane %v5571_v45, 5  ;;  %v5556_v37 = vsel %vm9815_vm7, %v5551_v24, %v11267_v50  ;;  %v5594_v45 = vrot.slane %v5592_v51, 4 }
 0x280   : > { %12174 = vst [vmem:[#allocation8_spill] sm:$0xff] %v11292_v38  ;;  %v11300_v57 = vpop.f32.mrb[55].mxu1  ;;  %v5601_v38 = vshll.u32 %v8155_v20, 16  ;;  %v5584_v42 = vor.u32 %v5583_v40, %v5579_v13 }
 0x281   : > { %12176 = vst [vmem:[#allocation10_spill] sm:$0xff] %v11300_v57  ;;  %v5574_v31 = vor.u32 %v5573_v58, %v5570_v33  ;;  %v8158_v57 = vld [vmem:[%s9775_s23 + $0x58] sm:$0xf]  ;;  %v5589_v58 = vrot.slane %v5587_v1, 5  ;;  %v5598_v40 = vor.u32 %v5597_v52, %v5594_v45  ;;  %v5611_v33 = vshll.u32 %v8156_v25, 16 }
 0x282   : > { %8686 = vmatmul.mubr.msk.bf16.vlgmr.msra.gmra.mrb[64].mxu1 %vm675_vm1, %v10670_v6  ;;  %v5603_v50 = vrot.slane %v5601_v38, 5  ;;  %v5625_v47 = vshll.u32 %v8158_v57, 16  ;;  %v5629_v51 = vshrl.u32 %v8158_v57, 16 }
 0x283   : > { %8718 = vmatpush3.bf16.msra.mxu1 %v4995_v15  ;;  %8689 = vmatprep.mubr.msk.bf16.mxu1 %vm675_vm1, %v10689_v18  ;;  %v5566_v18 = vsel %vm9815_vm7, %v5561_v4, %v5565_v63  ;;  %v5585_v4 = vrot.slane %v5584_v42, 4 }
 0x284   : > { %8209 = vmatmul.mubr.msk.bf16.gmra.mrb[4].mxu0 %vm675_vm1, %v11296_v60  ;;  %9596 = vmatprep.subr.msk.bf16.mxu1 %vm724_vm0, %v11303_v7  ;;  %v11329_v24 = vcombine.low %v5556_v37, %v5566_v18  ;;  %v5575_v60 = vrot.slane %v5574_v31, 4  ;;  %v5608_v63 = vor.u32 %v5607_v54, %v5603_v50  ;;  %v5613_v18 = vrot.slane %v5611_v33, 5 }
 0x285   : > { %v11317_v6 = vpop.f32.mrb[56].mxu1  ;;  %6055 = vmatprep.mubr.bf16.mxu0 %v12107_v49  ;;  %v5627_v45 = vrot.slane %v5625_v47, 5  ;;  %v5631_v52 = vrot.slane %v5629_v51, 4 }
 0x286   : > { %12177 = vst [vmem:[#allocation11_spill] sm:$0xff] %v11317_v6  ;;  %v11322_v62 = vpop.f32.mrb[57].mxu1  ;;  %v8157_v6 = vld [vmem:[%s9775_s23 + $0x54] sm:$0xf]  ;;  %v5609_v57 = vrot.slane %v5608_v63, 4 }
 0x287   : > { %v11324_v15 = vpop.f32.mrb[58].mxu1  ;;  %v5616_v36 = vshrl.u32 %v8157_v6, 16  ;;  %v5619_v38 = vshll.u32 %v8157_v6, 16  ;;  %v5599_v6 = vrot.slane %v5598_v40, 4  ;;  %v5632_v63 = vor.u32 %v5631_v52, %v5627_v45 }
 0x288   : > { %v11327_v20 = vpop.f32.mrb[59].mxu1 }
 0x289   : > { %v5618_v42 = vrot.slane %v5616_v36, 4  ;;  %v5621_v1 = vrot.slane %v5619_v38, 5  ;;  %v5633_v51 = vrot.slane %v5632_v63, 4 }
 0x28a   : > { %8690 = vmatmul.mubr.msk.bf16.gmra.mrb[68].mxu1 %vm675_vm1, %v10705_v43  ;;  %v5580_v43 = vsel %vm9815_vm7, %v5575_v60, %v5579_v13  ;;  %v8160_v13 = vld [vmem:[%s9775_s23 + $0x60] sm:$0xf]  ;;  %v8161_v60 = vld [vmem:[%s9775_s23 + $0x64] sm:$0xf] }
 0x28b   : > { %8693 = vmatprep.mubr.msk.bf16.mxu1 %vm675_vm1, %v10724_v26  ;;  %v5590_v26 = vsel %vm9815_vm7, %v5585_v4, %v5589_v58  ;;  %v5604_v4 = vsel %vm9815_vm7, %v5599_v6, %v5603_v50  ;;  %v5614_v58 = vsel %vm9815_vm7, %v5609_v57, %v5613_v18  ;;  %v5622_v40 = vor.u32 %v5621_v1, %v5618_v42  ;;  %v8162_v18 = vld [vmem:[%s9775_s23 + $0x68] sm:$0x1]  ;;  %v8163_v42 = vld [vmem:[%s9775_s23 + $0x6c] sm:$0xf]  ;;  %v8164_v1 = vld [vmem:[%s9775_s23 + $0x70] sm:$0xf] }
 0x28c   : > { %8210 = vmatmul.mubr.msk.bf16.gmra.mrb[8].mxu0 %vm675_vm1, %v11329_v24  ;;  %v11352_v25 = vcombine.low %v5580_v43, %v5590_v26  ;;  %v5640_v36 = vshrl.u32 %v8160_v13, 16  ;;  %v5649_v38 = vshll.u32 %v8161_v60, 16  ;;  %v5653_v47 = vshrl.u32 %v8161_v60, 16 }
 0x28d   : > { %v11339_v5 = vpop.f32.mrb[60].mxu1  ;;  %6065 = vmatprep.mubr.bf16.mxu0 %v12107_v49  ;;  %v11368_v50 = vcombine.low %v5604_v4, %v5614_v58  ;;  %v5659_v58 = vshll.u32 %v8162_v18, 16  ;;  %v5673_v63 = vshll.u32 %v8164_v1, 16 }
 0x28e   : > { %12178 = vst [vmem:[#allocation60_spill] sm:$0xff] %v11339_v5  ;;  %v11346_v37 = vpop.f32.mrb[61].mxu1  ;;  %v8159_v5 = vld [vmem:[%s9775_s23 + $0x5c] sm:$0x1]  ;;  %v5642_v26 = vrot.slane %v5640_v36, 4  ;;  %v5651_v57 = vrot.slane %v5649_v38, 5 }
 0x28f   : > { %v11348_v31 = vpop.f32.mrb[62].mxu1  ;;  %v5635_v33 = vshll.u32 %v8159_v5, 16  ;;  %v5655_v5 = vrot.slane %v5653_v47, 4  ;;  %v8167_v36 = vld [vmem:[%s9775_s23 + $0x7c] sm:$0xf]  ;;  %v5661_v47 = vrot.slane %v5659_v58, 5 }
 0x290   : > { %12179 = vst [vmem:[#allocation61_spill] sm:$0xff] %v11348_v31  ;;  %v11350_v54 = vpop.f32.mrb[63].mxu1  ;;  %v5697_v18 = vshll.u32 %v8167_v36, 16 }
 0x291   : > { %12180 = vst [vmem:[#allocation62_spill] sm:$0xff] %v11350_v54  ;;  %v5637_v43 = vrot.slane %v5635_v33, 5  ;;  %v5656_v4 = vor.u32 %v5655_v5, %v5651_v57  ;;  %v5677_v33 = vshrl.u32 %v8164_v1, 16 }
 0x292   : > { %8694 = vmatmul.mubr.msk.bf16.gmra.mrb[72].mxu1 %vm675_vm1, %v10753_v0  ;;  %v5643_v0 = vshll.u32 %v8160_v13, 16 }
 0x293   : > { %8697 = vmatprep.mubr.msk.bf16.mxu1 %vm675_vm1, %v10782_v2  ;;  %v5623_v2 = vrot.slane %v5622_v40, 4  ;;  %v5638_v13 = vsel %vm9815_vm7, %v5633_v51, %v5637_v43  ;;  %v5667_v40 = vshll.u32 %v8163_v42, 16  ;;  %v5657_v38 = vrot.slane %v5656_v4, 4 }
 0x294   : > { %8211 = vmatmul.mubr.msk.bf16.gmra.mrb[12].mxu0 %vm675_vm1, %v11352_v25  ;;  %v5645_v6 = vrot.slane %v5643_v0, 5  ;;  %v5675_v51 = vrot.slane %v5673_v63, 5  ;;  %v5679_v43 = vrot.slane %v5677_v33, 4  ;;  %v8168_v63 = vld [vmem:[%s9775_s23 + $0x80] sm:$0x1] }
 0x295   : > { %6075 = vmatprep.mubr.bf16.mxu0 %v12107_v49  ;;  %v5628_v52 = vsel %vm9815_vm7, %v5623_v2, %v5627_v45  ;;  %v5669_v54 = vrot.slane %v5667_v40, 5  ;;  %v8169_v33 = vld [vmem:[%s9775_s23 + $0x84] sm:$0xf] }
 0x296   : > { %v5646_v60 = vor.u32 %v5645_v6, %v5642_v26  ;;  %v11386_v0 = vcombine.low %v5628_v52, %v5638_v13  ;;  %v8165_v26 = vld [vmem:[%s9775_s23 + $0x74] sm:$0x1]  ;;  %v5680_v13 = vor.u32 %v5679_v43, %v5675_v51 }
 0x298   : > { %v5647_v45 = vrot.slane %v5646_v60, 4  ;;  %v5683_v60 = vshll.u32 %v8165_v26, 16  ;;  %v5681_v31 = vrot.slane %v5680_v13, 4 }
 0x29a   : > { %8698 = vmatmul.mubr.msk.bf16.gmra.mrb[76].mxu1 %vm675_vm1, %v10806_v3  ;;  %v5664_v3 = vshrl.u32 %v8163_v42, 16  ;;  %v5701_v42 = vshrl.u32 %v8167_v36, 16  ;;  %v5652_v1 = vsel %vm9815_vm7, %v5647_v45, %v5651_v57  ;;  %v5685_v57 = vrot.slane %v5683_v60, 5  ;;  %v8171_v60 = vld [vmem:[%s9775_s23 + $0x8c] sm:$0x1] }
 0x29b   : > { %8701 = vmatprep.mubr.msk.bf16.mxu1 %vm675_vm1, %v10835_v41  ;;  %v8166_v41 = vld [vmem:[%s9775_s23 + $0x78] sm:$0xf] }
 0x29c   : > { %8212 = vmatmul.mubr.msk.bf16.gmra.mrb[16].mxu0 %vm675_vm1, %v11368_v50  ;;  %v5666_v2 = vrot.slane %v5664_v3, 4  ;;  %v5688_v6 = vshrl.u32 %v8166_v41, 16  ;;  %v5691_v5 = vshll.u32 %v8166_v41, 16  ;;  %v5699_v3 = vrot.slane %v5697_v18, 5  ;;  %v8170_v41 = vld [vmem:[%s9775_s23 + $0x88] sm:$0xf] }
 0x29d   : > { %6085 = vmatprep.mubr.bf16.mxu0 %v12107_v49  ;;  %v5703_v40 = vrot.slane %v5701_v42, 4  ;;  %v5721_v43 = vshll.u32 %v8170_v41, 16  ;;  %v5725_v26 = vshrl.u32 %v8170_v41, 16 }
 0x29e   : > { %v5670_v52 = vor.u32 %v5669_v54, %v5666_v2  ;;  %v5690_v4 = vrot.slane %v5688_v6, 4  ;;  %v5693_v58 = vrot.slane %v5691_v5, 5  ;;  %v5707_v54 = vshll.u32 %v8168_v63, 16 }
 0x29f   : > { %v5715_v2 = vshll.u32 %v8169_v33, 16  ;;  %v5686_v6 = vsel %vm9815_vm7, %v5681_v31, %v5685_v57 }
 0x2a0   : > { %v5671_v36 = vrot.slane %v5670_v52, 4  ;;  %v5694_v45 = vor.u32 %v5693_v58, %v5690_v4  ;;  %v5709_v18 = vrot.slane %v5707_v54, 5  ;;  %v5727_v52 = vrot.slane %v5725_v26, 4  ;;  %v8172_v4 = vld [vmem:[%s9775_s23 + $0x90] sm:$0xf] }
 0x2a1   : > { %v8173_v58 = vld [vmem:[%s9775_s23 + $0x94] sm:$0xf]  ;;  %v5736_v41 = vshrl.u32 %v8172_v4, 16  ;;  %v8174_v26 = vld [vmem:[%s9775_s23 + $0x98] sm:$0x1] }
 0x2a2   : > { %8702 = vmatmul.mubr.msk.bf16.gmra.mrb[80].mxu1 %vm675_vm1, %v10864_v46  ;;  %v5662_v46 = vsel %vm9815_vm7, %v5657_v38, %v5661_v47  ;;  %v5704_v38 = vor.u32 %v5703_v40, %v5699_v3  ;;  %v5712_v47 = vshrl.u32 %v8169_v33, 16  ;;  %v5695_v5 = vrot.slane %v5694_v45, 4 }
 0x2a3   : > { %8705 = vmatprep.mubr.msk.bf16.mxu1 %vm675_vm1, %v10893_v61  ;;  %v11401_v61 = vcombine.low %v5652_v1, %v5662_v46  ;;  %v5717_v1 = vrot.slane %v5715_v2, 5  ;;  %v5723_v46 = vrot.slane %v5721_v43, 5  ;;  %v5731_v33 = vshll.u32 %v8171_v60, 16 }
 0x2a4   : > { %8213 = vmatmul.mubr.msk.bf16.gmra.mrb[20].mxu0 %vm675_vm1, %v11386_v0  ;;  %v5714_v42 = vrot.slane %v5712_v47, 4  ;;  %v5749_v57 = vshrl.u32 %v8173_v58, 16  ;;  %v5738_v54 = vrot.slane %v5736_v41, 4 }
 0x2a5   : > { %6095 = vmatprep.mubr.bf16.mxu0 %v12107_v49  ;;  %v5728_v63 = vor.u32 %v5727_v52, %v5723_v46 }
 0x2a6   : > { %v5718_v40 = vor.u32 %v5717_v1, %v5714_v42  ;;  %v5751_v43 = vrot.slane %v5749_v57, 4  ;;  %v5755_v1 = vshll.u32 %v8174_v26, 16 }
 0x2a7   : > { %v5729_v45 = vrot.slane %v5728_v63, 4 }
 0x2aa   : > { %8706 = vmatmul.mubr.msk.bf16.gmra.mrb[84].mxu1 %vm675_vm1, %v10917_v14  ;;  %v5676_v14 = vsel %vm9815_vm7, %v5671_v36, %v5675_v51  ;;  %v5700_v51 = vsel %vm9815_vm7, %v5695_v5, %v5699_v3  ;;  %v5745_v36 = vshll.u32 %v8173_v58, 16 }
 0x2ab   : > { %8709 = vmatprep.mubr.msk.bf16.mxu1 %vm675_vm1, %v10941_v39  ;;  %v5705_v39 = vrot.slane %v5704_v38, 4  ;;  %v11416_v13 = vcombine.low %v5676_v14, %v5686_v6  ;;  %v5733_v38 = vrot.slane %v5731_v33, 5  ;;  %v8175_v14 = vld [vmem:[%s9775_s23 + $0x9c] sm:$0xf]  ;;  %v8176_v6 = vld [vmem:[%s9775_s23 + $0xa0] sm:$0xf] }
 0x2ac   : > { %8214 = vmatmul.mubr.msk.bf16.gmra.mrb[24].mxu0 %vm675_vm1, %v11401_v61  ;;  %v5747_v2 = vrot.slane %v5745_v36, 5  ;;  %v5760_v52 = vshrl.u32 %v8175_v14, 16  ;;  %v5769_v60 = vshll.u32 %v8176_v6, 16  ;;  %v5757_v33 = vrot.slane %v5755_v1, 5 }
 0x2ad   : > { %6105 = vmatprep.mubr.bf16.mxu0 %v12107_v49  ;;  %v5710_v31 = vsel %vm9815_vm7, %v5705_v39, %v5709_v18  ;;  %v5734_v39 = vsel %vm9815_vm7, %v5729_v45, %v5733_v38 }
 0x2ae   : > { %v11432_v3 = vcombine.low %v5700_v51, %v5710_v31  ;;  %v5752_v42 = vor.u32 %v5751_v43, %v5747_v2  ;;  %v8178_v51 = vld [vmem:[%s9775_s23 + $0xa8] sm:$0xf]  ;;  %v8179_v31 = vld [vmem:[%s9775_s23 + $0xac] sm:$0xf]  ;;  %v5771_v36 = vrot.slane %v5769_v60, 5 }
 0x2af   : > { %v5784_v45 = vshrl.u32 %v8178_v51, 16  ;;  %v5793_v38 = vshll.u32 %v8179_v31, 16 }
 0x2b0   : > { %v5753_v63 = vrot.slane %v5752_v42, 4  ;;  %v8181_v42 = vld [vmem:[%s9775_s23 + $0xb4] sm:$0xf] }
 0x2b2   : > { %8710 = vmatmul.mubr.msk.bf16.gmra.mrb[88].mxu1 %vm675_vm1, %v10965_v9  ;;  %v5739_v9 = vshll.u32 %v8172_v4, 16  ;;  %v5773_v4 = vshrl.u32 %v8176_v6, 16  ;;  %v5795_v6 = vrot.slane %v5793_v38, 5  ;;  %v8183_v38 = vld [vmem:[%s9775_s23 + $0xbc] sm:$0x1] }
 0x2b3   : > { %8713 = vmatprep.mubr.msk.bf16.mxu1 %vm675_vm1, %v10989_v35  ;;  %v5719_v35 = vrot.slane %v5718_v40, 4 }
 0x2b4   : > { %8215 = vmatmul.mubr.msk.bf16.gmra.mrb[28].mxu0 %vm675_vm1, %v11416_v13  ;;  %v5741_v47 = vrot.slane %v5739_v9, 5  ;;  %v5775_v57 = vrot.slane %v5773_v4, 4 }
 0x2b5   : > { %6115 = vmatprep.mubr.bf16.mxu0 %v12107_v49  ;;  %v5724_v5 = vsel %vm9815_vm7, %v5719_v35, %v5723_v46  ;;  %v6001_v46 = vsel %vm724_vm0, %v11303_v7, 0  ;;  %v8177_v35 = vld [vmem:[%s9775_s23 + $0xa4] sm:$0x1]  ;;  %v5787_v7 = vshll.u32 %v8178_v51, 16  ;;  %v5811_v51 = vshll.u32 %v8181_v42, 16 }
 0x2b6   : > { %v5742_v18 = vor.u32 %v5741_v47, %v5738_v54  ;;  %v11452_v58 = vcombine.low %v5724_v5, %v5734_v39  ;;  %v5797_v54 = vshrl.u32 %v8179_v31, 16  ;;  %v5776_v43 = vor.u32 %v5775_v57, %v5771_v36  ;;  %v8180_v39 = vld [vmem:[%s9775_s23 + $0xb0] sm:$0x1] }
 0x2b7   : > { %v5779_v26 = vshll.u32 %v8177_v35, 16  ;;  %v5803_v4 = vshll.u32 %v8180_v39, 16  ;;  %v5813_v57 = vrot.slane %v5811_v51, 5 }
 0x2b8   : > { %v5743_v40 = vrot.slane %v5742_v18, 4  ;;  %v5799_v5 = vrot.slane %v5797_v54, 4  ;;  %v8184_v54 = vld [vmem:[%s9775_s23 + $0xc0] sm:$0xf] }
 0x2ba   : > { %8714 = vmatmul.mubr.msk.bf16.gmra.mrb[92].mxu1 %vm675_vm1, %v11010_v11  ;;  %v6712_v11 = vcombine.high %v11049_v32, %v11049_v32  ;;  %v5762_v32 = vrot.slane %v5760_v52, 4  ;;  %v5781_v52 = vrot.slane %v5779_v26, 5  ;;  %v5800_v60 = vor.u32 %v5799_v5, %v5795_v6 }
 0x2bb   : > { %8719 = vmatprep.mubr.msk.bf16.mxu1 %vm675_vm1, %v11028_v48  ;;  %v5763_v48 = vshll.u32 %v8175_v14, 16  ;;  %v5786_v14 = vrot.slane %v5784_v45, 4  ;;  %v5827_v26 = vshll.u32 %v8183_v38, 16 }
 0x2bc   : > { %8216 = vmatmul.mubr.msk.bf16.gmra.mrb[32].mxu0 %vm675_vm1, %v11432_v3  ;;  %v11457_v41 = vrot.slane %v6712_v11, %v9768_v10  ;;  %v5748_v10 = vsel %vm9815_vm7, %v5743_v40, %v5747_v2  ;;  %v8182_v2 = vld [vmem:[%s9775_s23 + $0xb8] sm:$0xf]  ;;  %v5777_v11 = vrot.slane %v5776_v43, 4 }
 0x2bd   : > { %6125 = vmatprep.mubr.bf16.mxu0 %v12107_v49  ;;  %v5765_v9 = vrot.slane %v5763_v48, 5  ;;  %v5817_v31 = vshll.u32 %v8182_v2, 16  ;;  %v5821_v40 = vshrl.u32 %v8182_v2, 16 }
 0x2bf   : > { %v5766_v47 = vor.u32 %v5765_v9, %v5762_v32  ;;  %v5805_v32 = vrot.slane %v5803_v4, 5  ;;  %v5819_v35 = vrot.slane %v5817_v31, 5  ;;  %v5823_v45 = vrot.slane %v5821_v40, 4  ;;  %v8188_v4 = vld [vmem:[%s9775_s23 + $0xd0] sm:$0xf] }
 0x2c1   : > { %v5767_v1 = vrot.slane %v5766_v47, 4  ;;  %v5824_v43 = vor.u32 %v5823_v45, %v5819_v35 }
 0x2c2   : > { %8720 = vmatmul.mubr.msk.bf16.vlgmr.msra.gmra.mrb[64].mxu1 %vm675_vm1, %v11062_v30  ;;  %v5758_v30 = vsel %vm9815_vm7, %v5753_v63, %v5757_v33  ;;  %v5782_v63 = vsel %vm9815_vm7, %v5777_v11, %v5781_v52 }
 0x2c3   : > { %8752 = vmatpush3.bf16.msra.mxu1 %v6001_v46  ;;  %8723 = vmatprep.mubr.msk.bf16.mxu1 %vm675_vm1, %v11088_v28  ;;  %v5789_v28 = vrot.slane %v5787_v7, 5  ;;  %v11474_v18 = vcombine.low %v5748_v10, %v5758_v30  ;;  %v5808_v46 = vshrl.u32 %v8181_v42, 16  ;;  %v8185_v10 = vld [vmem:[%s9775_s23 + $0xc4] sm:$0xf]  ;;  %v5825_v39 = vrot.slane %v5824_v43, 4 }
 0x2c4   : > { %8217 = vmatmul.mubr.msk.bf16.gmra.mrb[36].mxu0 %vm675_vm1, %v11452_v58  ;;  %9597 = vmatprep.subr.msk.bf16.mxu1 %vm724_vm0, %v11457_v41  ;;  %v5845_v5 = vshrl.u32 %v8185_v10, 16  ;;  %v5829_v42 = vrot.slane %v5827_v26, 5 }
 0x2c5   : > { %6135 = vmatprep.mubr.bf16.mxu0 %v12107_v49  ;;  %v5790_v48 = vor.u32 %v5789_v28, %v5786_v14  ;;  %v5810_v9 = vrot.slane %v5808_v46, 4  ;;  %v5832_v14 = vshrl.u32 %v8184_v54, 16  ;;  %v5841_v28 = vshll.u32 %v8185_v10, 16  ;;  %v8189_v10 = vld [vmem:[%s9775_s23 + $0xd4] sm:$0x1] }
 0x2c6   : > { %v5847_v52 = vrot.slane %v5845_v5, 4  ;;  %v5830_v51 = vsel %vm9815_vm7, %v5825_v39, %v5829_v42  ;;  %v8240_v42 = vld [vmem:[%s9775_s23 + $0x18] sm:$0xe] }
 0x2c7   : > { %v5791_v33 = vrot.slane %v5790_v48, 4  ;;  %v5814_v47 = vor.u32 %v5813_v57, %v5810_v9  ;;  %v5834_v2 = vrot.slane %v5832_v14, 4  ;;  %v5843_v11 = vrot.slane %v5841_v28, 5  ;;  %v8186_v48 = vld [vmem:[%s9775_s23 + $0xc8] sm:$0x1] }
 0x2c8   : > { %v8241_v28 = vld [vmem:[%s9775_s23 + $0x1c] sm:$0xf] }
 0x2c9   : > { %v5848_v40 = vor.u32 %v5847_v52, %v5843_v11  ;;  %v6551_v39 = vrot.slane %v8241_v28, 5  ;;  %v8244_v52 = vld [vmem:[%s9775_s23 + $0x28] sm:$0xf] }
 0x2ca   : > { %8724 = vmatmul.mubr.msk.bf16.gmra.mrb[68].mxu1 %vm675_vm1, %v11106_v22  ;;  %v5772_v22 = vsel %vm9815_vm7, %v5767_v1, %v5771_v36  ;;  %v5796_v36 = vsel %vm9815_vm7, %v5791_v33, %v5795_v6  ;;  %v5865_v33 = vshll.u32 %v8188_v4, 16  ;;  %v8252_v28 = vld [vmem:[%s9775_s23 + $0x48] sm:$0xe] }
 0x2cb   : > { %8727 = vmatprep.mubr.msk.bf16.mxu1 %vm675_vm1, %v11116_v16  ;;  %v5801_v16 = vrot.slane %v5800_v60, 4  ;;  %v11489_v7 = vcombine.low %v5772_v22, %v5782_v63  ;;  %v8187_v60 = vld [vmem:[%s9775_s23 + $0xcc] sm:$0xf]  ;;  %v5851_v22 = vshll.u32 %v8186_v48, 16  ;;  %v5849_v9 = vrot.slane %v5848_v40, 4 }
 0x2cc   : > { %8218 = vmatmul.mubr.msk.bf16.gmra.mrb[40].mxu0 %vm675_vm1, %v11474_v18  ;;  %v5859_v63 = vshll.u32 %v8187_v60, 16  ;;  %v5867_v38 = vrot.slane %v5865_v33, 5  ;;  %v8247_v40 = vld [vmem:[%s9775_s23 + $0x34] sm:$0xf]  ;;  %v8246_v33 = vld [vmem:[%s9775_s23 + $0x30] sm:$0xe] }
 0x2cd   : > { %6145 = vmatprep.mubr.bf16.mxu0 %v12107_v49  ;;  %v5806_v30 = vsel %vm9815_vm7, %v5801_v16, %v5805_v32  ;;  %v5869_v16 = vshrl.u32 %v8188_v4, 16  ;;  %v5853_v57 = vrot.slane %v5851_v22, 5  ;;  %v8243_v4 = vld [vmem:[%s9775_s23 + $0x24] sm:$0xe] }
 0x2ce   : > { %v11505_v6 = vcombine.low %v5796_v36, %v5806_v30  ;;  %v5861_v45 = vrot.slane %v5859_v63, 5  ;;  %v6565_v63 = vrot.slane %v8247_v40, 5 }
 0x2cf   : > { %v5854_v30 = vsel %vm9815_vm7, %v5849_v9, %v5853_v57 }
 0x2d0   : > { %v6567_v9 = vrot.slane %v6565_v63, 4 }
 0x2d2   : > { %8728 = vmatmul.mubr.msk.bf16.gmra.mrb[72].mxu1 %vm675_vm1, %v11126_v12  ;;  %v5835_v12 = vshll.u32 %v8184_v54, 16  ;;  %v5871_v54 = vrot.slane %v5869_v16, 4  ;;  %v6783_v16 = vsel %vm724_vm0, %v11457_v41, 0 }
 0x2d3   : > { %8731 = vmatprep.mubr.msk.bf16.mxu1 %vm675_vm1, %v11136_v23  ;;  %v5815_v23 = vrot.slane %v5814_v47, 4 }
 0x2d4   : > { %8219 = vmatmul.mubr.msk.bf16.gmra.mrb[44].mxu0 %vm675_vm1, %v11489_v7  ;;  %v5837_v1 = vrot.slane %v5835_v12, 5  ;;  %v5872_v43 = vor.u32 %v5871_v54, %v5867_v38 }
 0x2d5   : > { %6155 = vmatprep.mubr.bf16.mxu0 %v12107_v49  ;;  %v5820_v46 = vsel %vm9815_vm7, %v5815_v23, %v5819_v35 }
 0x2d6   : > { %v5838_v31 = vor.u32 %v5837_v1, %v5834_v2  ;;  %v8288_v1 = vrot.slane %v8240_v42, 9  ;;  %v8256_v42 = vld [vmem:[%s9775_s23 + $0x58] sm:$0xf] }
 0x2d8   : > { %v5839_v32 = vrot.slane %v5838_v31, 4  ;;  %v6552_v53 = vsel %vm9786_vm6, %v8288_v1, %v6551_v39 }
 0x2da   : > { %8732 = vmatmul.mubr.msk.bf16.gmra.mrb[76].mxu1 %vm675_vm1, %v11146_v21  ;;  %v5856_v21 = vshrl.u32 %v8187_v60, 16  ;;  %v5844_v36 = vsel %vm9815_vm7, %v5839_v32, %v5843_v11  ;;  %v6558_v60 = vrot.slane %v8244_v52, 5  ;;  %v8290_v32 = vrot.slane %v8246_v33, 9 }
 0x2db   : > { %8735 = vmatprep.mubr.msk.bf16.mxu1 %vm675_vm1, %v11156_v56  ;;  %v11521_v56 = vcombine.low %v5820_v46, %v5830_v51  ;;  %v11535_v26 = vcombine.low %v5844_v36, %v5854_v30  ;;  %v8289_v51 = vrot.slane %v8243_v4, 9  ;;  %v8251_v36 = vld [vmem:[%s9775_s23 + $0x44] sm:$0x1] }
 0x2dc   : > { %8220 = vmatmul.mubr.msk.bf16.gmra.mrb[48].mxu0 %vm675_vm1, %v11505_v6  ;;  %v5858_v35 = vrot.slane %v5856_v21, 4  ;;  %v6566_v41 = vsel %vm9786_vm6, %v8290_v32, %v6565_v63 }
 0x2dd   : > { %6165 = vmatprep.mubr.bf16.mxu0 %v12107_v49  ;;  %v6559_v22 = vsel %vm9786_vm6, %v8289_v51, %v6558_v60 }
 0x2de   : > { %v5862_v47 = vor.u32 %v5861_v45, %v5858_v35  ;;  %v12181_v35 = vld [vmem:[#allocation9_spill] sm:$0xff]  ;;  %v8250_v45 = vld [vmem:[%s9775_s23 + $0x40] sm:$0xf] }
 0x2df   : > { %v6572_v54 = vrot.slane %v8250_v45, 5 }
 0x2e0   : > { %v5863_v14 = vrot.slane %v5862_v47, 4 }
 0x2e2   : > { %8736 = vmatmul.mubr.msk.bf16.gmra.mrb[80].mxu1 %vm675_vm1, %v11171_v44  ;;  %v5875_v44 = vshll.u32 %v8189_v10, 16  ;;  %v5868_v5 = vsel %vm9815_vm7, %v5863_v14, %v5867_v38  ;;  %v8249_v10 = vld [vmem:[%s9775_s23 + $0x3c] sm:$0xe] }
 0x2e3   : > { %8739 = vmatprep.mubr.msk.bf16.mxu1 %vm675_vm1, %v11186_v8  ;;  %v5873_v8 = vrot.slane %v5872_v43, 4  ;;  %v8291_v47 = vrot.slane %v8249_v10, 9  ;;  %v6575_v43 = vrot.slane %v8251_v36, 5 }
 0x2e4   : > { %8221 = vmatmul.mubr.msk.bf16.gmra.mrb[52].mxu0 %vm675_vm1, %v11521_v56  ;;  %v5877_v12 = vrot.slane %v5875_v44, 5  ;;  %v8253_v44 = vld [vmem:[%s9775_s23 + $0x4c] sm:$0xf] }
 0x2e5   : > { %6175 = vmatprep.mubr.bf16.mxu0 %v12107_v49  ;;  %v6573_v14 = vsel %vm9786_vm6, %v8291_v47, %v6572_v54 }
 0x2e6   : > { %v5878_v23 = vsel %vm9815_vm7, %v5873_v8, %v5877_v12  ;;  %v6579_v12 = vrot.slane %v8253_v44, 5 }
 0x2e7   : > { %v11551_v2 = vcombine.low %v5868_v5, %v5878_v23  ;;  %v8292_v23 = vrot.slane %v8252_v28, 9 }
 0x2ea   : > { %8740 = vmatmul.mubr.msk.bf16.gmra.mrb[84].mxu1 %vm675_vm1, %v11196_v34  ;;  %v8242_v34 = vld [vmem:[%s9775_s23 + $0x20] sm:$0x1] }
 0x2eb   : > { %8743 = vmatprep.mubr.msk.bf16.mxu1 %vm675_vm1, %v11206_v59  ;;  %v6553_v59 = vrot.slane %v6551_v39, 4  ;;  %v6554_v11 = vrot.slane %v8242_v34, 5  ;;  %v6580_v34 = vsel %vm9786_vm6, %v8292_v23, %v6579_v12  ;;  %v8271_v23 = vld [vmem:[%s9775_s23 + $0x94] sm:$0xf] }
 0x2ec   : > { %8222 = vmatmul.mubr.msk.bf16.gmra.mrb[56].mxu0 %vm675_vm1, %v11535_v26 }
 0x2ed   : > { %6185 = vmatprep.mubr.bf16.mxu0 %v12107_v49  ;;  %v6555_v48 = vsel %vm9786_vm6, %v6553_v59, %v6554_v11  ;;  %v6586_v59 = vrot.slane %v8256_v42, 5  ;;  %v8255_v11 = vld [vmem:[%s9775_s23 + $0x54] sm:$0xe]  ;;  %v6621_v42 = vrot.slane %v8271_v23, 5 }
 0x2ee   : > { %v11567_v46 = vcombine.low %v6552_v53, %v6555_v48  ;;  %v8293_v53 = vrot.slane %v8255_v11, 9 }
 0x2ef   : > { %v6623_v11 = vrot.slane %v6621_v42, 4 }
 0x2f0   : > { %v6587_v4 = vsel %vm9786_vm6, %v8293_v53, %v6586_v59 }
 0x2f2   : > { %8744 = vmatmul.mubr.msk.bf16.gmra.mrb[88].mxu1 %vm675_vm1, %v11218_v29  ;;  %v8245_v29 = vld [vmem:[%s9775_s23 + $0x2c] sm:$0x1] }
 0x2f3   : > { %8747 = vmatprep.mubr.msk.bf16.mxu1 %vm675_vm1, %v11229_v17  ;;  %v6560_v17 = vrot.slane %v6558_v60, 4  ;;  %v6561_v31 = vrot.slane %v8245_v29, 5  ;;  %v8259_v60 = vld [vmem:[%s9775_s23 + $0x64] sm:$0xf] }
 0x2f4   : > { %8223 = vmatmul.mubr.msk.bf16.gmra.mrb[60].mxu0 %vm675_vm1, %v11551_v2  ;;  %v6593_v51 = vrot.slane %v8259_v60, 5  ;;  %v8273_v60 = vld [vmem:[%s9775_s23 + $0x9c] sm:$0xe] }
 0x2f5   : > { %6817 = vmatprep.mubr.bf16.mxu0 %v12107_v49  ;;  %v6562_v21 = vsel %vm9786_vm6, %v6560_v17, %v6561_v31  ;;  %v8258_v17 = vld [vmem:[%s9775_s23 + $0x60] sm:$0xe] }
 0x2f6   : > { %v8294_v40 = vrot.slane %v8258_v17, 9 }
 0x2f8   : > { %v6594_v63 = vsel %vm9786_vm6, %v8294_v40, %v6593_v51 }
 0x2fa   : > { %8748 = vmatmul.mubr.msk.bf16.gmra.mrb[92].mxu1 %vm675_vm1, %v11241_v55  ;;  %v8248_v55 = vld [vmem:[%s9775_s23 + $0x38] sm:$0x1] }
 0x2fb   : > { %8753 = vmatprep.mubr.msk.bf16.mxu1 %vm675_vm1, %v11263_v27  ;;  %v11585_v27 = vcombine.low %v6559_v22, %v6562_v21  ;;  %v6568_v57 = vrot.slane %v8248_v55, 5  ;;  %v8262_v21 = vld [vmem:[%s9775_s23 + $0x70] sm:$0xf] }
 0x2fc   : > { %8322 = vmatmul.mubr.msk.bf16.vlgmr.msra.gmra.mrb[0].mxu0 %vm675_vm1, %v11567_v46  ;;  %v6600_v55 = vrot.slane %v8262_v21, 5  ;;  %v8278_v21 = vld [vmem:[%s9775_s23 + $0xb0] sm:$0x1] }
 0x2fd   : > { %6827 = vmatprep.mubr.bf16.mxu0 %v12107_v49  ;;  %v6569_v38 = vsel %vm9786_vm6, %v6567_v9, %v6568_v57 }
 0x2fe   : > { %v11601_v30 = vcombine.low %v6566_v41, %v6569_v38 }
 0x302   : > { %8754 = vmatmul.mubr.msk.bf16.vlgmr.msra.gmra.mrb[64].mxu1 %vm675_vm1, %v12181_v35  ;;  %v8265_v35 = vld [vmem:[%s9775_s23 + $0x7c] sm:$0xf] }
 0x303   : > { %8786 = vmatpush3.bf16.msra.mxu1 %v6783_v16  ;;  %8757 = vmatprep.mubr.msk.bf16.mxu1 %vm675_vm1, %v11329_v24  ;;  %v6574_v24 = vrot.slane %v6572_v54, 4  ;;  %v8261_v16 = vld [vmem:[%s9775_s23 + $0x6c] sm:$0xe]  ;;  %v6607_v38 = vrot.slane %v8265_v35, 5  ;;  %v8264_v54 = vld [vmem:[%s9775_s23 + $0x78] sm:$0xe] }
 0x304   : > { %8323 = vmatmul.mubr.msk.bf16.gmra.mrb[4].mxu0 %vm675_vm1, %v11585_v27  ;;  %v8295_v9 = vrot.slane %v8261_v16, 9  ;;  %v8296_v36 = vrot.slane %v8264_v54, 9 }
 0x305   : > { %6837 = vmatprep.mubr.bf16.mxu0 %v12107_v49  ;;  %v6576_v8 = vsel %vm9786_vm6, %v6574_v24, %v6575_v43  ;;  %v8268_v24 = vld [vmem:[%s9775_s23 + $0x88] sm:$0xf] }
 0x306   : > { %v11617_v5 = vcombine.low %v6573_v14, %v6576_v8  ;;  %v6601_v45 = vsel %vm9786_vm6, %v8295_v9, %v6600_v55  ;;  %v6608_v43 = vsel %vm9786_vm6, %v8296_v36, %v6607_v38  ;;  %v6614_v14 = vrot.slane %v8268_v24, 5  ;;  %v8267_v8 = vld [vmem:[%s9775_s23 + $0x84] sm:$0xe]  ;;  %v8282_v36 = vld [vmem:[%s9775_s23 + $0xc0] sm:$0xe] }
 0x307   : > { %v8297_v28 = vrot.slane %v8267_v8, 9 }
 0x30a   : > { %8758 = vmatmul.mubr.msk.bf16.gmra.mrb[68].mxu1 %vm675_vm1, %v11352_v25  ;;  %v8254_v25 = vld [vmem:[%s9775_s23 + $0x50] sm:$0x1] }
 0x30b   : > { %8761 = vmatprep.mubr.msk.bf16.mxu1 %vm675_vm1, %v11368_v50  ;;  %v6581_v50 = vrot.slane %v6579_v12, 4  ;;  %v6582_v39 = vrot.slane %v8254_v25, 5  ;;  %v6616_v25 = vrot.slane %v6614_v14, 4 }
 0x30c   : > { %8324 = vmatmul.mubr.msk.bf16.gmra.mrb[8].mxu0 %vm675_vm1, %v11601_v30 }
 0x30d   : > { %6847 = vmatprep.mubr.bf16.mxu0 %v12107_v49  ;;  %v6583_v1 = vsel %vm9786_vm6, %v6581_v50, %v6582_v39  ;;  %v6615_v50 = vsel %vm9786_vm6, %v8297_v28, %v6614_v14  ;;  %v8287_v28 = vld [vmem:[%s9775_s23 + $0xd4] sm:$0x1] }
 0x30e   : > { %v11633_v52 = vcombine.low %v6580_v34, %v6583_v1  ;;  %v8270_v34 = vld [vmem:[%s9775_s23 + $0x90] sm:$0xe]  ;;  %v8272_v1 = vld [vmem:[%s9775_s23 + $0x98] sm:$0x1] }
 0x312   : > { %8762 = vmatmul.mubr.msk.bf16.gmra.mrb[72].mxu1 %vm675_vm1, %v11386_v0  ;;  %v8257_v0 = vld [vmem:[%s9775_s23 + $0x5c] sm:$0x1] }
 0x313   : > { %8765 = vmatprep.mubr.msk.bf16.mxu1 %vm675_vm1, %v11401_v61  ;;  %v6588_v61 = vrot.slane %v6586_v59, 4  ;;  %v6589_v48 = vrot.slane %v8257_v0, 5  ;;  %v8298_v59 = vrot.slane %v8270_v34, 9  ;;  %v6624_v0 = vrot.slane %v8272_v1, 5 }
 0x314   : > { %8325 = vmatmul.mubr.msk.bf16.gmra.mrb[12].mxu0 %vm675_vm1, %v11617_v5 }
 0x315   : > { %6857 = vmatprep.mubr.bf16.mxu0 %v12107_v49  ;;  %v6590_v29 = vsel %vm9786_vm6, %v6588_v61, %v6589_v48  ;;  %v6622_v53 = vsel %vm9786_vm6, %v8298_v59, %v6621_v42  ;;  %v6625_v61 = vsel %vm9786_vm6, %v6623_v11, %v6624_v0  ;;  %v12183_v0 = vld [vmem:[#allocation13_spill] sm:$0xff] }
 0x316   : > { %v11649_v31 = vcombine.low %v6587_v4, %v6590_v29  ;;  %v8275_v4 = vld [vmem:[%s9775_s23 + $0xa4] sm:$0x1]  ;;  %v8299_v29 = vrot.slane %v8273_v60, 9 }
 0x317   : > { %v6631_v17 = vrot.slane %v8275_v4, 5 }
 0x31a   : > { %8766 = vmatmul.mubr.msk.bf16.gmra.mrb[76].mxu1 %vm675_vm1, %v11416_v13  ;;  %v8260_v13 = vld [vmem:[%s9775_s23 + $0x68] sm:$0x1] }
 0x31b   : > { %8769 = vmatprep.mubr.msk.bf16.mxu1 %vm675_vm1, %v11432_v3  ;;  %v6595_v3 = vrot.slane %v6593_v51, 4  ;;  %v6596_v22 = vrot.slane %v8260_v13, 5 }
 0x31c   : > { %8326 = vmatmul.mubr.msk.bf16.gmra.mrb[16].mxu0 %vm675_vm1, %v11633_v52 }
 0x31d   : > { %6867 = vmatprep.mubr.bf16.mxu0 %v12107_v49  ;;  %v6597_v33 = vsel %vm9786_vm6, %v6595_v3, %v6596_v22  ;;  %v8276_v22 = vld [vmem:[%s9775_s23 + $0xa8] sm:$0xe] }
 0x31e   : > { %v11665_v32 = vcombine.low %v6594_v63, %v6597_v33  ;;  %v8300_v63 = vrot.slane %v8276_v22, 9 }
 0x322   : > { %8770 = vmatmul.mubr.msk.bf16.gmra.mrb[80].mxu1 %vm675_vm1, %v11452_v58  ;;  %v8263_v58 = vld [vmem:[%s9775_s23 + $0x74] sm:$0x1] }
 0x323   : > { %8773 = vmatprep.mubr.msk.bf16.mxu1 %vm675_vm1, %v11474_v18  ;;  %v6602_v18 = vrot.slane %v6600_v55, 4  ;;  %v6603_v57 = vrot.slane %v8263_v58, 5  ;;  %v6638_v55 = vrot.slane %v8278_v21, 5 }
 0x324   : > { %8327 = vmatmul.mubr.msk.bf16.gmra.mrb[20].mxu0 %vm675_vm1, %v11649_v31 }
 0x325   : > { %6877 = vmatprep.mubr.bf16.mxu0 %v12107_v49  ;;  %v6604_v41 = vsel %vm9786_vm6, %v6602_v18, %v6603_v57  ;;  %v8279_v18 = vld [vmem:[%s9775_s23 + $0xb4] sm:$0xe]  ;;  %v8281_v57 = vld [vmem:[%s9775_s23 + $0xbc] sm:$0x1] }
 0x326   : > { %v11681_v10 = vcombine.low %v6601_v45, %v6604_v41  ;;  %v8301_v35 = vrot.slane %v8279_v18, 9  ;;  %v6645_v41 = vrot.slane %v8281_v57, 5  ;;  %v12188_v57 = vld [vmem:[#allocation18_spill] sm:$0xff] }
 0x32a   : > { %8774 = vmatmul.mubr.msk.bf16.gmra.mrb[84].mxu1 %vm675_vm1, %v11489_v7  ;;  %v8266_v7 = vld [vmem:[%s9775_s23 + $0x80] sm:$0x1] }
 0x32b   : > { %8777 = vmatprep.mubr.msk.bf16.mxu1 %vm675_vm1, %v11505_v6  ;;  %v6609_v6 = vrot.slane %v6607_v38, 4  ;;  %v6610_v47 = vrot.slane %v8266_v7, 5 }
 0x32c   : > { %8328 = vmatmul.mubr.msk.bf16.gmra.mrb[24].mxu0 %vm675_vm1, %v11665_v32 }
 0x32d   : > { %6887 = vmatprep.mubr.bf16.mxu0 %v12107_v49  ;;  %v6611_v44 = vsel %vm9786_vm6, %v6609_v6, %v6610_v47  ;;  %v8284_v6 = vld [vmem:[%s9775_s23 + $0xc8] sm:$0x1] }
 0x32e   : > { %v8313_v12 = vcombine.low %v6608_v43, %v6611_v44  ;;  %v6652_v43 = vrot.slane %v8284_v6, 5  ;;  %v8286_v44 = vld [vmem:[%s9775_s23 + $0xd0] sm:$0xf] }
 0x332   : > { %8778 = vmatmul.mubr.msk.bf16.gmra.mrb[88].mxu1 %vm675_vm1, %v11521_v56  ;;  %v8269_v56 = vld [vmem:[%s9775_s23 + $0x8c] sm:$0x1] }
 0x333   : > { %8781 = vmatprep.mubr.msk.bf16.mxu1 %vm675_vm1, %v11535_v26  ;;  %v6617_v26 = vrot.slane %v8269_v56, 5  ;;  %v6656_v56 = vrot.slane %v8286_v44, 5 }
 0x334   : > { %8329 = vmatmul.mubr.msk.bf16.gmra.mrb[28].mxu0 %vm675_vm1, %v11681_v10 }
 0x335   : > { %6897 = vmatprep.mubr.bf16.mxu0 %v12107_v49  ;;  %v6618_v39 = vsel %vm9786_vm6, %v6616_v25, %v6617_v26  ;;  %v6658_v23 = vrot.slane %v6656_v56, 4 }
 0x33a   : > { %8782 = vmatmul.mubr.msk.bf16.gmra.mrb[92].mxu1 %vm675_vm1, %v11551_v2  ;;  %v8314_v2 = vcombine.low %v6615_v50, %v6618_v39  ;;  %v6659_v50 = vrot.slane %v8287_v28, 5 }
 0x33b   : > { %8787 = vmatprep.mubr.msk.bf16.mxu1 %vm675_vm1, %v11567_v46  ;;  %v8274_v46 = vld [vmem:[%s9775_s23 + $0xa0] sm:$0xf] }
 0x33c   : > { %8330 = vmatmul.mubr.msk.bf16.gmra.mrb[32].mxu0 %vm675_vm1, %v8313_v12  ;;  %v6628_v48 = vrot.slane %v8274_v46, 5  ;;  %v6660_v42 = vsel %vm9786_vm6, %v6658_v23, %v6659_v50 }
 0x33d   : > { %6907 = vmatprep.mubr.bf16.mxu0 %v12107_v49 }
 0x33e   : > { %v6630_v51 = vrot.slane %v6628_v48, 4  ;;  %v6629_v13 = vsel %vm9786_vm6, %v8299_v29, %v6628_v48  ;;  %v12184_v48 = vld [vmem:[#allocation14_spill] sm:$0xff]  ;;  %v12185_v29 = vld [vmem:[#allocation15_spill] sm:$0xff] }
 0x340   : > { %v6632_v40 = vsel %vm9786_vm6, %v6630_v51, %v6631_v17 }
 0x342   : > { %8788 = vmatmul.mubr.msk.bf16.vlgmr.msra.gmra.mrb[64].mxu1 %vm675_vm1, %v11585_v27  ;;  %v8315_v27 = vcombine.low %v6622_v53, %v6625_v61 }
 0x343   : > { %8791 = vmatprep.mubr.msk.bf16.mxu1 %vm675_vm1, %v11601_v30  ;;  %v8277_v30 = vld [vmem:[%s9775_s23 + $0xac] sm:$0xf] }
 0x344   : > { %8331 = vmatmul.mubr.msk.bf16.gmra.mrb[36].mxu0 %vm675_vm1, %v8314_v2  ;;  %v6635_v3 = vrot.slane %v8277_v30, 5 }
 0x345   : > { %6917 = vmatprep.mubr.bf16.mxu0 %v12107_v49 }
 0x346   : > { %v6637_v33 = vrot.slane %v6635_v3, 4  ;;  %v6636_v16 = vsel %vm9786_vm6, %v8300_v63, %v6635_v3  ;;  %v12186_v63 = vld [vmem:[#allocation16_spill] sm:$0xff] }
 0x348   : > { %v6639_v58 = vsel %vm9786_vm6, %v6637_v33, %v6638_v55 }
 0x34a   : > { %8792 = vmatmul.mubr.msk.bf16.gmra.mrb[68].mxu1 %vm675_vm1, %v11617_v5  ;;  %v8316_v5 = vcombine.low %v6629_v13, %v6632_v40 }
 0x34b   : > { %8795 = vmatprep.mubr.msk.bf16.mxu1 %vm675_vm1, %v11633_v52  ;;  %v8280_v52 = vld [vmem:[%s9775_s23 + $0xb8] sm:$0xf] }
 0x34c   : > { %8332 = vmatmul.mubr.msk.bf16.gmra.mrb[40].mxu0 %vm675_vm1, %v8315_v27  ;;  %v6642_v9 = vrot.slane %v8280_v52, 5  ;;  %v12187_v52 = vld [vmem:[#allocation17_spill] sm:$0xff] }
 0x34d   : > { %6927 = vmatprep.mubr.bf16.mxu0 %v12107_v49 }
 0x34e   : > { %v6644_v45 = vrot.slane %v6642_v9, 4  ;;  %v6643_v38 = vsel %vm9786_vm6, %v8301_v35, %v6642_v9 }
 0x350   : > { %v6646_v54 = vsel %vm9786_vm6, %v6644_v45, %v6645_v41  ;;  %v12189_v41 = vld [vmem:[#allocation19_spill] sm:$0xff] }
 0x351   : > { %v8318_v47 = vcombine.low %v6643_v38, %v6646_v54 }
 0x352   : > { %8796 = vmatmul.mubr.msk.bf16.gmra.mrb[72].mxu1 %vm675_vm1, %v11649_v31  ;;  %v8317_v31 = vcombine.low %v6636_v16, %v6639_v58 }
 0x353   : > { %8799 = vmatprep.mubr.msk.bf16.mxu1 %vm675_vm1, %v11665_v32  ;;  %v8283_v32 = vld [vmem:[%s9775_s23 + $0xc4] sm:$0xf] }
 0x354   : > { %8333 = vmatmul.mubr.msk.bf16.gmra.mrb[44].mxu0 %vm675_vm1, %v8316_v5  ;;  %v6649_v7 = vrot.slane %v8283_v32, 5 }
 0x355   : > { %6937 = vmatprep.mubr.bf16.mxu0 %v12107_v49 }
 0x356   : > { %v6651_v24 = vrot.slane %v6649_v7, 4 }
 0x358   : > { %v6653_v8 = vsel %vm9786_vm6, %v6651_v24, %v6652_v43  ;;  %v12190_v43 = vld [vmem:[#allocation20_spill] sm:$0xff] }
 0x35a   : > { %8800 = vmatmul.mubr.msk.bf16.gmra.mrb[76].mxu1 %vm675_vm1, %v11681_v10  ;;  %v8302_v10 = vrot.slane %v8282_v36, 9 }
 0x35b   : > { %8803 = vmatprep.mubr.msk.bf16.mxu1 %vm675_vm1, %v8313_v12  ;;  %v8285_v12 = vld [vmem:[%s9775_s23 + $0xcc] sm:$0xe] }
 0x35c   : > { %8334 = vmatmul.mubr.msk.bf16.gmra.mrb[48].mxu0 %vm675_vm1, %v8317_v31  ;;  %v6650_v14 = vsel %vm9786_vm6, %v8302_v10, %v6649_v7  ;;  %v8303_v26 = vrot.slane %v8285_v12, 9 }
 0x35d   : > { %6947 = vmatprep.mubr.bf16.mxu0 %v12107_v49  ;;  %v8319_v25 = vcombine.low %v6650_v14, %v6653_v8  ;;  %v12191_v8 = vld [vmem:[#allocation21_spill] sm:$0xff] }
 0x35e   : > { %v6657_v39 = vsel %vm9786_vm6, %v8303_v26, %v6656_v56  ;;  %v12192_v26 = vld [vmem:[#allocation22_spill] sm:$0xff] }
 0x35f   : > { %v8320_v34 = vcombine.low %v6657_v39, %v6660_v42  ;;  %v12193_v42 = vld [vmem:[#allocation23_spill] sm:$0xff] }
 0x362   : > { %8804 = vmatmul.mubr.msk.bf16.gmra.mrb[80].mxu1 %vm675_vm1, %v8314_v2  ;;  %v12182_v2 = vld [vmem:[#allocation12_spill] sm:$0xff] }
 0x363   : > { %8807 = vmatprep.mubr.msk.bf16.mxu1 %vm675_vm1, %v8315_v27 }
 0x364   : > { %8335 = vmatmul.mubr.msk.bf16.gmra.mrb[52].mxu0 %vm675_vm1, %v8318_v47 }
 0x365   : > { %6957 = vmatprep.mubr.bf16.mxu0 %v12107_v49 }
 0x36a   : > { %8808 = vmatmul.mubr.msk.bf16.gmra.mrb[84].mxu1 %vm675_vm1, %v8316_v5 }
 0x36b   : > { %8811 = vmatprep.mubr.msk.bf16.mxu1 %vm675_vm1, %v8317_v31 }
 0x36c   : > { %8336 = vmatmul.mubr.msk.bf16.gmra.mrb[56].mxu0 %vm675_vm1, %v8319_v25 }
 0x36d   : > { %6967 = vmatprep.mubr.bf16.mxu0 %v12107_v49  ;;  %v11787_v49 = vld [vmem:[%s12080_s2] ss:$0 sm:$0xff] }
 0x372   : > { %8812 = vmatmul.mubr.msk.bf16.gmra.mrb[88].mxu1 %vm675_vm1, %v8318_v47 }
 0x373   : > { %8815 = vmatprep.mubr.msk.bf16.mxu1 %vm675_vm1, %v8319_v25 }
 0x374   : > { %8337 = vmatmul.mubr.msk.bf16.gmra.mrb[60].mxu0 %vm675_vm1, %v8320_v34 }
 0x37a   : > { %8816 = vmatmul.mubr.msk.bf16.gmra.mrb[92].mxu1 %vm675_vm1, %v8320_v34 }
 0x3cf   : > { %v6819_v1 = vpop.f32.mrb[0].mxu0 }
 0x3d0   : > { %v8821_v59 = vadd.f32 %v6819_v1, %v12182_v2  ;;  %v6821_v11 = vpop.f32.mrb[1].mxu0 }
 0x3d1   : > { %v8822_v46 = vadd.f32 %v6821_v11, %v12183_v0  ;;  %v6823_v53 = vpop.f32.mrb[2].mxu0 }
 0x3d2   : > { %v7240_v61 = vadd.f32 %v8821_v59, %v11787_v49  ;;  %v8823_v60 = vadd.f32 %v6823_v53, %v12184_v48  ;;  %v6825_v4 = vpop.f32.mrb[3].mxu0  ;;  %v12194_v48 = vld [vmem:[#allocation24_spill] sm:$0xff] }
 0x3d3   : > { %v7309_v27 = vadd.f32 %v8822_v46, %v11793_v19  ;;  %v8824_v51 = vadd.f32 %v6825_v4, %v12185_v29 }
 0x3d4   : > { %v7272_v17 = vmax.f32 %v7240_v61, 0.0  ;;  %v7241_v30 = vadd.f32 %v8823_v60, %v11787_v49 }
 0x3d5   : > { %v7341_v13 = vmax.f32 %v7309_v27, 0.0  ;;  %v7310_v40 = vadd.f32 %v8824_v51, %v11793_v19  ;;  %v12195_v27 = vld [vmem:[#allocation25_spill] sm:$0xff] }
 0x3d6   : > { %v7273_v3 = vmax.f32 %v7241_v30, 0.0 }
 0x3d7   : > { %v7342_v22 = vmax.f32 %v7310_v40, 0.0  ;;  %v6829_v21 = vpop.f32.mrb[4].mxu0  ;;  %v11802_v5 = vadd.f32 %v7341_v13, %v7272_v17  ;;  %v12196_v13 = vld [vmem:[#allocation26_spill] sm:$0xff] }
 0x3d8   : > { %v8825_v33 = vadd.f32 %v6829_v21, %v12186_v63  ;;  %v6831_v55 = vpop.f32.mrb[5].mxu0  ;;  %v12197_v21 = vld [vmem:[#allocation27_spill] sm:$0xff] }
 0x3d9   : > { %v8826_v16 = vadd.f32 %v6831_v55, %v12187_v52  ;;  %v6833_v58 = vpop.f32.mrb[6].mxu0  ;;  %v11806_v9 = vadd.f32 %v7342_v22, %v7273_v3 }
 0x3da   : > { %v7242_v18 = vadd.f32 %v8825_v33, %v11787_v49  ;;  %v8827_v31 = vadd.f32 %v6833_v58, %v12188_v57  ;;  %v6835_v35 = vpop.f32.mrb[7].mxu0 }
 0x3db   : > { %v7311_v45 = vadd.f32 %v8826_v16, %v11793_v19  ;;  %v8828_v32 = vadd.f32 %v6835_v35, %v12189_v41  ;;  %v12198_v35 = vld [vmem:[#allocation28_spill] sm:$0xff] }
 0x3dc   : > { %v7274_v38 = vmax.f32 %v7242_v18, 0.0  ;;  %v7243_v54 = vadd.f32 %v8827_v31, %v11787_v49 }
 0x3dd   : > { %v7343_v7 = vmax.f32 %v7311_v45, 0.0  ;;  %v7312_v36 = vadd.f32 %v8828_v32, %v11793_v19  ;;  %v12199_v32 = vld [vmem:[#allocation29_spill] sm:$0xff] }
 0x3de   : > { %v7275_v6 = vmax.f32 %v7243_v54, 0.0 }
 0x3df   : > { %v7344_v47 = vmax.f32 %v7312_v36, 0.0  ;;  %v6839_v10 = vpop.f32.mrb[8].mxu0  ;;  %v11814_v24 = vadd.f32 %v7343_v7, %v7274_v38 }
 0x3e0   : > { %v8829_v44 = vadd.f32 %v6839_v10, %v12190_v43  ;;  %v6841_v14 = vpop.f32.mrb[9].mxu0 }
 0x3e1   : > { %v8830_v56 = vadd.f32 %v6841_v14, %v12191_v8  ;;  %v6843_v12 = vpop.f32.mrb[10].mxu0  ;;  %v11818_v28 = vadd.f32 %v7344_v47, %v7275_v6  ;;  %v12200_v6 = vld [vmem:[#allocation30_spill] sm:$0xff] }
 0x3e2   : > { %v7244_v25 = vadd.f32 %v8829_v44, %v11787_v49  ;;  %v8831_v23 = vadd.f32 %v6843_v12, %v12192_v26  ;;  %v6845_v50 = vpop.f32.mrb[11].mxu0  ;;  %v12201_v44 = vld [vmem:[#allocation31_spill] sm:$0xff] }
 0x3e3   : > { %v7313_v39 = vadd.f32 %v8830_v56, %v11793_v19  ;;  %v8832_v34 = vadd.f32 %v6845_v50, %v12193_v42  ;;  %v12202_v42 = vld [vmem:[#allocation32_spill] sm:$0xff] }
 0x3e4   : > { %v7276_v1 = vmax.f32 %v7244_v25, 0.0  ;;  %v7245_v2 = vadd.f32 %v8831_v23, %v11787_v49 }
 0x3e5   : > { %v7345_v59 = vmax.f32 %v7313_v39, 0.0  ;;  %v7314_v11 = vadd.f32 %v8832_v34, %v11793_v19 }
 0x3e6   : > { %v7277_v0 = vmax.f32 %v7245_v2, 0.0  ;;  %v12203_v2 = vld [vmem:[#allocation33_spill] sm:$0xff] }
 0x3e7   : > { %v7346_v46 = vmax.f32 %v7314_v11, 0.0  ;;  %v6849_v53 = vpop.f32.mrb[12].mxu0  ;;  %v11826_v61 = vadd.f32 %v7345_v59, %v7276_v1 }
 0x3e8   : > { %v8833_v60 = vadd.f32 %v6849_v53, %v12194_v48  ;;  %v6851_v4 = vpop.f32.mrb[13].mxu0  ;;  %v12204_v53 = vld [vmem:[#allocation34_spill] sm:$0xff] }
 0x3e9   : > { %v8834_v29 = vadd.f32 %v6851_v4, %v12195_v27  ;;  %v6853_v51 = vpop.f32.mrb[14].mxu0  ;;  %v11830_v17 = vadd.f32 %v7346_v46, %v7277_v0  ;;  %v12205_v27 = vld [vmem:[#allocation35_spill] sm:$0xff] }
 0x3ea   : > { %v7246_v30 = vadd.f32 %v8833_v60, %v11787_v49  ;;  %v8835_v40 = vadd.f32 %v6853_v51, %v12196_v13  ;;  %v6855_v3 = vpop.f32.mrb[15].mxu0 }
 0x3eb   : > { %v7315_v22 = vadd.f32 %v8834_v29, %v11793_v19  ;;  %v8836_v63 = vadd.f32 %v6855_v3, %v12197_v21 }
 0x3ec   : > { %v7278_v33 = vmax.f32 %v7246_v30, 0.0  ;;  %v7247_v55 = vadd.f32 %v8835_v40, %v11787_v49 }
 0x3ed   : > { %v7347_v52 = vmax.f32 %v7315_v22, 0.0  ;;  %v7316_v16 = vadd.f32 %v8836_v63, %v11793_v19 }
 0x3ee   : > { %v7279_v58 = vmax.f32 %v7247_v55, 0.0 }
 0x3ef   : > { %v7348_v18 = vmax.f32 %v7316_v16, 0.0  ;;  %v6859_v57 = vpop.f32.mrb[16].mxu0  ;;  %v11838_v31 = vadd.f32 %v7347_v52, %v7278_v33  ;;  %v12206_v33 = vld [vmem:[#allocation36_spill] sm:$0xff]  ;;  %v12207_v16 = vld [vmem:[#allocation37_spill] sm:$0xff] }
 0x3f0   : > { %v8837_v45 = vadd.f32 %v6859_v57, %v12198_v35  ;;  %v6861_v41 = vpop.f32.mrb[17].mxu0 }
 0x3f1   : > { %v8838_v38 = vadd.f32 %v6861_v41, %v12199_v32  ;;  %v6863_v54 = vpop.f32.mrb[18].mxu0  ;;  %v11842_v7 = vadd.f32 %v7348_v18, %v7279_v58 }
 0x3f2   : > { %v7248_v36 = vadd.f32 %v8837_v45, %v11787_v49  ;;  %v8839_v47 = vadd.f32 %v6863_v54, %v12200_v6  ;;  %v6865_v10 = vpop.f32.mrb[19].mxu0  ;;  %v12208_v45 = vld [vmem:[#allocation38_spill] sm:$0xff]  ;;  %v12209_v54 = vld [vmem:[#allocation39_spill] sm:$0xff] }
 0x3f3   : > { %v7317_v43 = vadd.f32 %v8838_v38, %v11793_v19  ;;  %v8840_v14 = vadd.f32 %v6865_v10, %v12201_v44 }
 0x3f4   : > { %v7280_v8 = vmax.f32 %v7248_v36, 0.0  ;;  %v7249_v56 = vadd.f32 %v8839_v47, %v11787_v49 }
 0x3f5   : > { %v7349_v12 = vmax.f32 %v7317_v43, 0.0  ;;  %v7318_v25 = vadd.f32 %v8840_v14, %v11793_v19 }
 0x3f6   : > { %v7281_v26 = vmax.f32 %v7249_v56, 0.0 }
 0x3f7   : > { %v7350_v23 = vmax.f32 %v7318_v25, 0.0  ;;  %v6869_v50 = vpop.f32.mrb[20].mxu0  ;;  %v11850_v39 = vadd.f32 %v7349_v12, %v7280_v8  ;;  %v12210_v12 = vld [vmem:[#allocation40_spill] sm:$0xff] }
 0x3f8   : > { %v8841_v34 = vadd.f32 %v6869_v50, %v12202_v42  ;;  %v6871_v1 = vpop.f32.mrb[21].mxu0 }
 0x3f9   : > { %v8842_v59 = vadd.f32 %v6871_v1, %v12203_v2  ;;  %v6873_v11 = vpop.f32.mrb[22].mxu0  ;;  %v11854_v0 = vadd.f32 %v7350_v23, %v7281_v26  ;;  %v12211_v23 = vld [vmem:[#allocation41_spill] sm:$0xff]  ;;  %v12212_v2 = vld [vmem:[#allocation42_spill] sm:$0xff] }
 0x3fa   : > { %v7250_v46 = vadd.f32 %v8841_v34, %v11787_v49  ;;  %v8843_v48 = vadd.f32 %v6873_v11, %v12204_v53  ;;  %v6875_v60 = vpop.f32.mrb[23].mxu0  ;;  %v12213_v53 = vld [vmem:[#allocation43_spill] sm:$0xff] }
 0x3fb   : > { %v7319_v4 = vadd.f32 %v8842_v59, %v11793_v19  ;;  %v8844_v29 = vadd.f32 %v6875_v60, %v12205_v27 }
 0x3fc   : > { %v7282_v51 = vmax.f32 %v7250_v46, 0.0  ;;  %v7251_v30 = vadd.f32 %v8843_v48, %v11787_v49 }
 0x3fd   : > { %v7351_v13 = vmax.f32 %v7319_v4, 0.0  ;;  %v7320_v40 = vadd.f32 %v8844_v29, %v11793_v19 }
 0x3fe   : > { %v7283_v3 = vmax.f32 %v7251_v30, 0.0 }
 0x3ff   : > { %v7352_v22 = vmax.f32 %v7320_v40, 0.0  ;;  %v6879_v21 = vpop.f32.mrb[24].mxu0  ;;  %v11862_v63 = vadd.f32 %v7351_v13, %v7282_v51 }
 0x400   : > { %v8845_v55 = vadd.f32 %v6879_v21, %v12206_v33  ;;  %v6881_v52 = vpop.f32.mrb[25].mxu0  ;;  %v12215_v33 = vld [vmem:[#allocation45_spill] sm:$0xff] }
 0x401   : > { %v8846_v58 = vadd.f32 %v6881_v52, %v12207_v16  ;;  %v6883_v18 = vpop.f32.mrb[26].mxu0  ;;  %v11866_v57 = vadd.f32 %v7352_v22, %v7283_v3  ;;  %v12214_v3 = vld [vmem:[#allocation44_spill] sm:$0xff] }
 0x402   : > { %v7252_v35 = vadd.f32 %v8845_v55, %v11787_v49  ;;  %v8847_v41 = vadd.f32 %v6883_v18, %v12208_v45  ;;  %v6885_v32 = vpop.f32.mrb[27].mxu0  ;;  %v12216_v18 = vld [vmem:[#allocation46_spill] sm:$0xff] }
 0x403   : > { %v7321_v38 = vadd.f32 %v8846_v58, %v11793_v19  ;;  %v8848_v36 = vadd.f32 %v6885_v32, %v12209_v54  ;;  %v12217_v32 = vld [vmem:[#allocation47_spill] sm:$0xff]  ;;  %v11899_v54 = vld [vmem:[%s12080_s2 + $0x2] ss:$0 sm:$0xff] }
 0x404   : > { %v7284_v6 = vmax.f32 %v7252_v35, 0.0  ;;  %v7253_v47 = vadd.f32 %v8847_v41, %v11787_v49 }
 0x405   : > { %v7353_v10 = vmax.f32 %v7321_v38, 0.0  ;;  %v7322_v43 = vadd.f32 %v8848_v36, %v11793_v19 }
 0x406   : > { %v7285_v44 = vmax.f32 %v7253_v47, 0.0 }
 0x407   : > { %v7354_v14 = vmax.f32 %v7322_v43, 0.0  ;;  %v6889_v8 = vpop.f32.mrb[28].mxu0  ;;  %v11874_v56 = vadd.f32 %v7353_v10, %v7284_v6 }
 0x408   : > { %v8849_v25 = vadd.f32 %v6889_v8, %v12210_v12  ;;  %v6891_v26 = vpop.f32.mrb[29].mxu0 }
 0x409   : > { %v8850_v50 = vadd.f32 %v6891_v26, %v12211_v23  ;;  %v6893_v42 = vpop.f32.mrb[30].mxu0  ;;  %v11878_v34 = vadd.f32 %v7354_v14, %v7285_v44 }
 0x40a   : > { %v7254_v1 = vadd.f32 %v8849_v25, %v11787_v49  ;;  %v8851_v59 = vadd.f32 %v6893_v42, %v12212_v2  ;;  %v6895_v11 = vpop.f32.mrb[31].mxu0 }
 0x40b   : > { %v7323_v46 = vadd.f32 %v8850_v50, %v11793_v19  ;;  %v8852_v48 = vadd.f32 %v6895_v11, %v12213_v53 }
 0x40c   : > { %v7286_v60 = vmax.f32 %v7254_v1, 0.0  ;;  %v7255_v4 = vadd.f32 %v8851_v59, %v11787_v49  ;;  %v12218_v59 = vld [vmem:[#allocation48_spill] sm:$0xff] }
 0x40d   : > { %v7355_v27 = vmax.f32 %v7323_v46, 0.0  ;;  %v7324_v29 = vadd.f32 %v8852_v48, %v11793_v19 }
 0x40e   : > { %v7287_v51 = vmax.f32 %v7255_v4, 0.0 }
 0x40f   : > { %v7356_v30 = vmax.f32 %v7324_v29, 0.0  ;;  %v6899_v13 = vpop.f32.mrb[32].mxu0  ;;  %v11886_v40 = vadd.f32 %v7355_v27, %v7286_v60  ;;  %v12219_v60 = vld [vmem:[#allocation49_spill] sm:$0xff] }
 0x410   : > { %v8853_v22 = vadd.f32 %v6899_v13, %v12214_v3  ;;  %v6901_v21 = vpop.f32.mrb[33].mxu0  ;;  %v12220_v3 = vld [vmem:[#allocation50_spill] sm:$0xff] }
 0x411   : > { %v8854_v55 = vadd.f32 %v6901_v21, %v12215_v33  ;;  %v6903_v52 = vpop.f32.mrb[34].mxu0  ;;  %v11890_v16 = vadd.f32 %v7356_v30, %v7287_v51 }
 0x412   : > { %v7256_v58 = vadd.f32 %v8853_v22, %v11787_v49  ;;  %v8855_v35 = vadd.f32 %v6903_v52, %v12216_v18  ;;  %v6905_v45 = vpop.f32.mrb[35].mxu0 }
 0x413   : > { %v7325_v41 = vadd.f32 %v8854_v55, %v11793_v19  ;;  %v8856_v38 = vadd.f32 %v6905_v45, %v12217_v32 }
 0x414   : > { %v7288_v36 = vmax.f32 %v7256_v58, 0.0  ;;  %v7257_v6 = vadd.f32 %v8855_v35, %v11787_v49  ;;  %v12221_v58 = vld [vmem:[#allocation51_spill] sm:$0xff] }
 0x415   : > { %v7357_v47 = vmax.f32 %v7325_v41, 0.0  ;;  %v7326_v10 = vadd.f32 %v8856_v38, %v11793_v19  ;;  %v8789_v43 = vpop.f32.mrb[64].mxu1 }
 0x416   : > { %v7289_v44 = vmax.f32 %v7257_v6, 0.0  ;;  %v7412_v14 = vadd.f32 %v8789_v43, %v11899_v54  ;;  %v7012_v8 = vpop.f32.mrb[65].mxu1 }
 0x417   : > { %v7358_v12 = vmax.f32 %v7326_v10, 0.0  ;;  %v7410_v25 = vadd.f32 %v11899_v54, %v7012_v8  ;;  %v8790_v26 = vpop.f32.mrb[66].mxu1  ;;  %v6909_v23 = vpop.f32.mrb[36].mxu0  ;;  %v11906_v50 = vadd.f32 %v7357_v47, %v7288_v36 }
 0x418   : > { %v7444_v42 = vmax.f32 %v7412_v14, 0.0  ;;  %v7413_v1 = vadd.f32 %v8790_v26, %v11899_v54  ;;  %v7015_v2 = vpop.f32.mrb[67].mxu1  ;;  %v8857_v11 = vadd.f32 %v6909_v23, %v12218_v59  ;;  %v6911_v46 = vpop.f32.mrb[37].mxu0 }
 0x419   : > { %v7442_v53 = vmax.f32 %v7410_v25, 0.0  ;;  %v7411_v48 = vadd.f32 %v11899_v54, %v7015_v2  ;;  %v8858_v4 = vadd.f32 %v6911_v46, %v12219_v60  ;;  %v6913_v27 = vpop.f32.mrb[38].mxu0  ;;  %v11917_v29 = vadd.f32 %v7358_v12, %v7289_v44  ;;  %v12222_v25 = vld [vmem:[#allocation52_spill] sm:$0xff]  ;;  %v12223_v2 = vld [vmem:[#allocation53_spill] sm:$0xff] }
 0x41a   : > { %v7476_v51 = vadd.f32 %v7444_v42, %v11814_v24  ;;  %v7445_v30 = vmax.f32 %v7413_v1, 0.0  ;;  %v7258_v13 = vadd.f32 %v8857_v11, %v11787_v49  ;;  %v8859_v22 = vadd.f32 %v6913_v27, %v12220_v3  ;;  %v6915_v21 = vpop.f32.mrb[39].mxu0 }
 0x41b   : > { %v7474_v33 = vadd.f32 %v7442_v53, %v11802_v5  ;;  %v7443_v55 = vmax.f32 %v7411_v48, 0.0  ;;  %v7327_v52 = vadd.f32 %v8858_v4, %v11793_v19  ;;  %v8860_v18 = vadd.f32 %v6915_v21, %v12221_v58  ;;  %v12224_v4 = vld [vmem:[#allocation54_spill] sm:$0xff] }
 0x41c   : > { %7508 = vst [vmem:[%s11913_s13 + $0x10] sm:$0xff] %v7476_v51  ;;  %v7477_v35 = vadd.f32 %v7445_v30, %v11818_v28  ;;  %v7290_v45 = vmax.f32 %v7258_v13, 0.0  ;;  %v7259_v24 = vadd.f32 %v8859_v22, %v11787_v49  ;;  %v12225_v22 = vld [vmem:[#allocation55_spill] sm:$0xff] }
 0x41d   : > { %7506 = vst [vmem:[%s11913_s13] sm:$0xff] %v7474_v33  ;;  %v7475_v41 = vadd.f32 %v7443_v55, %v11806_v9  ;;  %v7359_v32 = vmax.f32 %v7327_v52, 0.0  ;;  %v7328_v38 = vadd.f32 %v8860_v18, %v11793_v19  ;;  %v8793_v36 = vpop.f32.mrb[68].mxu1 }
 0x41e   : > { %7509 = vst [vmem:[%s11913_s13 + $0x18] sm:$0xff] %v7477_v35  ;;  %v7291_v5 = vmax.f32 %v7259_v24, 0.0  ;;  %v7416_v6 = vadd.f32 %v8793_v36, %v11899_v54  ;;  %v7028_v47 = vpop.f32.mrb[69].mxu1 }
 0x41f   : > { %7507 = vst [vmem:[%s11913_s13 + $0x8] sm:$0xff] %v7475_v41  ;;  %v7360_v10 = vmax.f32 %v7328_v38, 0.0  ;;  %v7414_v43 = vadd.f32 %v11899_v54, %v7028_v47  ;;  %v8794_v28 = vpop.f32.mrb[70].mxu1  ;;  %v6919_v44 = vpop.f32.mrb[40].mxu0  ;;  %v11935_v14 = vadd.f32 %v7359_v32, %v7290_v45  ;;  %v12226_v47 = vld [vmem:[#allocation56_spill] sm:$0xff] }
 0x420   : > { %v7448_v8 = vmax.f32 %v7416_v6, 0.0  ;;  %v7417_v9 = vadd.f32 %v8794_v28, %v11899_v54  ;;  %v7031_v12 = vpop.f32.mrb[71].mxu1  ;;  %v8861_v26 = vadd.f32 %v6919_v44, %v12222_v25  ;;  %v6921_v23 = vpop.f32.mrb[41].mxu0 }
 0x421   : > { %v7446_v42 = vmax.f32 %v7414_v43, 0.0  ;;  %v7415_v1 = vadd.f32 %v11899_v54, %v7031_v12  ;;  %v8862_v59 = vadd.f32 %v6921_v23, %v12223_v2  ;;  %v6923_v11 = vpop.f32.mrb[42].mxu0  ;;  %v11941_v46 = vadd.f32 %v7360_v10, %v7291_v5 }
 0x422   : > { %v7480_v53 = vadd.f32 %v7448_v8, %v11838_v31  ;;  %v7449_v48 = vmax.f32 %v7417_v9, 0.0  ;;  %v7260_v60 = vadd.f32 %v8861_v26, %v11787_v49  ;;  %v8863_v27 = vadd.f32 %v6923_v11, %v12224_v4  ;;  %v6925_v51 = vpop.f32.mrb[43].mxu0  ;;  %v12227_v8 = vld [vmem:[#allocation57_spill] sm:$0xff] }
 0x423   : > { %v7478_v30 = vadd.f32 %v7446_v42, %v11826_v61  ;;  %v7447_v13 = vmax.f32 %v7415_v1, 0.0  ;;  %v7329_v3 = vadd.f32 %v8862_v59, %v11793_v19  ;;  %v8864_v21 = vadd.f32 %v6925_v51, %v12225_v22  ;;  %v12228_v1 = vld [vmem:[#allocation58_spill] sm:$0xff] }
 0x424   : > { %7512 = vst [vmem:[%s11913_s13 + $0x30] sm:$0xff] %v7480_v53  ;;  %v7481_v33 = vadd.f32 %v7449_v48, %v11842_v7  ;;  %v7292_v55 = vmax.f32 %v7260_v60, 0.0  ;;  %v7261_v31 = vadd.f32 %v8863_v27, %v11787_v49  ;;  %v12229_v60 = vld [vmem:[#allocation59_spill] sm:$0xff] }
 0x425   : > { %7510 = vst [vmem:[%s11913_s13 + $0x20] sm:$0xff] %v7478_v30  ;;  %v7479_v52 = vadd.f32 %v7447_v13, %v11830_v17  ;;  %v7361_v58 = vmax.f32 %v7329_v3, 0.0  ;;  %v7330_v18 = vadd.f32 %v8864_v21, %v11793_v19  ;;  %v8797_v35 = vpop.f32.mrb[72].mxu1 }
 0x426   : > { %7513 = vst [vmem:[%s11913_s13 + $0x38] sm:$0xff] %v7481_v33  ;;  %v7293_v61 = vmax.f32 %v7261_v31, 0.0  ;;  %v7420_v45 = vadd.f32 %v8797_v35, %v11899_v54  ;;  %v7044_v24 = vpop.f32.mrb[73].mxu1 }
 0x427   : > { %7511 = vst [vmem:[%s11913_s13 + $0x28] sm:$0xff] %v7479_v52  ;;  %v7362_v41 = vmax.f32 %v7330_v18, 0.0  ;;  %v7418_v32 = vadd.f32 %v11899_v54, %v7044_v24  ;;  %v8798_v7 = vpop.f32.mrb[74].mxu1  ;;  %v6929_v38 = vpop.f32.mrb[44].mxu0  ;;  %v11959_v36 = vadd.f32 %v7361_v58, %v7292_v55 }
 0x428   : > { %v7452_v5 = vmax.f32 %v7420_v45, 0.0  ;;  %v7421_v17 = vadd.f32 %v8798_v7, %v11899_v54  ;;  %v7047_v6 = vpop.f32.mrb[75].mxu1  ;;  %v8865_v10 = vadd.f32 %v6929_v38, %v12226_v47  ;;  %v6931_v43 = vpop.f32.mrb[45].mxu0  ;;  %v12231_v7 = vld [vmem:[#allocation3_spill] sm:$0xff] }
 0x429   : > { %v7450_v28 = vmax.f32 %v7418_v32, 0.0  ;;  %v7419_v44 = vadd.f32 %v11899_v54, %v7047_v6  ;;  %v8866_v9 = vadd.f32 %v6931_v43, %v12227_v8  ;;  %v6933_v12 = vpop.f32.mrb[46].mxu0  ;;  %v11965_v25 = vadd.f32 %v7362_v41, %v7293_v61  ;;  %v12230_v61 = vld [vmem:[#allocation2_spill] sm:$0xff]  ;;  %v12232_v43 = vld [vmem:[#allocation4_spill] sm:$0xff] }
 0x42a   : > { %v7484_v26 = vadd.f32 %v7452_v5, %v11862_v63  ;;  %v7453_v23 = vmax.f32 %v7421_v17, 0.0  ;;  %v7262_v42 = vadd.f32 %v8865_v10, %v11787_v49  ;;  %v8867_v2 = vadd.f32 %v6933_v12, %v12228_v1  ;;  %v6935_v59 = vpop.f32.mrb[47].mxu0 }
 0x42b   : > { %v7482_v11 = vadd.f32 %v7450_v28, %v11850_v39  ;;  %v7451_v53 = vmax.f32 %v7419_v44, 0.0  ;;  %v7331_v48 = vadd.f32 %v8866_v9, %v11793_v19  ;;  %v8868_v4 = vadd.f32 %v6935_v59, %v12229_v60 }
 0x42c   : > { %7516 = vst [vmem:[%s11913_s13 + $0x50] sm:$0xff] %v7484_v26  ;;  %v7485_v27 = vadd.f32 %v7453_v23, %v11866_v57  ;;  %v7294_v51 = vmax.f32 %v7262_v42, 0.0  ;;  %v7263_v63 = vadd.f32 %v8867_v2, %v11787_v49  ;;  %v12233_v26 = vld [vmem:[#allocation5_spill] sm:$0xff] }
 0x42d   : > { %7514 = vst [vmem:[%s11913_s13 + $0x40] sm:$0xff] %v7482_v11  ;;  %v7483_v30 = vadd.f32 %v7451_v53, %v11854_v0  ;;  %v7363_v13 = vmax.f32 %v7331_v48, 0.0  ;;  %v7332_v3 = vadd.f32 %v8868_v4, %v11793_v19  ;;  %v8801_v22 = vpop.f32.mrb[76].mxu1 }
 0x42e   : > { %7517 = vst [vmem:[%s11913_s13 + $0x58] sm:$0xff] %v7485_v27  ;;  %v7295_v39 = vmax.f32 %v7263_v63, 0.0  ;;  %v7424_v21 = vadd.f32 %v8801_v22, %v11899_v54  ;;  %v7060_v33 = vpop.f32.mrb[77].mxu1 }
 0x42f   : > { %7515 = vst [vmem:[%s11913_s13 + $0x48] sm:$0xff] %v7483_v30  ;;  %v7364_v55 = vmax.f32 %v7332_v3, 0.0  ;;  %v7422_v31 = vadd.f32 %v11899_v54, %v7060_v33  ;;  %v8802_v57 = vpop.f32.mrb[78].mxu1  ;;  %v6939_v52 = vpop.f32.mrb[48].mxu0  ;;  %v11983_v58 = vadd.f32 %v7363_v13, %v7294_v51  ;;  %v12234_v3 = vld [vmem:[#allocation6_spill] sm:$0xff] }
 0x430   : > { %v7456_v18 = vmax.f32 %v7424_v21, 0.0  ;;  %v7425_v0 = vadd.f32 %v8802_v57, %v11899_v54  ;;  %v7063_v35 = vpop.f32.mrb[79].mxu1  ;;  %v8869_v45 = vadd.f32 %v6939_v52, %v12230_v61  ;;  %v6941_v24 = vpop.f32.mrb[49].mxu0  ;;  %v12236_v61 = vld [vmem:[#allocation8_spill] sm:$0xff] }
 0x431   : > { %v7454_v41 = vmax.f32 %v7422_v31, 0.0  ;;  %v7423_v32 = vadd.f32 %v11899_v54, %v7063_v35  ;;  %v8870_v38 = vadd.f32 %v6941_v24, %v12231_v7  ;;  %v6943_v5 = vpop.f32.mrb[50].mxu0  ;;  %v11989_v17 = vadd.f32 %v7364_v55, %v7295_v39  ;;  %v12235_v55 = vld [vmem:[#allocation7_spill] sm:$0xff] }
 0x432   : > { %v7488_v6 = vadd.f32 %v7456_v18, %v11886_v40  ;;  %v7457_v47 = vmax.f32 %v7425_v0, 0.0  ;;  %v7264_v10 = vadd.f32 %v8869_v45, %v11787_v49  ;;  %v8871_v28 = vadd.f32 %v6943_v5, %v12232_v43  ;;  %v6945_v44 = vpop.f32.mrb[51].mxu0 }
 0x433   : > { %v7486_v8 = vadd.f32 %v7454_v41, %v11874_v56  ;;  %v7455_v9 = vmax.f32 %v7423_v32, 0.0  ;;  %v7333_v12 = vadd.f32 %v8870_v38, %v11793_v19  ;;  %v8872_v23 = vadd.f32 %v6945_v44, %v12233_v26  ;;  %v12237_v38 = vld [vmem:[#allocation10_spill] sm:$0xff] }
 0x434   : > { %7520 = vst [vmem:[%s11913_s13 + $0x70] sm:$0xff] %v7488_v6  ;;  %v7489_v42 = vadd.f32 %v7457_v47, %v11890_v16  ;;  %v7296_v1 = vmax.f32 %v7264_v10, 0.0  ;;  %v7265_v40 = vadd.f32 %v8871_v28, %v11787_v49 }
 0x435   : > { %7518 = vst [vmem:[%s11913_s13 + $0x60] sm:$0xff] %v7486_v8  ;;  %v7487_v2 = vadd.f32 %v7455_v9, %v11878_v34  ;;  %v7365_v59 = vmax.f32 %v7333_v12, 0.0  ;;  %v7334_v11 = vadd.f32 %v8872_v23, %v11793_v19  ;;  %v8805_v53 = vpop.f32.mrb[80].mxu1 }
 0x436   : > { %7521 = vst [vmem:[%s11913_s13 + $0x78] sm:$0xff] %v7489_v42  ;;  %v7297_v56 = vmax.f32 %v7265_v40, 0.0  ;;  %v7428_v48 = vadd.f32 %v8805_v53, %v11899_v54  ;;  %v7076_v60 = vpop.f32.mrb[81].mxu1 }
 0x437   : > { %7519 = vst [vmem:[%s11913_s13 + $0x68] sm:$0xff] %v7487_v2  ;;  %v7366_v4 = vmax.f32 %v7334_v11, 0.0  ;;  %v7426_v27 = vadd.f32 %v11899_v54, %v7076_v60  ;;  %v8806_v16 = vpop.f32.mrb[82].mxu1  ;;  %v6949_v51 = vpop.f32.mrb[52].mxu0  ;;  %v12007_v63 = vadd.f32 %v7365_v59, %v7296_v1  ;;  %v12238_v2 = vld [vmem:[#allocation11_spill] sm:$0xff] }
 0x438   : > { %v7460_v30 = vmax.f32 %v7428_v48, 0.0  ;;  %v7429_v34 = vadd.f32 %v8806_v16, %v11899_v54  ;;  %v7079_v13 = vpop.f32.mrb[83].mxu1  ;;  %v8873_v22 = vadd.f32 %v6949_v51, %v12234_v3  ;;  %v6951_v39 = vpop.f32.mrb[53].mxu0 }
 0x439   : > { %v7458_v21 = vmax.f32 %v7426_v27, 0.0  ;;  %v7427_v33 = vadd.f32 %v11899_v54, %v7079_v13  ;;  %v8874_v31 = vadd.f32 %v6951_v39, %v12235_v55  ;;  %v6953_v57 = vpop.f32.mrb[54].mxu0  ;;  %v12013_v52 = vadd.f32 %v7366_v4, %v7297_v56 }
 0x43a   : > { %v7492_v18 = vadd.f32 %v7460_v30, %v11935_v14  ;;  %v7461_v0 = vmax.f32 %v7429_v34, 0.0  ;;  %v7266_v35 = vadd.f32 %v8873_v22, %v11787_v49  ;;  %v8875_v45 = vadd.f32 %v6953_v57, %v12236_v61  ;;  %v6955_v24 = vpop.f32.mrb[55].mxu0 }
 0x43b   : > { %v7490_v41 = vadd.f32 %v7458_v21, %v11906_v50  ;;  %v7459_v32 = vmax.f32 %v7427_v33, 0.0  ;;  %v7335_v7 = vadd.f32 %v8874_v31, %v11793_v19  ;;  %v8876_v5 = vadd.f32 %v6955_v24, %v12237_v38 }
 0x43c   : > { %7524 = vst [vmem:[%s11913_s13 + $0x90] sm:$0xff] %v7492_v18  ;;  %v7493_v6 = vadd.f32 %v7461_v0, %v11941_v46  ;;  %v7298_v47 = vmax.f32 %v7266_v35, 0.0  ;;  %v7267_v14 = vadd.f32 %v8875_v45, %v11787_v49 }
 0x43d   : > { %7522 = vst [vmem:[%s11913_s13 + $0x80] sm:$0xff] %v7490_v41  ;;  %v7491_v10 = vadd.f32 %v7459_v32, %v11917_v29  ;;  %v7367_v43 = vmax.f32 %v7335_v7, 0.0  ;;  %v7336_v28 = vadd.f32 %v8876_v5, %v11793_v19  ;;  %v8809_v44 = vpop.f32.mrb[84].mxu1  ;;  %v12239_v41 = vld [vmem:[#allocation60_spill] sm:$0xff] }
 0x43e   : > { %7525 = vst [vmem:[%s11913_s13 + $0x98] sm:$0xff] %v7493_v6  ;;  %v7299_v50 = vmax.f32 %v7267_v14, 0.0  ;;  %v7432_v8 = vadd.f32 %v8809_v44, %v11899_v54  ;;  %v7092_v9 = vpop.f32.mrb[85].mxu1  ;;  %v12240_v44 = vld [vmem:[#allocation61_spill] sm:$0xff] }
 0x43f   : > { %7523 = vst [vmem:[%s11913_s13 + $0x88] sm:$0xff] %v7491_v10  ;;  %v7368_v12 = vmax.f32 %v7336_v28, 0.0  ;;  %v7430_v26 = vadd.f32 %v11899_v54, %v7092_v9  ;;  %v8810_v46 = vpop.f32.mrb[86].mxu1  ;;  %v6959_v23 = vpop.f32.mrb[56].mxu0  ;;  %v7399_v42 = vadd.f32 %v7367_v43, %v7298_v47 }
 0x440   : > { %v7464_v1 = vmax.f32 %v7432_v8, 0.0  ;;  %v7433_v40 = vadd.f32 %v8810_v46, %v11899_v54  ;;  %v7095_v29 = vpop.f32.mrb[87].mxu1  ;;  %v8877_v59 = vadd.f32 %v6959_v23, %v12238_v2  ;;  %v6961_v11 = vpop.f32.mrb[57].mxu0  ;;  %v12241_v46 = vld [vmem:[#allocation62_spill] sm:$0xff] }
 0x441   : > { %v7462_v53 = vmax.f32 %v7430_v26, 0.0  ;;  %v7431_v56 = vadd.f32 %v11899_v54, %v7095_v29  ;;  %v8878_v48 = vadd.f32 %v6961_v11, %v11322_v62  ;;  %v6963_v60 = vpop.f32.mrb[58].mxu0  ;;  %v7400_v4 = vadd.f32 %v7368_v12, %v7299_v50 }
 0x442   : > { %v7496_v27 = vadd.f32 %v7464_v1, %v11983_v58  ;;  %v7465_v16 = vmax.f32 %v7433_v40, 0.0  ;;  %v7268_v51 = vadd.f32 %v8877_v59, %v11787_v49  ;;  %v8879_v30 = vadd.f32 %v6963_v60, %v11324_v15  ;;  %v6965_v34 = vpop.f32.mrb[59].mxu0 }
 0x443   : > { %v7494_v13 = vadd.f32 %v7462_v53, %v11959_v36  ;;  %v7463_v3 = vmax.f32 %v7431_v56, 0.0  ;;  %v7337_v22 = vadd.f32 %v8878_v48, %v11793_v19  ;;  %v8880_v62 = vadd.f32 %v6965_v34, %v11327_v20 }
 0x444   : > { %7528 = vst [vmem:[%s11913_s13 + $0xb0] sm:$0xff] %v7496_v27  ;;  %v7497_v39 = vadd.f32 %v7465_v16, %v11989_v17  ;;  %v7300_v21 = vmax.f32 %v7268_v51, 0.0  ;;  %v7269_v58 = vadd.f32 %v8879_v30, %v11787_v49 }
 0x445   : > { %7526 = vst [vmem:[%s11913_s13 + $0xa0] sm:$0xff] %v7494_v13  ;;  %v7495_v33 = vadd.f32 %v7463_v3, %v11965_v25  ;;  %v7369_v55 = vmax.f32 %v7337_v22, 0.0  ;;  %v7338_v15 = vadd.f32 %v8880_v62, %v11793_v19  ;;  %v8813_v31 = vpop.f32.mrb[88].mxu1 }
 0x446   : > { %7529 = vst [vmem:[%s11913_s13 + $0xb8] sm:$0xff] %v7497_v39  ;;  %v7301_v36 = vmax.f32 %v7269_v58, 0.0  ;;  %v7436_v57 = vadd.f32 %v8813_v31, %v11899_v54  ;;  %v7108_v18 = vpop.f32.mrb[89].mxu1 }
 0x447   : > { %7527 = vst [vmem:[%s11913_s13 + $0xa8] sm:$0xff] %v7495_v33  ;;  %v7370_v20 = vmax.f32 %v7338_v15, 0.0  ;;  %v7434_v0 = vadd.f32 %v11899_v54, %v7108_v18  ;;  %v8814_v17 = vpop.f32.mrb[90].mxu1  ;;  %v6969_v35 = vpop.f32.mrb[60].mxu0  ;;  %v7401_v61 = vadd.f32 %v7369_v55, %v7300_v21 }
 0x448   : > { %v7468_v45 = vmax.f32 %v7436_v57, 0.0  ;;  %v7437_v24 = vadd.f32 %v8814_v17, %v11899_v54  ;;  %v7111_v25 = vpop.f32.mrb[91].mxu1  ;;  %v8881_v32 = vadd.f32 %v6969_v35, %v12239_v41  ;;  %v6971_v7 = vpop.f32.mrb[61].mxu0 }
 0x449   : > { %v7466_v38 = vmax.f32 %v7434_v0, 0.0  ;;  %v7435_v5 = vadd.f32 %v11899_v54, %v7111_v25  ;;  %v8882_v6 = vadd.f32 %v6971_v7, %v11346_v37  ;;  %v6973_v47 = vpop.f32.mrb[62].mxu0  ;;  %v7402_v14 = vadd.f32 %v7370_v20, %v7301_v36 }
 0x44a   : > { %v7500_v10 = vadd.f32 %v7468_v45, %v7399_v42  ;;  %v7469_v43 = vmax.f32 %v7437_v24, 0.0  ;;  %v7270_v28 = vadd.f32 %v8881_v32, %v11787_v49  ;;  %v8883_v50 = vadd.f32 %v6973_v47, %v12240_v44  ;;  %v6975_v8 = vpop.f32.mrb[63].mxu0 }
 0x44b   : > { %v7498_v9 = vadd.f32 %v7466_v38, %v12007_v63  ;;  %v7467_v12 = vmax.f32 %v7435_v5, 0.0  ;;  %v7339_v26 = vadd.f32 %v8882_v6, %v11793_v19  ;;  %v8884_v23 = vadd.f32 %v6975_v8, %v12241_v46 }
 0x44c   : > { %7532 = vst [vmem:[%s11913_s13 + $0xd0] sm:$0xff] %v7500_v10  ;;  %v7501_v37 = vadd.f32 %v7469_v43, %v7400_v4  ;;  %v7302_v1 = vmax.f32 %v7270_v28, 0.0  ;;  %v7271_v42 = vadd.f32 %v8883_v50, %v11787_v49 }
 0x44d   : > { %7530 = vst [vmem:[%s11913_s13 + $0xc0] sm:$0xff] %v7498_v9  ;;  %v7499_v40 = vadd.f32 %v7467_v12, %v12013_v52  ;;  %v7371_v29 = vmax.f32 %v7339_v26, 0.0  ;;  %v7340_v2 = vadd.f32 %v8884_v23, %v11793_v19  ;;  %v8817_v59 = vpop.f32.mrb[92].mxu1 }
 0x44e   : > { %7533 = vst [vmem:[%s11913_s13 + $0xd8] sm:$0xff] %v7501_v37  ;;  %v7303_v63 = vmax.f32 %v7271_v42, 0.0  ;;  %v7440_v11 = vadd.f32 %v8817_v59, %v11899_v54  ;;  %v7124_v53 = vpop.f32.mrb[93].mxu1 }
 0x44f   : > { %7531 = vst [vmem:[%s11913_s13 + $0xc8] sm:$0xff] %v7499_v40  ;;  %v7372_v56 = vmax.f32 %v7340_v2, 0.0  ;;  %v7403_v48 = vadd.f32 %v7371_v29, %v7302_v1  ;;  %v7438_v60 = vadd.f32 %v11899_v54, %v7124_v53  ;;  %v8818_v49 = vpop.f32.mrb[94].mxu1 }
 0x450   : > { %v7472_v52 = vmax.f32 %v7440_v11, 0.0  ;;  %v7441_v4 = vadd.f32 %v8818_v49, %v11899_v54  ;;  %v7127_v19 = vpop.f32.mrb[95].mxu1 }
 0x451   : > { %v7470_v27 = vmax.f32 %v7438_v60, 0.0  ;;  %v7404_v16 = vadd.f32 %v7372_v56, %v7303_v63  ;;  %v7439_v51 = vadd.f32 %v11899_v54, %v7127_v19 }
 0x452   : > { %v7504_v30 = vadd.f32 %v7472_v52, %v7403_v48  ;;  %v7473_v34 = vmax.f32 %v7441_v4, 0.0 }
 0x453   : > { %v7502_v13 = vadd.f32 %v7470_v27, %v7401_v61  ;;  %v7471_v3 = vmax.f32 %v7439_v51, 0.0 }
 0x454   : > { %7536 = vst [vmem:[%s11913_s13 + $0xf0] sm:$0xff] %v7504_v30  ;;  %v7505_v22 = vadd.f32 %v7473_v34, %v7404_v16 }
 0x455   : > { %7534 = vst [vmem:[%s11913_s13 + $0xe0] sm:$0xff] %v7502_v13  ;;  %v7503_v62 = vadd.f32 %v7471_v3, %v7402_v14 }
 0x456   : > { %7537 = vst [vmem:[%s11913_s13 + $0xf8] sm:$0xff] %v7505_v22 }
 0x457   : > { %7535 = vst [vmem:[%s11913_s13 + $0xe8] sm:$0xff] %v7503_v62 }
 0x458 PF: > { %s13_s12 = sadd.s32 1, %s9723_s12  }
 0x459   : > { %p10_p4 = scmp.ge.s32.totalorder %s13_s12, 4  }
 0x45b   :  { %12 = sbr.rel (!%p10_p4) target bundleno = 1 (0x1), region = 72 }

</bundles_post_ra>
